<compile_context>
chip_gen: v5e
topology: v5e:2x2
jax: 0.10.0
libtpu: 0.0.40
codegen_flags: <defaults>
</compile_context>

<pallas_src>
import functools
import math

import jax
import jax.numpy as jnp
from jax.experimental import pallas as pl
from jax.experimental.pallas import tpu as pltpu

_EPS = 1e-5           # torch.nn.LayerNorm default eps
_APPROX_RECIP = True  # pl.reciprocal(approx=True) in the softmax denominator
                      # (EUP, effectively free). Set False for exact fp32 divide.

# ---- packed vec_d row layout -------------------------------------------------
_G_ENC_PB, _G_DEC_PB, _G_ENC_NG, _G_ENC_NB, _G_DEC_NG, _G_DEC_NB = range(6)
_G_NVEC = 6
_ENC_NVEC = 9    # per encoder layer: bq bk bv bo | n1g n1b | b2 n2g n2b
_DEC_NVEC = 15   # per decoder layer: sbq sbk sbv sbo | n1g n1b | cbq cbk cbv cbo | n2g n2b | b2 n3g n3b


def _full_spec(shape):
    zeros = (0,) * len(shape)
    return pl.BlockSpec(shape, lambda b: zeros)   # same block every step -> VMEM-resident


# ----------------------------- in-kernel helpers -----------------------------

def _layernorm(x, g, b, eps=_EPS):
    mean = jnp.mean(x, axis=-1, keepdims=True)
    var = jnp.mean(jnp.square(x - mean), axis=-1, keepdims=True)
    return (x - mean) * jax.lax.rsqrt(var + eps) * g + b


def _ffn(x, w1, b1, w2, b2):
    # configs.activation == "relu"; Conv1d(kernel_size=1) == matmul over features
    h = jnp.maximum(jnp.dot(x, w1, preferred_element_type=jnp.float32) + b1, 0.0)
    return jnp.dot(h, w2, preferred_element_type=jnp.float32) + b2


def _mha(xq, xkv, wq, bq, wk, bk, wv, bv, wo, bo, *, n_heads, causal):
    """AttentionLayer(FullAttention(causal)) for one batch element, all heads in-VMEM."""
    Lq, D = xq.shape
    Lk = xkv.shape[0]
    E = D // n_heads
    scale = 1.0 / math.sqrt(E)

    q = jnp.dot(xq, wq, preferred_element_type=jnp.float32) + bq      # (Lq, D)
    k = jnp.dot(xkv, wk, preferred_element_type=jnp.float32) + bk     # (Lk, D)
    v = jnp.dot(xkv, wv, preferred_element_type=jnp.float32) + bv     # (Lk, D)

    dn = (((1,), (1,)), ((), ()))  # contract feature dims: (Lq,E)x(Lk,E)->(Lq,Lk), no k.T
    # Stack per-head score blocks along the sublane axis -> one (H*Lq, Lk)
    # matrix so softmax is a single max/exp/sum/reciprocal chain for all heads.
    s = jnp.concatenate(
        [jax.lax.dot_general(q[:, h * E:(h + 1) * E], k[:, h * E:(h + 1) * E],
                             dn, preferred_element_type=jnp.float32)
         for h in range(n_heads)], axis=0) * scale                    # (H*Lq, Lk)

    if causal:  # TriangularCausalMask; finite fill value, no NaN risk
        r = jax.lax.broadcasted_iota(jnp.int32, s.shape, 0) % Lq      # query pos in head block
        c = jax.lax.broadcasted_iota(jnp.int32, s.shape, 1)
        s = jnp.where(c > r, -1e30, s)

    m = jnp.max(s, axis=-1, keepdims=True)
    p = jnp.exp(s - m)
    denom = jnp.sum(p, axis=-1, keepdims=True)
    if _APPROX_RECIP:
        p = p * pl.reciprocal(denom, approx=True)
    else:
        p = p / denom

    # concat_h(o_h) @ Wo == sum_h (p_h @ v_h) @ Wo[hE:(h+1)E, :]  (avoids lane concat)
    out = None
    for h in range(n_heads):
        sl = slice(h * E, (h + 1) * E)
        oh = jnp.dot(p[h * Lq:(h + 1) * Lq, :], v[:, sl],
                     preferred_element_type=jnp.float32)              # (Lq, E)
        contrib = jnp.dot(oh, wo[sl, :], preferred_element_type=jnp.float32)  # (Lq, D)
        out = contrib if out is None else out + contrib
    return out + bo


# ----------------------------- fused forward kernel -----------------------------

def _forward_kernel(x_ref,
                    enc_pw_ref, dec_pw_ref, emb_ref,
                    attn_w_ref, ffn_w1_ref, ffn_w2_ref,
                    vec_d_ref, vec_f_ref,
                    out_w_ref, out_b_ref,
                    o_ref,
                    *, n_heads, pred_len, e_layers, d_layers):
    vd = vec_d_ref[...]                       # (Nd, D): every bias / LN vector
    vf = vec_f_ref[...]                       # (e+d, F): FFN hidden biases
    rd = lambda i: vd[i:i + 1, :]             # (1, D) row, broadcasts over sequence

    x_in = x_ref[0]                           # (L, enc_in) for this batch element

    # -------- encoder embedding: projection + bias + positional embedding --------
    h = (jnp.dot(x_in, enc_pw_ref[...], preferred_element_type=jnp.float32)
         + rd(_G_ENC_PB) + emb_ref[0])

    # -------- encoder layers --------
    for l in range(e_layers):
        w0 = 4 * l
        v0 = _G_NVEC + _ENC_NVEC * l
        attn = _mha(h, h,
                    attn_w_ref[w0 + 0], rd(v0 + 0), attn_w_ref[w0 + 1], rd(v0 + 1),
                    attn_w_ref[w0 + 2], rd(v0 + 2), attn_w_ref[w0 + 3], rd(v0 + 3),
                    n_heads=n_heads, causal=False)
        h = _layernorm(h + attn, rd(v0 + 4), rd(v0 + 5))
        y = _ffn(h, ffn_w1_ref[l], vf[l:l + 1, :], ffn_w2_ref[l], rd(v0 + 6))
        h = _layernorm(h + y, rd(v0 + 7), rd(v0 + 8))
    enc = _layernorm(h, rd(_G_ENC_NG), rd(_G_ENC_NB))     # TEncoder norm_layer

    # -------- decoder embedding; x_dec = [x_enc tail ; zeros] built in-kernel --------
    tail = x_in[x_in.shape[0] - pred_len:, :]
    x_dec = jnp.concatenate([tail, jnp.zeros_like(tail)], axis=0)
    h = (jnp.dot(x_dec, dec_pw_ref[...], preferred_element_type=jnp.float32)
         + rd(_G_DEC_PB) + emb_ref[1])

    # -------- decoder layers --------
    for l in range(d_layers):
        w0 = 4 * e_layers + 8 * l
        v0 = _G_NVEC + _ENC_NVEC * e_layers + _DEC_NVEC * l
        f0 = e_layers + l
        attn = _mha(h, h,
                    attn_w_ref[w0 + 0], rd(v0 + 0), attn_w_ref[w0 + 1], rd(v0 + 1),
                    attn_w_ref[w0 + 2], rd(v0 + 2), attn_w_ref[w0 + 3], rd(v0 + 3),
                    n_heads=n_heads, causal=True)
        h = _layernorm(h + attn, rd(v0 + 4), rd(v0 + 5))
        attn = _mha(h, enc,
                    attn_w_ref[w0 + 4], rd(v0 + 6), attn_w_ref[w0 + 5], rd(v0 + 7),
                    attn_w_ref[w0 + 6], rd(v0 + 8), attn_w_ref[w0 + 7], rd(v0 + 9),
                    n_heads=n_heads, causal=False)
        h = _layernorm(h + attn, rd(v0 + 10), rd(v0 + 11))
        y = _ffn(h, ffn_w1_ref[f0], vf[f0:f0 + 1, :], ffn_w2_ref[f0], rd(v0 + 12))
        h = _layernorm(h + y, rd(v0 + 13), rd(v0 + 14))

    # -------- final LayerNorm + output projection: only what the model consumes --------
    # forward() returns dec_out[:, -pred_len:, 0]; LN and Linear are row-wise, so
    # compute only the last pred_len rows and only output column 0.
    last = _layernorm(h[h.shape[0] - pred_len:, :], rd(_G_DEC_NG), rd(_G_DEC_NB))
    o_ref[0] = (jnp.dot(last, out_w_ref[...], preferred_element_type=jnp.float32)
                + out_b_ref[...])                                     # (pred_len, 1)


_PARAM_ORDER = ("enc_proj_w", "dec_proj_w", "emb", "attn_w", "ffn_w1", "ffn_w2",
                "vec_d", "vec_f", "out_w", "out_b")


def vtransformer_forward(params, x_enc, cfg):
    B, L, Din = x_enc.shape
    pred_len, n_heads = cfg["pred_len"], cfg["n_heads"]
    # decEmbedding is (seq_len, d_model) added to a length-2*pred_len sequence;
    # this only type-checks when 2*pred_len == seq_len (as in the reference cfg).
    assert 2 * pred_len == cfg["seq_len"], "decEmbedding length must equal 2*pred_len"
    assert L == cfg["seq_len"]

    kernel = functools.partial(_forward_kernel, n_heads=n_heads, pred_len=pred_len,
                               e_layers=cfg["e_layers"], d_layers=cfg["d_layers"])
    out = pl.pallas_call(
        kernel,
        out_shape=jax.ShapeDtypeStruct((B, pred_len, 1), jnp.float32),
        grid=(B,),
        in_specs=[pl.BlockSpec((1, L, Din), lambda b: (b, 0, 0))]
                 + [_full_spec(params[name].shape) for name in _PARAM_ORDER],
        out_specs=pl.BlockSpec((1, pred_len, 1), lambda b: (b, 0, 0)),
        compiler_params=pltpu.CompilerParams(dimension_semantics=("parallel",)),
    )(x_enc, *[params[name] for name in _PARAM_ORDER])
    return out[:, :, 0]     # (B, pred_len); free squeeze, no data movement


# ----------------------------- deterministic init (packed) -----------------------------

def _dense(key, din, dout, scale=0.05):
    kw, kb = jax.random.split(key)
    return (scale * jax.random.normal(kw, (din, dout), jnp.float32),
            scale * jax.random.normal(kb, (dout,), jnp.float32))


def init_params(key, cfg):
    D, F, L = cfg["d_model"], cfg["d_ff"], cfg["seq_len"]
    eL, dL = cfg["e_layers"], cfg["d_layers"]
    keys = iter(jax.random.split(key, 5 + 6 * eL + 10 * dL))
    nxt = lambda: next(keys)
    ones, zeros = jnp.ones((D,), jnp.float32), jnp.zeros((D,), jnp.float32)

    enc_pw, enc_pb = _dense(nxt(), cfg["enc_in"], D)
    dec_pw, dec_pb = _dense(nxt(), cfg["dec_in"], D)
    enc_emb = jax.random.uniform(nxt(), (L, D), jnp.float32)
    dec_emb = jax.random.uniform(nxt(), (L, D), jnp.float32)
    out_w, out_b = _dense(nxt(), D, cfg["c_out"])

    vec_d = [enc_pb, dec_pb, ones, zeros, ones, zeros]    # matches _G_* row layout
    attn_w, ffn_w1, ffn_w2, vec_f = [], [], [], []

    def add_attn():                                       # wq,bq,wk,bk,wv,bv,wo,bo
        for _ in range(4):
            w, b = _dense(nxt(), D, D)
            attn_w.append(w)
            vec_d.append(b)

    def add_ffn():
        w1, b1 = _dense(nxt(), D, F)
        w2, b2 = _dense(nxt(), F, D)
        ffn_w1.append(w1); ffn_w2.append(w2); vec_f.append(b1)
        return b2

    for _ in range(eL):                                   # encoder layers
        add_attn()                                        # bq bk bv bo
        vec_d.extend([ones, zeros])                       # norm1
        b2 = add_ffn()
        vec_d.extend([b2, ones, zeros])                   # b2, norm2

    for _ in range(dL):                                   # decoder layers
        add_attn()                                        # self-attn biases
        vec_d.extend([ones, zeros])                       # norm1
        add_attn()                                        # cross-attn biases
        vec_d.extend([ones, zeros])                       # norm2
        b2 = add_ffn()
        vec_d.extend([b2, ones, zeros])                   # b2, norm3

    return dict(
        enc_proj_w=enc_pw,
        dec_proj_w=dec_pw,
        emb=jnp.stack([enc_emb, dec_emb]),                # (2, L, D)
        attn_w=jnp.stack(attn_w),                         # (4e+8d, D, D)
        ffn_w1=jnp.stack(ffn_w1),                         # (e+d, D, F)
        ffn_w2=jnp.stack(ffn_w2),                         # (e+d, F, D)
        vec_d=jnp.stack(vec_d),                           # (6+9e+15d, D)
        vec_f=jnp.stack(vec_f),                           # (e+d, F)
        # only column 0 of the output projection is ever consumed by forward()
        out_w=out_w[:, :1],                               # (D, 1)
        out_b=out_b[:1].reshape(1, 1),                    # (1, 1)
    )


# ----------------------------- main -----------------------------

if __name__ == "__main__":
    # TODO(synk): dropout is a no-op here (eval-mode semantics); output_attention
    # branch in the reference forward returns the same tensor either way.
    cfg = dict(enc_in=4, dec_in=4, c_out=4, d_model=32, n_heads=4, d_ff=64,
               e_layers=2, d_layers=1, seq_len=8, pred_len=4)   # 2*pred_len == seq_len

    key = jax.random.PRNGKey(0)
    k_param, k_data = jax.random.split(key)
    params = init_params(k_param, cfg)

    B = 2
    x_enc = jax.random.normal(k_data, (B, cfg["seq_len"], cfg["enc_in"]), jnp.float32)

    fwd = jax.jit(lambda p, x: vtransformer_forward(p, x, cfg))
    out = jax.block_until_ready(fwd(params, x_enc))

    assert out.shape == (B, cfg["pred_len"]), out.shape
    assert bool(jnp.all(jnp.isfinite(out)))
    print("KERNEL_OK")
</pallas_src>

<mosaic_0001>
module attributes {stable_mosaic.version = 11 : i64} {
  func.func @_forward_kernel(%arg0: i32, %arg1: memref<1x8x4xf32, #tpu.memory_space<vmem>>, %arg2: memref<4x32xf32, #tpu.memory_space<vmem>>, %arg3: memref<4x32xf32, #tpu.memory_space<vmem>>, %arg4: memref<2x8x32xf32, #tpu.memory_space<vmem>>, %arg5: memref<16x32x32xf32, #tpu.memory_space<vmem>>, %arg6: memref<3x32x64xf32, #tpu.memory_space<vmem>>, %arg7: memref<3x64x32xf32, #tpu.memory_space<vmem>>, %arg8: memref<39x32xf32, #tpu.memory_space<vmem>>, %arg9: memref<3x64xf32, #tpu.memory_space<vmem>>, %arg10: memref<32x1xf32, #tpu.memory_space<vmem>>, %arg11: memref<1x1xf32, #tpu.memory_space<vmem>>, %arg12: memref<1x4x1xf32, #tpu.memory_space<vmem>>) attributes {dimension_semantics = [#tpu.dimension_semantics<parallel>], iteration_bounds = array<i64: 2>, scalar_prefetch = 0 : i64, scratch_operands = 0 : i64, tpu.core_type = #tpu.core_type<tc>, window_params = [{transform_indices = @transform_0, window_bounds = array<i64: 1, 8, 4>}, {pipeline_mode = #tpu.pipeline_mode<synchronous>, transform_indices = @transform_1, window_bounds = array<i64: 4, 32>}, {pipeline_mode = #tpu.pipeline_mode<synchronous>, transform_indices = @transform_2, window_bounds = array<i64: 4, 32>}, {pipeline_mode = #tpu.pipeline_mode<synchronous>, transform_indices = @transform_3, window_bounds = array<i64: 2, 8, 32>}, {pipeline_mode = #tpu.pipeline_mode<synchronous>, transform_indices = @transform_4, window_bounds = array<i64: 16, 32, 32>}, {pipeline_mode = #tpu.pipeline_mode<synchronous>, transform_indices = @transform_5, window_bounds = array<i64: 3, 32, 64>}, {pipeline_mode = #tpu.pipeline_mode<synchronous>, transform_indices = @transform_6, window_bounds = array<i64: 3, 64, 32>}, {pipeline_mode = #tpu.pipeline_mode<synchronous>, transform_indices = @transform_7, window_bounds = array<i64: 39, 32>}, {pipeline_mode = #tpu.pipeline_mode<synchronous>, transform_indices = @transform_8, window_bounds = array<i64: 3, 64>}, {pipeline_mode = #tpu.pipeline_mode<synchronous>, transform_indices = @transform_9, window_bounds = array<i64: 32, 1>}, {pipeline_mode = #tpu.pipeline_mode<synchronous>, transform_indices = @transform_10, window_bounds = array<i64: 1, 1>}, {transform_indices = @transform_11, window_bounds = array<i64: 1, 4, 1>}]} {
    %c0 = arith.constant 0 : index
    %c0_0 = arith.constant 0 : index
    %0 = vector.load %arg8[%c0, %c0_0] : memref<39x32xf32, #tpu.memory_space<vmem>>, vector<39x32xf32>
    %c0_1 = arith.constant 0 : index
    %c0_2 = arith.constant 0 : index
    %1 = vector.load %arg9[%c0_1, %c0_2] : memref<3x64xf32, #tpu.memory_space<vmem>>, vector<3x64xf32>
    %c0_3 = arith.constant 0 : index
    %c0_4 = arith.constant 0 : index
    %c0_5 = arith.constant 0 : index
    %2 = vector.load %arg1[%c0_3, %c0_4, %c0_5] : memref<1x8x4xf32, #tpu.memory_space<vmem>>, vector<1x8x4xf32>
    %3 = vector.shape_cast %2 : vector<1x8x4xf32> to vector<8x4xf32>
    %c0_6 = arith.constant 0 : index
    %c0_7 = arith.constant 0 : index
    %4 = vector.load %arg2[%c0_6, %c0_7] : memref<4x32xf32, #tpu.memory_space<vmem>>, vector<4x32xf32>
    %cst = arith.constant dense<0.000000e+00> : vector<8x32xf32>
    %5 = tpu.matmul %3, %4, %cst {dimension_numbers = #tpu.dot_dimension_numbers<[1], [0], [0], [1], [0, 0, 1, 1], [], []>} : vector<8x4xf32>, vector<4x32xf32>, vector<8x32xf32> -> vector<8x32xf32>
    %6 = vector.extract_strided_slice %0 {offsets = [0, 0], sizes = [1, 32], strides = [1, 1]} : vector<39x32xf32> to vector<1x32xf32>
    %7 = vector.broadcast %6 : vector<1x32xf32> to vector<8x32xf32>
    %8 = arith.addf %5, %7 : vector<8x32xf32>
    %c0_8 = arith.constant 0 : index
    %c0_9 = arith.constant 0 : index
    %c0_10 = arith.constant 0 : index
    %9 = vector.load %arg4[%c0_8, %c0_9, %c0_10] : memref<2x8x32xf32, #tpu.memory_space<vmem>>, vector<1x8x32xf32>
    %10 = vector.shape_cast %9 : vector<1x8x32xf32> to vector<8x32xf32>
    %11 = arith.addf %8, %10 : vector<8x32xf32>
    %c0_11 = arith.constant 0 : index
    %c0_12 = arith.constant 0 : index
    %c0_13 = arith.constant 0 : index
    %12 = vector.load %arg5[%c0_11, %c0_12, %c0_13] : memref<16x32x32xf32, #tpu.memory_space<vmem>>, vector<1x32x32xf32>
    %13 = vector.shape_cast %12 : vector<1x32x32xf32> to vector<32x32xf32>
    %14 = vector.extract_strided_slice %0 {offsets = [6, 0], sizes = [1, 32], strides = [1, 1]} : vector<39x32xf32> to vector<1x32xf32>
    %c1 = arith.constant 1 : index
    %c0_14 = arith.constant 0 : index
    %c0_15 = arith.constant 0 : index
    %15 = vector.load %arg5[%c1, %c0_14, %c0_15] : memref<16x32x32xf32, #tpu.memory_space<vmem>>, vector<1x32x32xf32>
    %16 = vector.shape_cast %15 : vector<1x32x32xf32> to vector<32x32xf32>
    %17 = vector.extract_strided_slice %0 {offsets = [7, 0], sizes = [1, 32], strides = [1, 1]} : vector<39x32xf32> to vector<1x32xf32>
    %c2 = arith.constant 2 : index
    %c0_16 = arith.constant 0 : index
    %c0_17 = arith.constant 0 : index
    %18 = vector.load %arg5[%c2, %c0_16, %c0_17] : memref<16x32x32xf32, #tpu.memory_space<vmem>>, vector<1x32x32xf32>
    %19 = vector.shape_cast %18 : vector<1x32x32xf32> to vector<32x32xf32>
    %20 = vector.extract_strided_slice %0 {offsets = [8, 0], sizes = [1, 32], strides = [1, 1]} : vector<39x32xf32> to vector<1x32xf32>
    %c3 = arith.constant 3 : index
    %c0_18 = arith.constant 0 : index
    %c0_19 = arith.constant 0 : index
    %21 = vector.load %arg5[%c3, %c0_18, %c0_19] : memref<16x32x32xf32, #tpu.memory_space<vmem>>, vector<1x32x32xf32>
    %22 = vector.shape_cast %21 : vector<1x32x32xf32> to vector<32x32xf32>
    %23 = vector.extract_strided_slice %0 {offsets = [9, 0], sizes = [1, 32], strides = [1, 1]} : vector<39x32xf32> to vector<1x32xf32>
    %cst_20 = arith.constant dense<0.000000e+00> : vector<8x32xf32>
    %24 = tpu.matmul %11, %13, %cst_20 {dimension_numbers = #tpu.dot_dimension_numbers<[1], [0], [0], [1], [0, 0, 1, 1], [], []>} : vector<8x32xf32>, vector<32x32xf32>, vector<8x32xf32> -> vector<8x32xf32>
    %25 = vector.broadcast %14 : vector<1x32xf32> to vector<8x32xf32>
    %26 = arith.addf %24, %25 : vector<8x32xf32>
    %cst_21 = arith.constant dense<0.000000e+00> : vector<8x32xf32>
    %27 = tpu.matmul %11, %16, %cst_21 {dimension_numbers = #tpu.dot_dimension_numbers<[1], [0], [0], [1], [0, 0, 1, 1], [], []>} : vector<8x32xf32>, vector<32x32xf32>, vector<8x32xf32> -> vector<8x32xf32>
    %28 = vector.broadcast %17 : vector<1x32xf32> to vector<8x32xf32>
    %29 = arith.addf %27, %28 : vector<8x32xf32>
    %cst_22 = arith.constant dense<0.000000e+00> : vector<8x32xf32>
    %30 = tpu.matmul %11, %19, %cst_22 {dimension_numbers = #tpu.dot_dimension_numbers<[1], [0], [0], [1], [0, 0, 1, 1], [], []>} : vector<8x32xf32>, vector<32x32xf32>, vector<8x32xf32> -> vector<8x32xf32>
    %31 = vector.broadcast %20 : vector<1x32xf32> to vector<8x32xf32>
    %32 = arith.addf %30, %31 : vector<8x32xf32>
    %33 = vector.extract_strided_slice %26 {offsets = [0, 0], sizes = [8, 8], strides = [1, 1]} : vector<8x32xf32> to vector<8x8xf32>
    %34 = vector.extract_strided_slice %29 {offsets = [0, 0], sizes = [8, 8], strides = [1, 1]} : vector<8x32xf32> to vector<8x8xf32>
    %cst_23 = arith.constant dense<0.000000e+00> : vector<8x8xf32>
    %35 = tpu.matmul %33, %34, %cst_23 {dimension_numbers = #tpu.dot_dimension_numbers<[1], [1], [0], [0], [0, 0, 1, 0], [], []>} : vector<8x8xf32>, vector<8x8xf32>, vector<8x8xf32> -> vector<8x8xf32>
    %36 = vector.extract_strided_slice %26 {offsets = [0, 8], sizes = [8, 8], strides = [1, 1]} : vector<8x32xf32> to vector<8x8xf32>
    %37 = vector.extract_strided_slice %29 {offsets = [0, 8], sizes = [8, 8], strides = [1, 1]} : vector<8x32xf32> to vector<8x8xf32>
    %cst_24 = arith.constant dense<0.000000e+00> : vector<8x8xf32>
    %38 = tpu.matmul %36, %37, %cst_24 {dimension_numbers = #tpu.dot_dimension_numbers<[1], [1], [0], [0], [0, 0, 1, 0], [], []>} : vector<8x8xf32>, vector<8x8xf32>, vector<8x8xf32> -> vector<8x8xf32>
    %39 = vector.extract_strided_slice %26 {offsets = [0, 16], sizes = [8, 8], strides = [1, 1]} : vector<8x32xf32> to vector<8x8xf32>
    %40 = vector.extract_strided_slice %29 {offsets = [0, 16], sizes = [8, 8], strides = [1, 1]} : vector<8x32xf32> to vector<8x8xf32>
    %cst_25 = arith.constant dense<0.000000e+00> : vector<8x8xf32>
    %41 = tpu.matmul %39, %40, %cst_25 {dimension_numbers = #tpu.dot_dimension_numbers<[1], [1], [0], [0], [0, 0, 1, 0], [], []>} : vector<8x8xf32>, vector<8x8xf32>, vector<8x8xf32> -> vector<8x8xf32>
    %42 = vector.extract_strided_slice %26 {offsets = [0, 24], sizes = [8, 8], strides = [1, 1]} : vector<8x32xf32> to vector<8x8xf32>
    %43 = vector.extract_strided_slice %29 {offsets = [0, 24], sizes = [8, 8], strides = [1, 1]} : vector<8x32xf32> to vector<8x8xf32>
    %cst_26 = arith.constant dense<0.000000e+00> : vector<8x8xf32>
    %44 = tpu.matmul %42, %43, %cst_26 {dimension_numbers = #tpu.dot_dimension_numbers<[1], [1], [0], [0], [0, 0, 1, 0], [], []>} : vector<8x8xf32>, vector<8x8xf32>, vector<8x8xf32> -> vector<8x8xf32>
    %45 = tpu.concatenate %35, %38, %41, %44 in 0 : vector<8x8xf32>, vector<8x8xf32>, vector<8x8xf32>, vector<8x8xf32> -> vector<32x8xf32>
    %cst_27 = arith.constant 0.353553385 : f32
    %46 = vector.broadcast %cst_27 : f32 to vector<32x8xf32>
    %47 = arith.mulf %45, %46 : vector<32x8xf32>
    %cst_28 = arith.constant dense<0xFF800000> : vector<32xf32>
    %48 = vector.multi_reduction <maximumf>, %47, %cst_28 [1] : vector<32x8xf32> to vector<32xf32>
    %49 = vector.shape_cast %48 : vector<32xf32> to vector<32x1xf32>
    %50 = vector.broadcast %49 : vector<32x1xf32> to vector<32x8xf32>
    %51 = arith.subf %47, %50 : vector<32x8xf32>
    %52 = math.exp %51 : vector<32x8xf32>
    %cst_29 = arith.constant dense<0.000000e+00> : vector<32xf32>
    %53 = vector.multi_reduction <add>, %52, %cst_29 [1] : vector<32x8xf32> to vector<32xf32>
    %54 = vector.shape_cast %53 : vector<32xf32> to vector<32x1xf32>
    %55 = tpu.reciprocal %54 {approx = true} : vector<32x1xf32> -> vector<32x1xf32>
    %56 = vector.broadcast %55 : vector<32x1xf32> to vector<32x8xf32>
    %57 = arith.mulf %52, %56 : vector<32x8xf32>
    %58 = vector.extract_strided_slice %57 {offsets = [0, 0], sizes = [8, 8], strides = [1, 1]} : vector<32x8xf32> to vector<8x8xf32>
    %59 = vector.extract_strided_slice %32 {offsets = [0, 0], sizes = [8, 8], strides = [1, 1]} : vector<8x32xf32> to vector<8x8xf32>
    %cst_30 = arith.constant dense<0.000000e+00> : vector<8x8xf32>
    %60 = tpu.matmul %58, %59, %cst_30 {dimension_numbers = #tpu.dot_dimension_numbers<[1], [0], [0], [1], [0, 0, 1, 1], [], []>} : vector<8x8xf32>, vector<8x8xf32>, vector<8x8xf32> -> vector<8x8xf32>
    %61 = vector.extract_strided_slice %22 {offsets = [0, 0], sizes = [8, 32], strides = [1, 1]} : vector<32x32xf32> to vector<8x32xf32>
    %cst_31 = arith.constant dense<0.000000e+00> : vector<8x32xf32>
    %62 = tpu.matmul %60, %61, %cst_31 {dimension_numbers = #tpu.dot_dimension_numbers<[1], [0], [0], [1], [0, 0, 1, 1], [], []>} : vector<8x8xf32>, vector<8x32xf32>, vector<8x32xf32> -> vector<8x32xf32>
    %63 = vector.extract_strided_slice %57 {offsets = [8, 0], sizes = [8, 8], strides = [1, 1]} : vector<32x8xf32> to vector<8x8xf32>
    %64 = vector.extract_strided_slice %32 {offsets = [0, 8], sizes = [8, 8], strides = [1, 1]} : vector<8x32xf32> to vector<8x8xf32>
    %cst_32 = arith.constant dense<0.000000e+00> : vector<8x8xf32>
    %65 = tpu.matmul %63, %64, %cst_32 {dimension_numbers = #tpu.dot_dimension_numbers<[1], [0], [0], [1], [0, 0, 1, 1], [], []>} : vector<8x8xf32>, vector<8x8xf32>, vector<8x8xf32> -> vector<8x8xf32>
    %66 = vector.extract_strided_slice %22 {offsets = [8, 0], sizes = [8, 32], strides = [1, 1]} : vector<32x32xf32> to vector<8x32xf32>
    %cst_33 = arith.constant dense<0.000000e+00> : vector<8x32xf32>
    %67 = tpu.matmul %65, %66, %cst_33 {dimension_numbers = #tpu.dot_dimension_numbers<[1], [0], [0], [1], [0, 0, 1, 1], [], []>} : vector<8x8xf32>, vector<8x32xf32>, vector<8x32xf32> -> vector<8x32xf32>
    %68 = arith.addf %62, %67 : vector<8x32xf32>
    %69 = vector.extract_strided_slice %57 {offsets = [16, 0], sizes = [8, 8], strides = [1, 1]} : vector<32x8xf32> to vector<8x8xf32>
    %70 = vector.extract_strided_slice %32 {offsets = [0, 16], sizes = [8, 8], strides = [1, 1]} : vector<8x32xf32> to vector<8x8xf32>
    %cst_34 = arith.constant dense<0.000000e+00> : vector<8x8xf32>
    %71 = tpu.matmul %69, %70, %cst_34 {dimension_numbers = #tpu.dot_dimension_numbers<[1], [0], [0], [1], [0, 0, 1, 1], [], []>} : vector<8x8xf32>, vector<8x8xf32>, vector<8x8xf32> -> vector<8x8xf32>
    %72 = vector.extract_strided_slice %22 {offsets = [16, 0], sizes = [8, 32], strides = [1, 1]} : vector<32x32xf32> to vector<8x32xf32>
    %cst_35 = arith.constant dense<0.000000e+00> : vector<8x32xf32>
    %73 = tpu.matmul %71, %72, %cst_35 {dimension_numbers = #tpu.dot_dimension_numbers<[1], [0], [0], [1], [0, 0, 1, 1], [], []>} : vector<8x8xf32>, vector<8x32xf32>, vector<8x32xf32> -> vector<8x32xf32>
    %74 = arith.addf %68, %73 : vector<8x32xf32>
    %75 = vector.extract_strided_slice %57 {offsets = [24, 0], sizes = [8, 8], strides = [1, 1]} : vector<32x8xf32> to vector<8x8xf32>
    %76 = vector.extract_strided_slice %32 {offsets = [0, 24], sizes = [8, 8], strides = [1, 1]} : vector<8x32xf32> to vector<8x8xf32>
    %cst_36 = arith.constant dense<0.000000e+00> : vector<8x8xf32>
    %77 = tpu.matmul %75, %76, %cst_36 {dimension_numbers = #tpu.dot_dimension_numbers<[1], [0], [0], [1], [0, 0, 1, 1], [], []>} : vector<8x8xf32>, vector<8x8xf32>, vector<8x8xf32> -> vector<8x8xf32>
    %78 = vector.extract_strided_slice %22 {offsets = [24, 0], sizes = [8, 32], strides = [1, 1]} : vector<32x32xf32> to vector<8x32xf32>
    %cst_37 = arith.constant dense<0.000000e+00> : vector<8x32xf32>
    %79 = tpu.matmul %77, %78, %cst_37 {dimension_numbers = #tpu.dot_dimension_numbers<[1], [0], [0], [1], [0, 0, 1, 1], [], []>} : vector<8x8xf32>, vector<8x32xf32>, vector<8x32xf32> -> vector<8x32xf32>
    %80 = arith.addf %74, %79 : vector<8x32xf32>
    %81 = vector.broadcast %23 : vector<1x32xf32> to vector<8x32xf32>
    %82 = arith.addf %80, %81 : vector<8x32xf32>
    %83 = arith.addf %11, %82 : vector<8x32xf32>
    %84 = vector.extract_strided_slice %0 {offsets = [10, 0], sizes = [1, 32], strides = [1, 1]} : vector<39x32xf32> to vector<1x32xf32>
    %85 = vector.extract_strided_slice %0 {offsets = [11, 0], sizes = [1, 32], strides = [1, 1]} : vector<39x32xf32> to vector<1x32xf32>
    %cst_38 = arith.constant dense<0.000000e+00> : vector<8xf32>
    %86 = vector.multi_reduction <add>, %83, %cst_38 [1] : vector<8x32xf32> to vector<8xf32>
    %87 = vector.shape_cast %86 : vector<8xf32> to vector<8x1xf32>
    %cst_39 = arith.constant 3.200000e+01 : f32
    %88 = vector.broadcast %cst_39 : f32 to vector<8x1xf32>
    %89 = arith.divf %87, %88 : vector<8x1xf32>
    %90 = vector.broadcast %89 : vector<8x1xf32> to vector<8x32xf32>
    %91 = arith.subf %83, %90 : vector<8x32xf32>
    %92 = arith.mulf %91, %91 : vector<8x32xf32>
    %cst_40 = arith.constant dense<0.000000e+00> : vector<8xf32>
    %93 = vector.multi_reduction <add>, %92, %cst_40 [1] : vector<8x32xf32> to vector<8xf32>
    %94 = vector.shape_cast %93 : vector<8xf32> to vector<8x1xf32>
    %cst_41 = arith.constant 3.200000e+01 : f32
    %95 = vector.broadcast %cst_41 : f32 to vector<8x1xf32>
    %96 = arith.divf %94, %95 : vector<8x1xf32>
    %97 = vector.broadcast %89 : vector<8x1xf32> to vector<8x32xf32>
    %98 = arith.subf %83, %97 : vector<8x32xf32>
    %cst_42 = arith.constant 9.99999974E-6 : f32
    %99 = vector.broadcast %cst_42 : f32 to vector<8x1xf32>
    %100 = arith.addf %96, %99 : vector<8x1xf32>
    %101 = math.rsqrt %100 : vector<8x1xf32>
    %102 = vector.broadcast %101 : vector<8x1xf32> to vector<8x32xf32>
    %103 = arith.mulf %98, %102 : vector<8x32xf32>
    %104 = vector.broadcast %84 : vector<1x32xf32> to vector<8x32xf32>
    %105 = arith.mulf %103, %104 : vector<8x32xf32>
    %106 = vector.broadcast %85 : vector<1x32xf32> to vector<8x32xf32>
    %107 = arith.addf %105, %106 : vector<8x32xf32>
    %c0_43 = arith.constant 0 : index
    %c0_44 = arith.constant 0 : index
    %c0_45 = arith.constant 0 : index
    %108 = vector.load %arg6[%c0_43, %c0_44, %c0_45] : memref<3x32x64xf32, #tpu.memory_space<vmem>>, vector<1x32x64xf32>
    %109 = vector.shape_cast %108 : vector<1x32x64xf32> to vector<32x64xf32>
    %110 = vector.extract_strided_slice %1 {offsets = [0, 0], sizes = [1, 64], strides = [1, 1]} : vector<3x64xf32> to vector<1x64xf32>
    %c0_46 = arith.constant 0 : index
    %c0_47 = arith.constant 0 : index
    %c0_48 = arith.constant 0 : index
    %111 = vector.load %arg7[%c0_46, %c0_47, %c0_48] : memref<3x64x32xf32, #tpu.memory_space<vmem>>, vector<1x64x32xf32>
    %112 = vector.shape_cast %111 : vector<1x64x32xf32> to vector<64x32xf32>
    %113 = vector.extract_strided_slice %0 {offsets = [12, 0], sizes = [1, 32], strides = [1, 1]} : vector<39x32xf32> to vector<1x32xf32>
    %cst_49 = arith.constant dense<0.000000e+00> : vector<8x64xf32>
    %114 = tpu.matmul %107, %109, %cst_49 {dimension_numbers = #tpu.dot_dimension_numbers<[1], [0], [0], [1], [0, 0, 1, 1], [], []>} : vector<8x32xf32>, vector<32x64xf32>, vector<8x64xf32> -> vector<8x64xf32>
    %115 = vector.broadcast %110 : vector<1x64xf32> to vector<8x64xf32>
    %116 = arith.addf %114, %115 : vector<8x64xf32>
    %cst_50 = arith.constant 0.000000e+00 : f32
    %117 = vector.broadcast %cst_50 : f32 to vector<8x64xf32>
    %118 = arith.maximumf %116, %117 : vector<8x64xf32>
    %cst_51 = arith.constant dense<0.000000e+00> : vector<8x32xf32>
    %119 = tpu.matmul %118, %112, %cst_51 {dimension_numbers = #tpu.dot_dimension_numbers<[1], [0], [0], [1], [0, 0, 1, 1], [], []>} : vector<8x64xf32>, vector<64x32xf32>, vector<8x32xf32> -> vector<8x32xf32>
    %120 = vector.broadcast %113 : vector<1x32xf32> to vector<8x32xf32>
    %121 = arith.addf %119, %120 : vector<8x32xf32>
    %122 = arith.addf %107, %121 : vector<8x32xf32>
    %123 = vector.extract_strided_slice %0 {offsets = [13, 0], sizes = [1, 32], strides = [1, 1]} : vector<39x32xf32> to vector<1x32xf32>
    %124 = vector.extract_strided_slice %0 {offsets = [14, 0], sizes = [1, 32], strides = [1, 1]} : vector<39x32xf32> to vector<1x32xf32>
    %cst_52 = arith.constant dense<0.000000e+00> : vector<8xf32>
    %125 = vector.multi_reduction <add>, %122, %cst_52 [1] : vector<8x32xf32> to vector<8xf32>
    %126 = vector.shape_cast %125 : vector<8xf32> to vector<8x1xf32>
    %cst_53 = arith.constant 3.200000e+01 : f32
    %127 = vector.broadcast %cst_53 : f32 to vector<8x1xf32>
    %128 = arith.divf %126, %127 : vector<8x1xf32>
    %129 = vector.broadcast %128 : vector<8x1xf32> to vector<8x32xf32>
    %130 = arith.subf %122, %129 : vector<8x32xf32>
    %131 = arith.mulf %130, %130 : vector<8x32xf32>
    %cst_54 = arith.constant dense<0.000000e+00> : vector<8xf32>
    %132 = vector.multi_reduction <add>, %131, %cst_54 [1] : vector<8x32xf32> to vector<8xf32>
    %133 = vector.shape_cast %132 : vector<8xf32> to vector<8x1xf32>
    %cst_55 = arith.constant 3.200000e+01 : f32
    %134 = vector.broadcast %cst_55 : f32 to vector<8x1xf32>
    %135 = arith.divf %133, %134 : vector<8x1xf32>
    %136 = vector.broadcast %128 : vector<8x1xf32> to vector<8x32xf32>
    %137 = arith.subf %122, %136 : vector<8x32xf32>
    %cst_56 = arith.constant 9.99999974E-6 : f32
    %138 = vector.broadcast %cst_56 : f32 to vector<8x1xf32>
    %139 = arith.addf %135, %138 : vector<8x1xf32>
    %140 = math.rsqrt %139 : vector<8x1xf32>
    %141 = vector.broadcast %140 : vector<8x1xf32> to vector<8x32xf32>
    %142 = arith.mulf %137, %141 : vector<8x32xf32>
    %143 = vector.broadcast %123 : vector<1x32xf32> to vector<8x32xf32>
    %144 = arith.mulf %142, %143 : vector<8x32xf32>
    %145 = vector.broadcast %124 : vector<1x32xf32> to vector<8x32xf32>
    %146 = arith.addf %144, %145 : vector<8x32xf32>
    %c4 = arith.constant 4 : index
    %c0_57 = arith.constant 0 : index
    %c0_58 = arith.constant 0 : index
    %147 = vector.load %arg5[%c4, %c0_57, %c0_58] : memref<16x32x32xf32, #tpu.memory_space<vmem>>, vector<1x32x32xf32>
    %148 = vector.shape_cast %147 : vector<1x32x32xf32> to vector<32x32xf32>
    %149 = vector.extract_strided_slice %0 {offsets = [15, 0], sizes = [1, 32], strides = [1, 1]} : vector<39x32xf32> to vector<1x32xf32>
    %c5 = arith.constant 5 : index
    %c0_59 = arith.constant 0 : index
    %c0_60 = arith.constant 0 : index
    %150 = vector.load %arg5[%c5, %c0_59, %c0_60] : memref<16x32x32xf32, #tpu.memory_space<vmem>>, vector<1x32x32xf32>
    %151 = vector.shape_cast %150 : vector<1x32x32xf32> to vector<32x32xf32>
    %152 = vector.extract_strided_slice %0 {offsets = [16, 0], sizes = [1, 32], strides = [1, 1]} : vector<39x32xf32> to vector<1x32xf32>
    %c6 = arith.constant 6 : index
    %c0_61 = arith.constant 0 : index
    %c0_62 = arith.constant 0 : index
    %153 = vector.load %arg5[%c6, %c0_61, %c0_62] : memref<16x32x32xf32, #tpu.memory_space<vmem>>, vector<1x32x32xf32>
    %154 = vector.shape_cast %153 : vector<1x32x32xf32> to vector<32x32xf32>
    %155 = vector.extract_strided_slice %0 {offsets = [17, 0], sizes = [1, 32], strides = [1, 1]} : vector<39x32xf32> to vector<1x32xf32>
    %c7 = arith.constant 7 : index
    %c0_63 = arith.constant 0 : index
    %c0_64 = arith.constant 0 : index
    %156 = vector.load %arg5[%c7, %c0_63, %c0_64] : memref<16x32x32xf32, #tpu.memory_space<vmem>>, vector<1x32x32xf32>
    %157 = vector.shape_cast %156 : vector<1x32x32xf32> to vector<32x32xf32>
    %158 = vector.extract_strided_slice %0 {offsets = [18, 0], sizes = [1, 32], strides = [1, 1]} : vector<39x32xf32> to vector<1x32xf32>
    %cst_65 = arith.constant dense<0.000000e+00> : vector<8x32xf32>
    %159 = tpu.matmul %146, %148, %cst_65 {dimension_numbers = #tpu.dot_dimension_numbers<[1], [0], [0], [1], [0, 0, 1, 1], [], []>} : vector<8x32xf32>, vector<32x32xf32>, vector<8x32xf32> -> vector<8x32xf32>
    %160 = vector.broadcast %149 : vector<1x32xf32> to vector<8x32xf32>
    %161 = arith.addf %159, %160 : vector<8x32xf32>
    %cst_66 = arith.constant dense<0.000000e+00> : vector<8x32xf32>
    %162 = tpu.matmul %146, %151, %cst_66 {dimension_numbers = #tpu.dot_dimension_numbers<[1], [0], [0], [1], [0, 0, 1, 1], [], []>} : vector<8x32xf32>, vector<32x32xf32>, vector<8x32xf32> -> vector<8x32xf32>
    %163 = vector.broadcast %152 : vector<1x32xf32> to vector<8x32xf32>
    %164 = arith.addf %162, %163 : vector<8x32xf32>
    %cst_67 = arith.constant dense<0.000000e+00> : vector<8x32xf32>
    %165 = tpu.matmul %146, %154, %cst_67 {dimension_numbers = #tpu.dot_dimension_numbers<[1], [0], [0], [1], [0, 0, 1, 1], [], []>} : vector<8x32xf32>, vector<32x32xf32>, vector<8x32xf32> -> vector<8x32xf32>
    %166 = vector.broadcast %155 : vector<1x32xf32> to vector<8x32xf32>
    %167 = arith.addf %165, %166 : vector<8x32xf32>
    %168 = vector.extract_strided_slice %161 {offsets = [0, 0], sizes = [8, 8], strides = [1, 1]} : vector<8x32xf32> to vector<8x8xf32>
    %169 = vector.extract_strided_slice %164 {offsets = [0, 0], sizes = [8, 8], strides = [1, 1]} : vector<8x32xf32> to vector<8x8xf32>
    %cst_68 = arith.constant dense<0.000000e+00> : vector<8x8xf32>
    %170 = tpu.matmul %168, %169, %cst_68 {dimension_numbers = #tpu.dot_dimension_numbers<[1], [1], [0], [0], [0, 0, 1, 0], [], []>} : vector<8x8xf32>, vector<8x8xf32>, vector<8x8xf32> -> vector<8x8xf32>
    %171 = vector.extract_strided_slice %161 {offsets = [0, 8], sizes = [8, 8], strides = [1, 1]} : vector<8x32xf32> to vector<8x8xf32>
    %172 = vector.extract_strided_slice %164 {offsets = [0, 8], sizes = [8, 8], strides = [1, 1]} : vector<8x32xf32> to vector<8x8xf32>
    %cst_69 = arith.constant dense<0.000000e+00> : vector<8x8xf32>
    %173 = tpu.matmul %171, %172, %cst_69 {dimension_numbers = #tpu.dot_dimension_numbers<[1], [1], [0], [0], [0, 0, 1, 0], [], []>} : vector<8x8xf32>, vector<8x8xf32>, vector<8x8xf32> -> vector<8x8xf32>
    %174 = vector.extract_strided_slice %161 {offsets = [0, 16], sizes = [8, 8], strides = [1, 1]} : vector<8x32xf32> to vector<8x8xf32>
    %175 = vector.extract_strided_slice %164 {offsets = [0, 16], sizes = [8, 8], strides = [1, 1]} : vector<8x32xf32> to vector<8x8xf32>
    %cst_70 = arith.constant dense<0.000000e+00> : vector<8x8xf32>
    %176 = tpu.matmul %174, %175, %cst_70 {dimension_numbers = #tpu.dot_dimension_numbers<[1], [1], [0], [0], [0, 0, 1, 0], [], []>} : vector<8x8xf32>, vector<8x8xf32>, vector<8x8xf32> -> vector<8x8xf32>
    %177 = vector.extract_strided_slice %161 {offsets = [0, 24], sizes = [8, 8], strides = [1, 1]} : vector<8x32xf32> to vector<8x8xf32>
    %178 = vector.extract_strided_slice %164 {offsets = [0, 24], sizes = [8, 8], strides = [1, 1]} : vector<8x32xf32> to vector<8x8xf32>
    %cst_71 = arith.constant dense<0.000000e+00> : vector<8x8xf32>
    %179 = tpu.matmul %177, %178, %cst_71 {dimension_numbers = #tpu.dot_dimension_numbers<[1], [1], [0], [0], [0, 0, 1, 0], [], []>} : vector<8x8xf32>, vector<8x8xf32>, vector<8x8xf32> -> vector<8x8xf32>
    %180 = tpu.concatenate %170, %173, %176, %179 in 0 : vector<8x8xf32>, vector<8x8xf32>, vector<8x8xf32>, vector<8x8xf32> -> vector<32x8xf32>
    %cst_72 = arith.constant 0.353553385 : f32
    %181 = vector.broadcast %cst_72 : f32 to vector<32x8xf32>
    %182 = arith.mulf %180, %181 : vector<32x8xf32>
    %cst_73 = arith.constant dense<0xFF800000> : vector<32xf32>
    %183 = vector.multi_reduction <maximumf>, %182, %cst_73 [1] : vector<32x8xf32> to vector<32xf32>
    %184 = vector.shape_cast %183 : vector<32xf32> to vector<32x1xf32>
    %185 = vector.broadcast %184 : vector<32x1xf32> to vector<32x8xf32>
    %186 = arith.subf %182, %185 : vector<32x8xf32>
    %187 = math.exp %186 : vector<32x8xf32>
    %cst_74 = arith.constant dense<0.000000e+00> : vector<32xf32>
    %188 = vector.multi_reduction <add>, %187, %cst_74 [1] : vector<32x8xf32> to vector<32xf32>
    %189 = vector.shape_cast %188 : vector<32xf32> to vector<32x1xf32>
    %190 = tpu.reciprocal %189 {approx = true} : vector<32x1xf32> -> vector<32x1xf32>
    %191 = vector.broadcast %190 : vector<32x1xf32> to vector<32x8xf32>
    %192 = arith.mulf %187, %191 : vector<32x8xf32>
    %193 = vector.extract_strided_slice %192 {offsets = [0, 0], sizes = [8, 8], strides = [1, 1]} : vector<32x8xf32> to vector<8x8xf32>
    %194 = vector.extract_strided_slice %167 {offsets = [0, 0], sizes = [8, 8], strides = [1, 1]} : vector<8x32xf32> to vector<8x8xf32>
    %cst_75 = arith.constant dense<0.000000e+00> : vector<8x8xf32>
    %195 = tpu.matmul %193, %194, %cst_75 {dimension_numbers = #tpu.dot_dimension_numbers<[1], [0], [0], [1], [0, 0, 1, 1], [], []>} : vector<8x8xf32>, vector<8x8xf32>, vector<8x8xf32> -> vector<8x8xf32>
    %196 = vector.extract_strided_slice %157 {offsets = [0, 0], sizes = [8, 32], strides = [1, 1]} : vector<32x32xf32> to vector<8x32xf32>
    %cst_76 = arith.constant dense<0.000000e+00> : vector<8x32xf32>
    %197 = tpu.matmul %195, %196, %cst_76 {dimension_numbers = #tpu.dot_dimension_numbers<[1], [0], [0], [1], [0, 0, 1, 1], [], []>} : vector<8x8xf32>, vector<8x32xf32>, vector<8x32xf32> -> vector<8x32xf32>
    %198 = vector.extract_strided_slice %192 {offsets = [8, 0], sizes = [8, 8], strides = [1, 1]} : vector<32x8xf32> to vector<8x8xf32>
    %199 = vector.extract_strided_slice %167 {offsets = [0, 8], sizes = [8, 8], strides = [1, 1]} : vector<8x32xf32> to vector<8x8xf32>
    %cst_77 = arith.constant dense<0.000000e+00> : vector<8x8xf32>
    %200 = tpu.matmul %198, %199, %cst_77 {dimension_numbers = #tpu.dot_dimension_numbers<[1], [0], [0], [1], [0, 0, 1, 1], [], []>} : vector<8x8xf32>, vector<8x8xf32>, vector<8x8xf32> -> vector<8x8xf32>
    %201 = vector.extract_strided_slice %157 {offsets = [8, 0], sizes = [8, 32], strides = [1, 1]} : vector<32x32xf32> to vector<8x32xf32>
    %cst_78 = arith.constant dense<0.000000e+00> : vector<8x32xf32>
    %202 = tpu.matmul %200, %201, %cst_78 {dimension_numbers = #tpu.dot_dimension_numbers<[1], [0], [0], [1], [0, 0, 1, 1], [], []>} : vector<8x8xf32>, vector<8x32xf32>, vector<8x32xf32> -> vector<8x32xf32>
    %203 = arith.addf %197, %202 : vector<8x32xf32>
    %204 = vector.extract_strided_slice %192 {offsets = [16, 0], sizes = [8, 8], strides = [1, 1]} : vector<32x8xf32> to vector<8x8xf32>
    %205 = vector.extract_strided_slice %167 {offsets = [0, 16], sizes = [8, 8], strides = [1, 1]} : vector<8x32xf32> to vector<8x8xf32>
    %cst_79 = arith.constant dense<0.000000e+00> : vector<8x8xf32>
    %206 = tpu.matmul %204, %205, %cst_79 {dimension_numbers = #tpu.dot_dimension_numbers<[1], [0], [0], [1], [0, 0, 1, 1], [], []>} : vector<8x8xf32>, vector<8x8xf32>, vector<8x8xf32> -> vector<8x8xf32>
    %207 = vector.extract_strided_slice %157 {offsets = [16, 0], sizes = [8, 32], strides = [1, 1]} : vector<32x32xf32> to vector<8x32xf32>
    %cst_80 = arith.constant dense<0.000000e+00> : vector<8x32xf32>
    %208 = tpu.matmul %206, %207, %cst_80 {dimension_numbers = #tpu.dot_dimension_numbers<[1], [0], [0], [1], [0, 0, 1, 1], [], []>} : vector<8x8xf32>, vector<8x32xf32>, vector<8x32xf32> -> vector<8x32xf32>
    %209 = arith.addf %203, %208 : vector<8x32xf32>
    %210 = vector.extract_strided_slice %192 {offsets = [24, 0], sizes = [8, 8], strides = [1, 1]} : vector<32x8xf32> to vector<8x8xf32>
    %211 = vector.extract_strided_slice %167 {offsets = [0, 24], sizes = [8, 8], strides = [1, 1]} : vector<8x32xf32> to vector<8x8xf32>
    %cst_81 = arith.constant dense<0.000000e+00> : vector<8x8xf32>
    %212 = tpu.matmul %210, %211, %cst_81 {dimension_numbers = #tpu.dot_dimension_numbers<[1], [0], [0], [1], [0, 0, 1, 1], [], []>} : vector<8x8xf32>, vector<8x8xf32>, vector<8x8xf32> -> vector<8x8xf32>
    %213 = vector.extract_strided_slice %157 {offsets = [24, 0], sizes = [8, 32], strides = [1, 1]} : vector<32x32xf32> to vector<8x32xf32>
    %cst_82 = arith.constant dense<0.000000e+00> : vector<8x32xf32>
    %214 = tpu.matmul %212, %213, %cst_82 {dimension_numbers = #tpu.dot_dimension_numbers<[1], [0], [0], [1], [0, 0, 1, 1], [], []>} : vector<8x8xf32>, vector<8x32xf32>, vector<8x32xf32> -> vector<8x32xf32>
    %215 = arith.addf %209, %214 : vector<8x32xf32>
    %216 = vector.broadcast %158 : vector<1x32xf32> to vector<8x32xf32>
    %217 = arith.addf %215, %216 : vector<8x32xf32>
    %218 = arith.addf %146, %217 : vector<8x32xf32>
    %219 = vector.extract_strided_slice %0 {offsets = [19, 0], sizes = [1, 32], strides = [1, 1]} : vector<39x32xf32> to vector<1x32xf32>
    %220 = vector.extract_strided_slice %0 {offsets = [20, 0], sizes = [1, 32], strides = [1, 1]} : vector<39x32xf32> to vector<1x32xf32>
    %cst_83 = arith.constant dense<0.000000e+00> : vector<8xf32>
    %221 = vector.multi_reduction <add>, %218, %cst_83 [1] : vector<8x32xf32> to vector<8xf32>
    %222 = vector.shape_cast %221 : vector<8xf32> to vector<8x1xf32>
    %cst_84 = arith.constant 3.200000e+01 : f32
    %223 = vector.broadcast %cst_84 : f32 to vector<8x1xf32>
    %224 = arith.divf %222, %223 : vector<8x1xf32>
    %225 = vector.broadcast %224 : vector<8x1xf32> to vector<8x32xf32>
    %226 = arith.subf %218, %225 : vector<8x32xf32>
    %227 = arith.mulf %226, %226 : vector<8x32xf32>
    %cst_85 = arith.constant dense<0.000000e+00> : vector<8xf32>
    %228 = vector.multi_reduction <add>, %227, %cst_85 [1] : vector<8x32xf32> to vector<8xf32>
    %229 = vector.shape_cast %228 : vector<8xf32> to vector<8x1xf32>
    %cst_86 = arith.constant 3.200000e+01 : f32
    %230 = vector.broadcast %cst_86 : f32 to vector<8x1xf32>
    %231 = arith.divf %229, %230 : vector<8x1xf32>
    %232 = vector.broadcast %224 : vector<8x1xf32> to vector<8x32xf32>
    %233 = arith.subf %218, %232 : vector<8x32xf32>
    %cst_87 = arith.constant 9.99999974E-6 : f32
    %234 = vector.broadcast %cst_87 : f32 to vector<8x1xf32>
    %235 = arith.addf %231, %234 : vector<8x1xf32>
    %236 = math.rsqrt %235 : vector<8x1xf32>
    %237 = vector.broadcast %236 : vector<8x1xf32> to vector<8x32xf32>
    %238 = arith.mulf %233, %237 : vector<8x32xf32>
    %239 = vector.broadcast %219 : vector<1x32xf32> to vector<8x32xf32>
    %240 = arith.mulf %238, %239 : vector<8x32xf32>
    %241 = vector.broadcast %220 : vector<1x32xf32> to vector<8x32xf32>
    %242 = arith.addf %240, %241 : vector<8x32xf32>
    %c1_88 = arith.constant 1 : index
    %c0_89 = arith.constant 0 : index
    %c0_90 = arith.constant 0 : index
    %243 = vector.load %arg6[%c1_88, %c0_89, %c0_90] : memref<3x32x64xf32, #tpu.memory_space<vmem>>, vector<1x32x64xf32>
    %244 = vector.shape_cast %243 : vector<1x32x64xf32> to vector<32x64xf32>
    %245 = vector.extract_strided_slice %1 {offsets = [1, 0], sizes = [1, 64], strides = [1, 1]} : vector<3x64xf32> to vector<1x64xf32>
    %c1_91 = arith.constant 1 : index
    %c0_92 = arith.constant 0 : index
    %c0_93 = arith.constant 0 : index
    %246 = vector.load %arg7[%c1_91, %c0_92, %c0_93] : memref<3x64x32xf32, #tpu.memory_space<vmem>>, vector<1x64x32xf32>
    %247 = vector.shape_cast %246 : vector<1x64x32xf32> to vector<64x32xf32>
    %248 = vector.extract_strided_slice %0 {offsets = [21, 0], sizes = [1, 32], strides = [1, 1]} : vector<39x32xf32> to vector<1x32xf32>
    %cst_94 = arith.constant dense<0.000000e+00> : vector<8x64xf32>
    %249 = tpu.matmul %242, %244, %cst_94 {dimension_numbers = #tpu.dot_dimension_numbers<[1], [0], [0], [1], [0, 0, 1, 1], [], []>} : vector<8x32xf32>, vector<32x64xf32>, vector<8x64xf32> -> vector<8x64xf32>
    %250 = vector.broadcast %245 : vector<1x64xf32> to vector<8x64xf32>
    %251 = arith.addf %249, %250 : vector<8x64xf32>
    %cst_95 = arith.constant 0.000000e+00 : f32
    %252 = vector.broadcast %cst_95 : f32 to vector<8x64xf32>
    %253 = arith.maximumf %251, %252 : vector<8x64xf32>
    %cst_96 = arith.constant dense<0.000000e+00> : vector<8x32xf32>
    %254 = tpu.matmul %253, %247, %cst_96 {dimension_numbers = #tpu.dot_dimension_numbers<[1], [0], [0], [1], [0, 0, 1, 1], [], []>} : vector<8x64xf32>, vector<64x32xf32>, vector<8x32xf32> -> vector<8x32xf32>
    %255 = vector.broadcast %248 : vector<1x32xf32> to vector<8x32xf32>
    %256 = arith.addf %254, %255 : vector<8x32xf32>
    %257 = arith.addf %242, %256 : vector<8x32xf32>
    %258 = vector.extract_strided_slice %0 {offsets = [22, 0], sizes = [1, 32], strides = [1, 1]} : vector<39x32xf32> to vector<1x32xf32>
    %259 = vector.extract_strided_slice %0 {offsets = [23, 0], sizes = [1, 32], strides = [1, 1]} : vector<39x32xf32> to vector<1x32xf32>
    %cst_97 = arith.constant dense<0.000000e+00> : vector<8xf32>
    %260 = vector.multi_reduction <add>, %257, %cst_97 [1] : vector<8x32xf32> to vector<8xf32>
    %261 = vector.shape_cast %260 : vector<8xf32> to vector<8x1xf32>
    %cst_98 = arith.constant 3.200000e+01 : f32
    %262 = vector.broadcast %cst_98 : f32 to vector<8x1xf32>
    %263 = arith.divf %261, %262 : vector<8x1xf32>
    %264 = vector.broadcast %263 : vector<8x1xf32> to vector<8x32xf32>
    %265 = arith.subf %257, %264 : vector<8x32xf32>
    %266 = arith.mulf %265, %265 : vector<8x32xf32>
    %cst_99 = arith.constant dense<0.000000e+00> : vector<8xf32>
    %267 = vector.multi_reduction <add>, %266, %cst_99 [1] : vector<8x32xf32> to vector<8xf32>
    %268 = vector.shape_cast %267 : vector<8xf32> to vector<8x1xf32>
    %cst_100 = arith.constant 3.200000e+01 : f32
    %269 = vector.broadcast %cst_100 : f32 to vector<8x1xf32>
    %270 = arith.divf %268, %269 : vector<8x1xf32>
    %271 = vector.broadcast %263 : vector<8x1xf32> to vector<8x32xf32>
    %272 = arith.subf %257, %271 : vector<8x32xf32>
    %cst_101 = arith.constant 9.99999974E-6 : f32
    %273 = vector.broadcast %cst_101 : f32 to vector<8x1xf32>
    %274 = arith.addf %270, %273 : vector<8x1xf32>
    %275 = math.rsqrt %274 : vector<8x1xf32>
    %276 = vector.broadcast %275 : vector<8x1xf32> to vector<8x32xf32>
    %277 = arith.mulf %272, %276 : vector<8x32xf32>
    %278 = vector.broadcast %258 : vector<1x32xf32> to vector<8x32xf32>
    %279 = arith.mulf %277, %278 : vector<8x32xf32>
    %280 = vector.broadcast %259 : vector<1x32xf32> to vector<8x32xf32>
    %281 = arith.addf %279, %280 : vector<8x32xf32>
    %282 = vector.extract_strided_slice %0 {offsets = [2, 0], sizes = [1, 32], strides = [1, 1]} : vector<39x32xf32> to vector<1x32xf32>
    %283 = vector.extract_strided_slice %0 {offsets = [3, 0], sizes = [1, 32], strides = [1, 1]} : vector<39x32xf32> to vector<1x32xf32>
    %cst_102 = arith.constant dense<0.000000e+00> : vector<8xf32>
    %284 = vector.multi_reduction <add>, %281, %cst_102 [1] : vector<8x32xf32> to vector<8xf32>
    %285 = vector.shape_cast %284 : vector<8xf32> to vector<8x1xf32>
    %cst_103 = arith.constant 3.200000e+01 : f32
    %286 = vector.broadcast %cst_103 : f32 to vector<8x1xf32>
    %287 = arith.divf %285, %286 : vector<8x1xf32>
    %288 = vector.broadcast %287 : vector<8x1xf32> to vector<8x32xf32>
    %289 = arith.subf %281, %288 : vector<8x32xf32>
    %290 = arith.mulf %289, %289 : vector<8x32xf32>
    %cst_104 = arith.constant dense<0.000000e+00> : vector<8xf32>
    %291 = vector.multi_reduction <add>, %290, %cst_104 [1] : vector<8x32xf32> to vector<8xf32>
    %292 = vector.shape_cast %291 : vector<8xf32> to vector<8x1xf32>
    %cst_105 = arith.constant 3.200000e+01 : f32
    %293 = vector.broadcast %cst_105 : f32 to vector<8x1xf32>
    %294 = arith.divf %292, %293 : vector<8x1xf32>
    %295 = vector.broadcast %287 : vector<8x1xf32> to vector<8x32xf32>
    %296 = arith.subf %281, %295 : vector<8x32xf32>
    %cst_106 = arith.constant 9.99999974E-6 : f32
    %297 = vector.broadcast %cst_106 : f32 to vector<8x1xf32>
    %298 = arith.addf %294, %297 : vector<8x1xf32>
    %299 = math.rsqrt %298 : vector<8x1xf32>
    %300 = vector.broadcast %299 : vector<8x1xf32> to vector<8x32xf32>
    %301 = arith.mulf %296, %300 : vector<8x32xf32>
    %302 = vector.broadcast %282 : vector<1x32xf32> to vector<8x32xf32>
    %303 = arith.mulf %301, %302 : vector<8x32xf32>
    %304 = vector.broadcast %283 : vector<1x32xf32> to vector<8x32xf32>
    %305 = arith.addf %303, %304 : vector<8x32xf32>
    %306 = vector.extract_strided_slice %3 {offsets = [4, 0], sizes = [4, 4], strides = [1, 1]} : vector<8x4xf32> to vector<4x4xf32>
    %cst_107 = arith.constant 0.000000e+00 : f32
    %307 = vector.broadcast %cst_107 : f32 to vector<4x4xf32>
    %308 = tpu.concatenate %306, %307 in 0 : vector<4x4xf32>, vector<4x4xf32> -> vector<8x4xf32>
    %c0_108 = arith.constant 0 : index
    %c0_109 = arith.constant 0 : index
    %309 = vector.load %arg3[%c0_108, %c0_109] : memref<4x32xf32, #tpu.memory_space<vmem>>, vector<4x32xf32>
    %cst_110 = arith.constant dense<0.000000e+00> : vector<8x32xf32>
    %310 = tpu.matmul %308, %309, %cst_110 {dimension_numbers = #tpu.dot_dimension_numbers<[1], [0], [0], [1], [0, 0, 1, 1], [], []>} : vector<8x4xf32>, vector<4x32xf32>, vector<8x32xf32> -> vector<8x32xf32>
    %311 = vector.extract_strided_slice %0 {offsets = [1, 0], sizes = [1, 32], strides = [1, 1]} : vector<39x32xf32> to vector<1x32xf32>
    %312 = vector.broadcast %311 : vector<1x32xf32> to vector<8x32xf32>
    %313 = arith.addf %310, %312 : vector<8x32xf32>
    %c1_111 = arith.constant 1 : index
    %c0_112 = arith.constant 0 : index
    %c0_113 = arith.constant 0 : index
    %314 = vector.load %arg4[%c1_111, %c0_112, %c0_113] : memref<2x8x32xf32, #tpu.memory_space<vmem>>, vector<1x8x32xf32>
    %315 = vector.shape_cast %314 : vector<1x8x32xf32> to vector<8x32xf32>
    %316 = arith.addf %313, %315 : vector<8x32xf32>
    %c8 = arith.constant 8 : index
    %c0_114 = arith.constant 0 : index
    %c0_115 = arith.constant 0 : index
    %317 = vector.load %arg5[%c8, %c0_114, %c0_115] : memref<16x32x32xf32, #tpu.memory_space<vmem>>, vector<1x32x32xf32>
    %318 = vector.shape_cast %317 : vector<1x32x32xf32> to vector<32x32xf32>
    %319 = vector.extract_strided_slice %0 {offsets = [24, 0], sizes = [1, 32], strides = [1, 1]} : vector<39x32xf32> to vector<1x32xf32>
    %c9 = arith.constant 9 : index
    %c0_116 = arith.constant 0 : index
    %c0_117 = arith.constant 0 : index
    %320 = vector.load %arg5[%c9, %c0_116, %c0_117] : memref<16x32x32xf32, #tpu.memory_space<vmem>>, vector<1x32x32xf32>
    %321 = vector.shape_cast %320 : vector<1x32x32xf32> to vector<32x32xf32>
    %322 = vector.extract_strided_slice %0 {offsets = [25, 0], sizes = [1, 32], strides = [1, 1]} : vector<39x32xf32> to vector<1x32xf32>
    %c10 = arith.constant 10 : index
    %c0_118 = arith.constant 0 : index
    %c0_119 = arith.constant 0 : index
    %323 = vector.load %arg5[%c10, %c0_118, %c0_119] : memref<16x32x32xf32, #tpu.memory_space<vmem>>, vector<1x32x32xf32>
    %324 = vector.shape_cast %323 : vector<1x32x32xf32> to vector<32x32xf32>
    %325 = vector.extract_strided_slice %0 {offsets = [26, 0], sizes = [1, 32], strides = [1, 1]} : vector<39x32xf32> to vector<1x32xf32>
    %c11 = arith.constant 11 : index
    %c0_120 = arith.constant 0 : index
    %c0_121 = arith.constant 0 : index
    %326 = vector.load %arg5[%c11, %c0_120, %c0_121] : memref<16x32x32xf32, #tpu.memory_space<vmem>>, vector<1x32x32xf32>
    %327 = vector.shape_cast %326 : vector<1x32x32xf32> to vector<32x32xf32>
    %328 = vector.extract_strided_slice %0 {offsets = [27, 0], sizes = [1, 32], strides = [1, 1]} : vector<39x32xf32> to vector<1x32xf32>
    %cst_122 = arith.constant dense<0.000000e+00> : vector<8x32xf32>
    %329 = tpu.matmul %316, %318, %cst_122 {dimension_numbers = #tpu.dot_dimension_numbers<[1], [0], [0], [1], [0, 0, 1, 1], [], []>} : vector<8x32xf32>, vector<32x32xf32>, vector<8x32xf32> -> vector<8x32xf32>
    %330 = vector.broadcast %319 : vector<1x32xf32> to vector<8x32xf32>
    %331 = arith.addf %329, %330 : vector<8x32xf32>
    %cst_123 = arith.constant dense<0.000000e+00> : vector<8x32xf32>
    %332 = tpu.matmul %316, %321, %cst_123 {dimension_numbers = #tpu.dot_dimension_numbers<[1], [0], [0], [1], [0, 0, 1, 1], [], []>} : vector<8x32xf32>, vector<32x32xf32>, vector<8x32xf32> -> vector<8x32xf32>
    %333 = vector.broadcast %322 : vector<1x32xf32> to vector<8x32xf32>
    %334 = arith.addf %332, %333 : vector<8x32xf32>
    %cst_124 = arith.constant dense<0.000000e+00> : vector<8x32xf32>
    %335 = tpu.matmul %316, %324, %cst_124 {dimension_numbers = #tpu.dot_dimension_numbers<[1], [0], [0], [1], [0, 0, 1, 1], [], []>} : vector<8x32xf32>, vector<32x32xf32>, vector<8x32xf32> -> vector<8x32xf32>
    %336 = vector.broadcast %325 : vector<1x32xf32> to vector<8x32xf32>
    %337 = arith.addf %335, %336 : vector<8x32xf32>
    %338 = vector.extract_strided_slice %331 {offsets = [0, 0], sizes = [8, 8], strides = [1, 1]} : vector<8x32xf32> to vector<8x8xf32>
    %339 = vector.extract_strided_slice %334 {offsets = [0, 0], sizes = [8, 8], strides = [1, 1]} : vector<8x32xf32> to vector<8x8xf32>
    %cst_125 = arith.constant dense<0.000000e+00> : vector<8x8xf32>
    %340 = tpu.matmul %338, %339, %cst_125 {dimension_numbers = #tpu.dot_dimension_numbers<[1], [1], [0], [0], [0, 0, 1, 0], [], []>} : vector<8x8xf32>, vector<8x8xf32>, vector<8x8xf32> -> vector<8x8xf32>
    %341 = vector.extract_strided_slice %331 {offsets = [0, 8], sizes = [8, 8], strides = [1, 1]} : vector<8x32xf32> to vector<8x8xf32>
    %342 = vector.extract_strided_slice %334 {offsets = [0, 8], sizes = [8, 8], strides = [1, 1]} : vector<8x32xf32> to vector<8x8xf32>
    %cst_126 = arith.constant dense<0.000000e+00> : vector<8x8xf32>
    %343 = tpu.matmul %341, %342, %cst_126 {dimension_numbers = #tpu.dot_dimension_numbers<[1], [1], [0], [0], [0, 0, 1, 0], [], []>} : vector<8x8xf32>, vector<8x8xf32>, vector<8x8xf32> -> vector<8x8xf32>
    %344 = vector.extract_strided_slice %331 {offsets = [0, 16], sizes = [8, 8], strides = [1, 1]} : vector<8x32xf32> to vector<8x8xf32>
    %345 = vector.extract_strided_slice %334 {offsets = [0, 16], sizes = [8, 8], strides = [1, 1]} : vector<8x32xf32> to vector<8x8xf32>
    %cst_127 = arith.constant dense<0.000000e+00> : vector<8x8xf32>
    %346 = tpu.matmul %344, %345, %cst_127 {dimension_numbers = #tpu.dot_dimension_numbers<[1], [1], [0], [0], [0, 0, 1, 0], [], []>} : vector<8x8xf32>, vector<8x8xf32>, vector<8x8xf32> -> vector<8x8xf32>
    %347 = vector.extract_strided_slice %331 {offsets = [0, 24], sizes = [8, 8], strides = [1, 1]} : vector<8x32xf32> to vector<8x8xf32>
    %348 = vector.extract_strided_slice %334 {offsets = [0, 24], sizes = [8, 8], strides = [1, 1]} : vector<8x32xf32> to vector<8x8xf32>
    %cst_128 = arith.constant dense<0.000000e+00> : vector<8x8xf32>
    %349 = tpu.matmul %347, %348, %cst_128 {dimension_numbers = #tpu.dot_dimension_numbers<[1], [1], [0], [0], [0, 0, 1, 0], [], []>} : vector<8x8xf32>, vector<8x8xf32>, vector<8x8xf32> -> vector<8x8xf32>
    %350 = tpu.concatenate %340, %343, %346, %349 in 0 : vector<8x8xf32>, vector<8x8xf32>, vector<8x8xf32>, vector<8x8xf32> -> vector<32x8xf32>
    %cst_129 = arith.constant 0.353553385 : f32
    %351 = vector.broadcast %cst_129 : f32 to vector<32x8xf32>
    %352 = arith.mulf %350, %351 : vector<32x8xf32>
    %353 = tpu.iota {dimensions = array<i32: 0>} : vector<32x8xi32>
    %c8_i32 = arith.constant 8 : i32
    %c0_i32 = arith.constant 0 : i32
    %354 = arith.cmpi eq, %c8_i32, %c0_i32 : i32
    %c1_i32 = arith.constant 1 : i32
    %355 = arith.select %354, %c1_i32, %c8_i32 : i32
    %356 = vector.broadcast %355 : i32 to vector<32x8xi32>
    %357 = arith.remsi %353, %356 : vector<32x8xi32>
    %c0_i32_130 = arith.constant 0 : i32
    %358 = vector.broadcast %c0_i32_130 : i32 to vector<32x8xi32>
    %359 = arith.cmpi ne, %357, %358 : vector<32x8xi32>
    %c0_i32_131 = arith.constant 0 : i32
    %360 = vector.broadcast %c0_i32_131 : i32 to vector<32x8xi32>
    %361 = arith.cmpi slt, %357, %360 : vector<32x8xi32>
    %c0_i32_132 = arith.constant 0 : i32
    %362 = arith.cmpi slt, %355, %c0_i32_132 : i32
    %363 = vector.broadcast %362 : i1 to vector<32x8xi1>
    %364 = vector.broadcast %363 : vector<32x8xi1> to vector<32x8xi1>
    %365 = arith.xori %361, %364 : vector<32x8xi1>
    %366 = arith.andi %365, %359 : vector<32x8xi1>
    %367 = vector.broadcast %355 : i32 to vector<32x8xi32>
    %368 = arith.addi %357, %367 : vector<32x8xi32>
    %369 = arith.select %366, %368, %357 : vector<32x8xi1>, vector<32x8xi32>
    %370 = tpu.iota {dimensions = array<i32: 1>} : vector<32x8xi32>
    %371 = arith.cmpi sgt, %370, %369 : vector<32x8xi32>
    %cst_133 = arith.constant -1.000000e+30 : f32
    %372 = vector.broadcast %cst_133 : f32 to vector<32x8xf32>
    %373 = arith.select %371, %372, %352 : vector<32x8xi1>, vector<32x8xf32>
    %cst_134 = arith.constant dense<0xFF800000> : vector<32xf32>
    %374 = vector.multi_reduction <maximumf>, %373, %cst_134 [1] : vector<32x8xf32> to vector<32xf32>
    %375 = vector.shape_cast %374 : vector<32xf32> to vector<32x1xf32>
    %376 = vector.broadcast %375 : vector<32x1xf32> to vector<32x8xf32>
    %377 = arith.subf %373, %376 : vector<32x8xf32>
    %378 = math.exp %377 : vector<32x8xf32>
    %cst_135 = arith.constant dense<0.000000e+00> : vector<32xf32>
    %379 = vector.multi_reduction <add>, %378, %cst_135 [1] : vector<32x8xf32> to vector<32xf32>
    %380 = vector.shape_cast %379 : vector<32xf32> to vector<32x1xf32>
    %381 = tpu.reciprocal %380 {approx = true} : vector<32x1xf32> -> vector<32x1xf32>
    %382 = vector.broadcast %381 : vector<32x1xf32> to vector<32x8xf32>
    %383 = arith.mulf %378, %382 : vector<32x8xf32>
    %384 = vector.extract_strided_slice %383 {offsets = [0, 0], sizes = [8, 8], strides = [1, 1]} : vector<32x8xf32> to vector<8x8xf32>
    %385 = vector.extract_strided_slice %337 {offsets = [0, 0], sizes = [8, 8], strides = [1, 1]} : vector<8x32xf32> to vector<8x8xf32>
    %cst_136 = arith.constant dense<0.000000e+00> : vector<8x8xf32>
    %386 = tpu.matmul %384, %385, %cst_136 {dimension_numbers = #tpu.dot_dimension_numbers<[1], [0], [0], [1], [0, 0, 1, 1], [], []>} : vector<8x8xf32>, vector<8x8xf32>, vector<8x8xf32> -> vector<8x8xf32>
    %387 = vector.extract_strided_slice %327 {offsets = [0, 0], sizes = [8, 32], strides = [1, 1]} : vector<32x32xf32> to vector<8x32xf32>
    %cst_137 = arith.constant dense<0.000000e+00> : vector<8x32xf32>
    %388 = tpu.matmul %386, %387, %cst_137 {dimension_numbers = #tpu.dot_dimension_numbers<[1], [0], [0], [1], [0, 0, 1, 1], [], []>} : vector<8x8xf32>, vector<8x32xf32>, vector<8x32xf32> -> vector<8x32xf32>
    %389 = vector.extract_strided_slice %383 {offsets = [8, 0], sizes = [8, 8], strides = [1, 1]} : vector<32x8xf32> to vector<8x8xf32>
    %390 = vector.extract_strided_slice %337 {offsets = [0, 8], sizes = [8, 8], strides = [1, 1]} : vector<8x32xf32> to vector<8x8xf32>
    %cst_138 = arith.constant dense<0.000000e+00> : vector<8x8xf32>
    %391 = tpu.matmul %389, %390, %cst_138 {dimension_numbers = #tpu.dot_dimension_numbers<[1], [0], [0], [1], [0, 0, 1, 1], [], []>} : vector<8x8xf32>, vector<8x8xf32>, vector<8x8xf32> -> vector<8x8xf32>
    %392 = vector.extract_strided_slice %327 {offsets = [8, 0], sizes = [8, 32], strides = [1, 1]} : vector<32x32xf32> to vector<8x32xf32>
    %cst_139 = arith.constant dense<0.000000e+00> : vector<8x32xf32>
    %393 = tpu.matmul %391, %392, %cst_139 {dimension_numbers = #tpu.dot_dimension_numbers<[1], [0], [0], [1], [0, 0, 1, 1], [], []>} : vector<8x8xf32>, vector<8x32xf32>, vector<8x32xf32> -> vector<8x32xf32>
    %394 = arith.addf %388, %393 : vector<8x32xf32>
    %395 = vector.extract_strided_slice %383 {offsets = [16, 0], sizes = [8, 8], strides = [1, 1]} : vector<32x8xf32> to vector<8x8xf32>
    %396 = vector.extract_strided_slice %337 {offsets = [0, 16], sizes = [8, 8], strides = [1, 1]} : vector<8x32xf32> to vector<8x8xf32>
    %cst_140 = arith.constant dense<0.000000e+00> : vector<8x8xf32>
    %397 = tpu.matmul %395, %396, %cst_140 {dimension_numbers = #tpu.dot_dimension_numbers<[1], [0], [0], [1], [0, 0, 1, 1], [], []>} : vector<8x8xf32>, vector<8x8xf32>, vector<8x8xf32> -> vector<8x8xf32>
    %398 = vector.extract_strided_slice %327 {offsets = [16, 0], sizes = [8, 32], strides = [1, 1]} : vector<32x32xf32> to vector<8x32xf32>
    %cst_141 = arith.constant dense<0.000000e+00> : vector<8x32xf32>
    %399 = tpu.matmul %397, %398, %cst_141 {dimension_numbers = #tpu.dot_dimension_numbers<[1], [0], [0], [1], [0, 0, 1, 1], [], []>} : vector<8x8xf32>, vector<8x32xf32>, vector<8x32xf32> -> vector<8x32xf32>
    %400 = arith.addf %394, %399 : vector<8x32xf32>
    %401 = vector.extract_strided_slice %383 {offsets = [24, 0], sizes = [8, 8], strides = [1, 1]} : vector<32x8xf32> to vector<8x8xf32>
    %402 = vector.extract_strided_slice %337 {offsets = [0, 24], sizes = [8, 8], strides = [1, 1]} : vector<8x32xf32> to vector<8x8xf32>
    %cst_142 = arith.constant dense<0.000000e+00> : vector<8x8xf32>
    %403 = tpu.matmul %401, %402, %cst_142 {dimension_numbers = #tpu.dot_dimension_numbers<[1], [0], [0], [1], [0, 0, 1, 1], [], []>} : vector<8x8xf32>, vector<8x8xf32>, vector<8x8xf32> -> vector<8x8xf32>
    %404 = vector.extract_strided_slice %327 {offsets = [24, 0], sizes = [8, 32], strides = [1, 1]} : vector<32x32xf32> to vector<8x32xf32>
    %cst_143 = arith.constant dense<0.000000e+00> : vector<8x32xf32>
    %405 = tpu.matmul %403, %404, %cst_143 {dimension_numbers = #tpu.dot_dimension_numbers<[1], [0], [0], [1], [0, 0, 1, 1], [], []>} : vector<8x8xf32>, vector<8x32xf32>, vector<8x32xf32> -> vector<8x32xf32>
    %406 = arith.addf %400, %405 : vector<8x32xf32>
    %407 = vector.broadcast %328 : vector<1x32xf32> to vector<8x32xf32>
    %408 = arith.addf %406, %407 : vector<8x32xf32>
    %409 = arith.addf %316, %408 : vector<8x32xf32>
    %410 = vector.extract_strided_slice %0 {offsets = [28, 0], sizes = [1, 32], strides = [1, 1]} : vector<39x32xf32> to vector<1x32xf32>
    %411 = vector.extract_strided_slice %0 {offsets = [29, 0], sizes = [1, 32], strides = [1, 1]} : vector<39x32xf32> to vector<1x32xf32>
    %cst_144 = arith.constant dense<0.000000e+00> : vector<8xf32>
    %412 = vector.multi_reduction <add>, %409, %cst_144 [1] : vector<8x32xf32> to vector<8xf32>
    %413 = vector.shape_cast %412 : vector<8xf32> to vector<8x1xf32>
    %cst_145 = arith.constant 3.200000e+01 : f32
    %414 = vector.broadcast %cst_145 : f32 to vector<8x1xf32>
    %415 = arith.divf %413, %414 : vector<8x1xf32>
    %416 = vector.broadcast %415 : vector<8x1xf32> to vector<8x32xf32>
    %417 = arith.subf %409, %416 : vector<8x32xf32>
    %418 = arith.mulf %417, %417 : vector<8x32xf32>
    %cst_146 = arith.constant dense<0.000000e+00> : vector<8xf32>
    %419 = vector.multi_reduction <add>, %418, %cst_146 [1] : vector<8x32xf32> to vector<8xf32>
    %420 = vector.shape_cast %419 : vector<8xf32> to vector<8x1xf32>
    %cst_147 = arith.constant 3.200000e+01 : f32
    %421 = vector.broadcast %cst_147 : f32 to vector<8x1xf32>
    %422 = arith.divf %420, %421 : vector<8x1xf32>
    %423 = vector.broadcast %415 : vector<8x1xf32> to vector<8x32xf32>
    %424 = arith.subf %409, %423 : vector<8x32xf32>
    %cst_148 = arith.constant 9.99999974E-6 : f32
    %425 = vector.broadcast %cst_148 : f32 to vector<8x1xf32>
    %426 = arith.addf %422, %425 : vector<8x1xf32>
    %427 = math.rsqrt %426 : vector<8x1xf32>
    %428 = vector.broadcast %427 : vector<8x1xf32> to vector<8x32xf32>
    %429 = arith.mulf %424, %428 : vector<8x32xf32>
    %430 = vector.broadcast %410 : vector<1x32xf32> to vector<8x32xf32>
    %431 = arith.mulf %429, %430 : vector<8x32xf32>
    %432 = vector.broadcast %411 : vector<1x32xf32> to vector<8x32xf32>
    %433 = arith.addf %431, %432 : vector<8x32xf32>
    %c12 = arith.constant 12 : index
    %c0_149 = arith.constant 0 : index
    %c0_150 = arith.constant 0 : index
    %434 = vector.load %arg5[%c12, %c0_149, %c0_150] : memref<16x32x32xf32, #tpu.memory_space<vmem>>, vector<1x32x32xf32>
    %435 = vector.shape_cast %434 : vector<1x32x32xf32> to vector<32x32xf32>
    %436 = vector.extract_strided_slice %0 {offsets = [30, 0], sizes = [1, 32], strides = [1, 1]} : vector<39x32xf32> to vector<1x32xf32>
    %c13 = arith.constant 13 : index
    %c0_151 = arith.constant 0 : index
    %c0_152 = arith.constant 0 : index
    %437 = vector.load %arg5[%c13, %c0_151, %c0_152] : memref<16x32x32xf32, #tpu.memory_space<vmem>>, vector<1x32x32xf32>
    %438 = vector.shape_cast %437 : vector<1x32x32xf32> to vector<32x32xf32>
    %439 = vector.extract_strided_slice %0 {offsets = [31, 0], sizes = [1, 32], strides = [1, 1]} : vector<39x32xf32> to vector<1x32xf32>
    %c14 = arith.constant 14 : index
    %c0_153 = arith.constant 0 : index
    %c0_154 = arith.constant 0 : index
    %440 = vector.load %arg5[%c14, %c0_153, %c0_154] : memref<16x32x32xf32, #tpu.memory_space<vmem>>, vector<1x32x32xf32>
    %441 = vector.shape_cast %440 : vector<1x32x32xf32> to vector<32x32xf32>
    %442 = vector.extract_strided_slice %0 {offsets = [32, 0], sizes = [1, 32], strides = [1, 1]} : vector<39x32xf32> to vector<1x32xf32>
    %c15 = arith.constant 15 : index
    %c0_155 = arith.constant 0 : index
    %c0_156 = arith.constant 0 : index
    %443 = vector.load %arg5[%c15, %c0_155, %c0_156] : memref<16x32x32xf32, #tpu.memory_space<vmem>>, vector<1x32x32xf32>
    %444 = vector.shape_cast %443 : vector<1x32x32xf32> to vector<32x32xf32>
    %445 = vector.extract_strided_slice %0 {offsets = [33, 0], sizes = [1, 32], strides = [1, 1]} : vector<39x32xf32> to vector<1x32xf32>
    %cst_157 = arith.constant dense<0.000000e+00> : vector<8x32xf32>
    %446 = tpu.matmul %433, %435, %cst_157 {dimension_numbers = #tpu.dot_dimension_numbers<[1], [0], [0], [1], [0, 0, 1, 1], [], []>} : vector<8x32xf32>, vector<32x32xf32>, vector<8x32xf32> -> vector<8x32xf32>
    %447 = vector.broadcast %436 : vector<1x32xf32> to vector<8x32xf32>
    %448 = arith.addf %446, %447 : vector<8x32xf32>
    %cst_158 = arith.constant dense<0.000000e+00> : vector<8x32xf32>
    %449 = tpu.matmul %305, %438, %cst_158 {dimension_numbers = #tpu.dot_dimension_numbers<[1], [0], [0], [1], [0, 0, 1, 1], [], []>} : vector<8x32xf32>, vector<32x32xf32>, vector<8x32xf32> -> vector<8x32xf32>
    %450 = vector.broadcast %439 : vector<1x32xf32> to vector<8x32xf32>
    %451 = arith.addf %449, %450 : vector<8x32xf32>
    %cst_159 = arith.constant dense<0.000000e+00> : vector<8x32xf32>
    %452 = tpu.matmul %305, %441, %cst_159 {dimension_numbers = #tpu.dot_dimension_numbers<[1], [0], [0], [1], [0, 0, 1, 1], [], []>} : vector<8x32xf32>, vector<32x32xf32>, vector<8x32xf32> -> vector<8x32xf32>
    %453 = vector.broadcast %442 : vector<1x32xf32> to vector<8x32xf32>
    %454 = arith.addf %452, %453 : vector<8x32xf32>
    %455 = vector.extract_strided_slice %448 {offsets = [0, 0], sizes = [8, 8], strides = [1, 1]} : vector<8x32xf32> to vector<8x8xf32>
    %456 = vector.extract_strided_slice %451 {offsets = [0, 0], sizes = [8, 8], strides = [1, 1]} : vector<8x32xf32> to vector<8x8xf32>
    %cst_160 = arith.constant dense<0.000000e+00> : vector<8x8xf32>
    %457 = tpu.matmul %455, %456, %cst_160 {dimension_numbers = #tpu.dot_dimension_numbers<[1], [1], [0], [0], [0, 0, 1, 0], [], []>} : vector<8x8xf32>, vector<8x8xf32>, vector<8x8xf32> -> vector<8x8xf32>
    %458 = vector.extract_strided_slice %448 {offsets = [0, 8], sizes = [8, 8], strides = [1, 1]} : vector<8x32xf32> to vector<8x8xf32>
    %459 = vector.extract_strided_slice %451 {offsets = [0, 8], sizes = [8, 8], strides = [1, 1]} : vector<8x32xf32> to vector<8x8xf32>
    %cst_161 = arith.constant dense<0.000000e+00> : vector<8x8xf32>
    %460 = tpu.matmul %458, %459, %cst_161 {dimension_numbers = #tpu.dot_dimension_numbers<[1], [1], [0], [0], [0, 0, 1, 0], [], []>} : vector<8x8xf32>, vector<8x8xf32>, vector<8x8xf32> -> vector<8x8xf32>
    %461 = vector.extract_strided_slice %448 {offsets = [0, 16], sizes = [8, 8], strides = [1, 1]} : vector<8x32xf32> to vector<8x8xf32>
    %462 = vector.extract_strided_slice %451 {offsets = [0, 16], sizes = [8, 8], strides = [1, 1]} : vector<8x32xf32> to vector<8x8xf32>
    %cst_162 = arith.constant dense<0.000000e+00> : vector<8x8xf32>
    %463 = tpu.matmul %461, %462, %cst_162 {dimension_numbers = #tpu.dot_dimension_numbers<[1], [1], [0], [0], [0, 0, 1, 0], [], []>} : vector<8x8xf32>, vector<8x8xf32>, vector<8x8xf32> -> vector<8x8xf32>
    %464 = vector.extract_strided_slice %448 {offsets = [0, 24], sizes = [8, 8], strides = [1, 1]} : vector<8x32xf32> to vector<8x8xf32>
    %465 = vector.extract_strided_slice %451 {offsets = [0, 24], sizes = [8, 8], strides = [1, 1]} : vector<8x32xf32> to vector<8x8xf32>
    %cst_163 = arith.constant dense<0.000000e+00> : vector<8x8xf32>
    %466 = tpu.matmul %464, %465, %cst_163 {dimension_numbers = #tpu.dot_dimension_numbers<[1], [1], [0], [0], [0, 0, 1, 0], [], []>} : vector<8x8xf32>, vector<8x8xf32>, vector<8x8xf32> -> vector<8x8xf32>
    %467 = tpu.concatenate %457, %460, %463, %466 in 0 : vector<8x8xf32>, vector<8x8xf32>, vector<8x8xf32>, vector<8x8xf32> -> vector<32x8xf32>
    %cst_164 = arith.constant 0.353553385 : f32
    %468 = vector.broadcast %cst_164 : f32 to vector<32x8xf32>
    %469 = arith.mulf %467, %468 : vector<32x8xf32>
    %cst_165 = arith.constant dense<0xFF800000> : vector<32xf32>
    %470 = vector.multi_reduction <maximumf>, %469, %cst_165 [1] : vector<32x8xf32> to vector<32xf32>
    %471 = vector.shape_cast %470 : vector<32xf32> to vector<32x1xf32>
    %472 = vector.broadcast %471 : vector<32x1xf32> to vector<32x8xf32>
    %473 = arith.subf %469, %472 : vector<32x8xf32>
    %474 = math.exp %473 : vector<32x8xf32>
    %cst_166 = arith.constant dense<0.000000e+00> : vector<32xf32>
    %475 = vector.multi_reduction <add>, %474, %cst_166 [1] : vector<32x8xf32> to vector<32xf32>
    %476 = vector.shape_cast %475 : vector<32xf32> to vector<32x1xf32>
    %477 = tpu.reciprocal %476 {approx = true} : vector<32x1xf32> -> vector<32x1xf32>
    %478 = vector.broadcast %477 : vector<32x1xf32> to vector<32x8xf32>
    %479 = arith.mulf %474, %478 : vector<32x8xf32>
    %480 = vector.extract_strided_slice %479 {offsets = [0, 0], sizes = [8, 8], strides = [1, 1]} : vector<32x8xf32> to vector<8x8xf32>
    %481 = vector.extract_strided_slice %454 {offsets = [0, 0], sizes = [8, 8], strides = [1, 1]} : vector<8x32xf32> to vector<8x8xf32>
    %cst_167 = arith.constant dense<0.000000e+00> : vector<8x8xf32>
    %482 = tpu.matmul %480, %481, %cst_167 {dimension_numbers = #tpu.dot_dimension_numbers<[1], [0], [0], [1], [0, 0, 1, 1], [], []>} : vector<8x8xf32>, vector<8x8xf32>, vector<8x8xf32> -> vector<8x8xf32>
    %483 = vector.extract_strided_slice %444 {offsets = [0, 0], sizes = [8, 32], strides = [1, 1]} : vector<32x32xf32> to vector<8x32xf32>
    %cst_168 = arith.constant dense<0.000000e+00> : vector<8x32xf32>
    %484 = tpu.matmul %482, %483, %cst_168 {dimension_numbers = #tpu.dot_dimension_numbers<[1], [0], [0], [1], [0, 0, 1, 1], [], []>} : vector<8x8xf32>, vector<8x32xf32>, vector<8x32xf32> -> vector<8x32xf32>
    %485 = vector.extract_strided_slice %479 {offsets = [8, 0], sizes = [8, 8], strides = [1, 1]} : vector<32x8xf32> to vector<8x8xf32>
    %486 = vector.extract_strided_slice %454 {offsets = [0, 8], sizes = [8, 8], strides = [1, 1]} : vector<8x32xf32> to vector<8x8xf32>
    %cst_169 = arith.constant dense<0.000000e+00> : vector<8x8xf32>
    %487 = tpu.matmul %485, %486, %cst_169 {dimension_numbers = #tpu.dot_dimension_numbers<[1], [0], [0], [1], [0, 0, 1, 1], [], []>} : vector<8x8xf32>, vector<8x8xf32>, vector<8x8xf32> -> vector<8x8xf32>
    %488 = vector.extract_strided_slice %444 {offsets = [8, 0], sizes = [8, 32], strides = [1, 1]} : vector<32x32xf32> to vector<8x32xf32>
    %cst_170 = arith.constant dense<0.000000e+00> : vector<8x32xf32>
    %489 = tpu.matmul %487, %488, %cst_170 {dimension_numbers = #tpu.dot_dimension_numbers<[1], [0], [0], [1], [0, 0, 1, 1], [], []>} : vector<8x8xf32>, vector<8x32xf32>, vector<8x32xf32> -> vector<8x32xf32>
    %490 = arith.addf %484, %489 : vector<8x32xf32>
    %491 = vector.extract_strided_slice %479 {offsets = [16, 0], sizes = [8, 8], strides = [1, 1]} : vector<32x8xf32> to vector<8x8xf32>
    %492 = vector.extract_strided_slice %454 {offsets = [0, 16], sizes = [8, 8], strides = [1, 1]} : vector<8x32xf32> to vector<8x8xf32>
    %cst_171 = arith.constant dense<0.000000e+00> : vector<8x8xf32>
    %493 = tpu.matmul %491, %492, %cst_171 {dimension_numbers = #tpu.dot_dimension_numbers<[1], [0], [0], [1], [0, 0, 1, 1], [], []>} : vector<8x8xf32>, vector<8x8xf32>, vector<8x8xf32> -> vector<8x8xf32>
    %494 = vector.extract_strided_slice %444 {offsets = [16, 0], sizes = [8, 32], strides = [1, 1]} : vector<32x32xf32> to vector<8x32xf32>
    %cst_172 = arith.constant dense<0.000000e+00> : vector<8x32xf32>
    %495 = tpu.matmul %493, %494, %cst_172 {dimension_numbers = #tpu.dot_dimension_numbers<[1], [0], [0], [1], [0, 0, 1, 1], [], []>} : vector<8x8xf32>, vector<8x32xf32>, vector<8x32xf32> -> vector<8x32xf32>
    %496 = arith.addf %490, %495 : vector<8x32xf32>
    %497 = vector.extract_strided_slice %479 {offsets = [24, 0], sizes = [8, 8], strides = [1, 1]} : vector<32x8xf32> to vector<8x8xf32>
    %498 = vector.extract_strided_slice %454 {offsets = [0, 24], sizes = [8, 8], strides = [1, 1]} : vector<8x32xf32> to vector<8x8xf32>
    %cst_173 = arith.constant dense<0.000000e+00> : vector<8x8xf32>
    %499 = tpu.matmul %497, %498, %cst_173 {dimension_numbers = #tpu.dot_dimension_numbers<[1], [0], [0], [1], [0, 0, 1, 1], [], []>} : vector<8x8xf32>, vector<8x8xf32>, vector<8x8xf32> -> vector<8x8xf32>
    %500 = vector.extract_strided_slice %444 {offsets = [24, 0], sizes = [8, 32], strides = [1, 1]} : vector<32x32xf32> to vector<8x32xf32>
    %cst_174 = arith.constant dense<0.000000e+00> : vector<8x32xf32>
    %501 = tpu.matmul %499, %500, %cst_174 {dimension_numbers = #tpu.dot_dimension_numbers<[1], [0], [0], [1], [0, 0, 1, 1], [], []>} : vector<8x8xf32>, vector<8x32xf32>, vector<8x32xf32> -> vector<8x32xf32>
    %502 = arith.addf %496, %501 : vector<8x32xf32>
    %503 = vector.broadcast %445 : vector<1x32xf32> to vector<8x32xf32>
    %504 = arith.addf %502, %503 : vector<8x32xf32>
    %505 = arith.addf %433, %504 : vector<8x32xf32>
    %506 = vector.extract_strided_slice %0 {offsets = [34, 0], sizes = [1, 32], strides = [1, 1]} : vector<39x32xf32> to vector<1x32xf32>
    %507 = vector.extract_strided_slice %0 {offsets = [35, 0], sizes = [1, 32], strides = [1, 1]} : vector<39x32xf32> to vector<1x32xf32>
    %cst_175 = arith.constant dense<0.000000e+00> : vector<8xf32>
    %508 = vector.multi_reduction <add>, %505, %cst_175 [1] : vector<8x32xf32> to vector<8xf32>
    %509 = vector.shape_cast %508 : vector<8xf32> to vector<8x1xf32>
    %cst_176 = arith.constant 3.200000e+01 : f32
    %510 = vector.broadcast %cst_176 : f32 to vector<8x1xf32>
    %511 = arith.divf %509, %510 : vector<8x1xf32>
    %512 = vector.broadcast %511 : vector<8x1xf32> to vector<8x32xf32>
    %513 = arith.subf %505, %512 : vector<8x32xf32>
    %514 = arith.mulf %513, %513 : vector<8x32xf32>
    %cst_177 = arith.constant dense<0.000000e+00> : vector<8xf32>
    %515 = vector.multi_reduction <add>, %514, %cst_177 [1] : vector<8x32xf32> to vector<8xf32>
    %516 = vector.shape_cast %515 : vector<8xf32> to vector<8x1xf32>
    %cst_178 = arith.constant 3.200000e+01 : f32
    %517 = vector.broadcast %cst_178 : f32 to vector<8x1xf32>
    %518 = arith.divf %516, %517 : vector<8x1xf32>
    %519 = vector.broadcast %511 : vector<8x1xf32> to vector<8x32xf32>
    %520 = arith.subf %505, %519 : vector<8x32xf32>
    %cst_179 = arith.constant 9.99999974E-6 : f32
    %521 = vector.broadcast %cst_179 : f32 to vector<8x1xf32>
    %522 = arith.addf %518, %521 : vector<8x1xf32>
    %523 = math.rsqrt %522 : vector<8x1xf32>
    %524 = vector.broadcast %523 : vector<8x1xf32> to vector<8x32xf32>
    %525 = arith.mulf %520, %524 : vector<8x32xf32>
    %526 = vector.broadcast %506 : vector<1x32xf32> to vector<8x32xf32>
    %527 = arith.mulf %525, %526 : vector<8x32xf32>
    %528 = vector.broadcast %507 : vector<1x32xf32> to vector<8x32xf32>
    %529 = arith.addf %527, %528 : vector<8x32xf32>
    %c2_180 = arith.constant 2 : index
    %c0_181 = arith.constant 0 : index
    %c0_182 = arith.constant 0 : index
    %530 = vector.load %arg6[%c2_180, %c0_181, %c0_182] : memref<3x32x64xf32, #tpu.memory_space<vmem>>, vector<1x32x64xf32>
    %531 = vector.shape_cast %530 : vector<1x32x64xf32> to vector<32x64xf32>
    %532 = vector.extract_strided_slice %1 {offsets = [2, 0], sizes = [1, 64], strides = [1, 1]} : vector<3x64xf32> to vector<1x64xf32>
    %c2_183 = arith.constant 2 : index
    %c0_184 = arith.constant 0 : index
    %c0_185 = arith.constant 0 : index
    %533 = vector.load %arg7[%c2_183, %c0_184, %c0_185] : memref<3x64x32xf32, #tpu.memory_space<vmem>>, vector<1x64x32xf32>
    %534 = vector.shape_cast %533 : vector<1x64x32xf32> to vector<64x32xf32>
    %535 = vector.extract_strided_slice %0 {offsets = [36, 0], sizes = [1, 32], strides = [1, 1]} : vector<39x32xf32> to vector<1x32xf32>
    %cst_186 = arith.constant dense<0.000000e+00> : vector<8x64xf32>
    %536 = tpu.matmul %529, %531, %cst_186 {dimension_numbers = #tpu.dot_dimension_numbers<[1], [0], [0], [1], [0, 0, 1, 1], [], []>} : vector<8x32xf32>, vector<32x64xf32>, vector<8x64xf32> -> vector<8x64xf32>
    %537 = vector.broadcast %532 : vector<1x64xf32> to vector<8x64xf32>
    %538 = arith.addf %536, %537 : vector<8x64xf32>
    %cst_187 = arith.constant 0.000000e+00 : f32
    %539 = vector.broadcast %cst_187 : f32 to vector<8x64xf32>
    %540 = arith.maximumf %538, %539 : vector<8x64xf32>
    %cst_188 = arith.constant dense<0.000000e+00> : vector<8x32xf32>
    %541 = tpu.matmul %540, %534, %cst_188 {dimension_numbers = #tpu.dot_dimension_numbers<[1], [0], [0], [1], [0, 0, 1, 1], [], []>} : vector<8x64xf32>, vector<64x32xf32>, vector<8x32xf32> -> vector<8x32xf32>
    %542 = vector.broadcast %535 : vector<1x32xf32> to vector<8x32xf32>
    %543 = arith.addf %541, %542 : vector<8x32xf32>
    %544 = arith.addf %529, %543 : vector<8x32xf32>
    %545 = vector.extract_strided_slice %0 {offsets = [37, 0], sizes = [1, 32], strides = [1, 1]} : vector<39x32xf32> to vector<1x32xf32>
    %546 = vector.extract_strided_slice %0 {offsets = [38, 0], sizes = [1, 32], strides = [1, 1]} : vector<39x32xf32> to vector<1x32xf32>
    %cst_189 = arith.constant dense<0.000000e+00> : vector<8xf32>
    %547 = vector.multi_reduction <add>, %544, %cst_189 [1] : vector<8x32xf32> to vector<8xf32>
    %548 = vector.shape_cast %547 : vector<8xf32> to vector<8x1xf32>
    %cst_190 = arith.constant 3.200000e+01 : f32
    %549 = vector.broadcast %cst_190 : f32 to vector<8x1xf32>
    %550 = arith.divf %548, %549 : vector<8x1xf32>
    %551 = vector.broadcast %550 : vector<8x1xf32> to vector<8x32xf32>
    %552 = arith.subf %544, %551 : vector<8x32xf32>
    %553 = arith.mulf %552, %552 : vector<8x32xf32>
    %cst_191 = arith.constant dense<0.000000e+00> : vector<8xf32>
    %554 = vector.multi_reduction <add>, %553, %cst_191 [1] : vector<8x32xf32> to vector<8xf32>
    %555 = vector.shape_cast %554 : vector<8xf32> to vector<8x1xf32>
    %cst_192 = arith.constant 3.200000e+01 : f32
    %556 = vector.broadcast %cst_192 : f32 to vector<8x1xf32>
    %557 = arith.divf %555, %556 : vector<8x1xf32>
    %558 = vector.broadcast %550 : vector<8x1xf32> to vector<8x32xf32>
    %559 = arith.subf %544, %558 : vector<8x32xf32>
    %cst_193 = arith.constant 9.99999974E-6 : f32
    %560 = vector.broadcast %cst_193 : f32 to vector<8x1xf32>
    %561 = arith.addf %557, %560 : vector<8x1xf32>
    %562 = math.rsqrt %561 : vector<8x1xf32>
    %563 = vector.broadcast %562 : vector<8x1xf32> to vector<8x32xf32>
    %564 = arith.mulf %559, %563 : vector<8x32xf32>
    %565 = vector.broadcast %545 : vector<1x32xf32> to vector<8x32xf32>
    %566 = arith.mulf %564, %565 : vector<8x32xf32>
    %567 = vector.broadcast %546 : vector<1x32xf32> to vector<8x32xf32>
    %568 = arith.addf %566, %567 : vector<8x32xf32>
    %569 = vector.extract_strided_slice %568 {offsets = [4, 0], sizes = [4, 32], strides = [1, 1]} : vector<8x32xf32> to vector<4x32xf32>
    %570 = vector.extract_strided_slice %0 {offsets = [4, 0], sizes = [1, 32], strides = [1, 1]} : vector<39x32xf32> to vector<1x32xf32>
    %571 = vector.extract_strided_slice %0 {offsets = [5, 0], sizes = [1, 32], strides = [1, 1]} : vector<39x32xf32> to vector<1x32xf32>
    %cst_194 = arith.constant dense<0.000000e+00> : vector<4xf32>
    %572 = vector.multi_reduction <add>, %569, %cst_194 [1] : vector<4x32xf32> to vector<4xf32>
    %573 = vector.shape_cast %572 : vector<4xf32> to vector<4x1xf32>
    %cst_195 = arith.constant 3.200000e+01 : f32
    %574 = vector.broadcast %cst_195 : f32 to vector<4x1xf32>
    %575 = arith.divf %573, %574 : vector<4x1xf32>
    %576 = vector.broadcast %575 : vector<4x1xf32> to vector<4x32xf32>
    %577 = arith.subf %569, %576 : vector<4x32xf32>
    %578 = arith.mulf %577, %577 : vector<4x32xf32>
    %cst_196 = arith.constant dense<0.000000e+00> : vector<4xf32>
    %579 = vector.multi_reduction <add>, %578, %cst_196 [1] : vector<4x32xf32> to vector<4xf32>
    %580 = vector.shape_cast %579 : vector<4xf32> to vector<4x1xf32>
    %cst_197 = arith.constant 3.200000e+01 : f32
    %581 = vector.broadcast %cst_197 : f32 to vector<4x1xf32>
    %582 = arith.divf %580, %581 : vector<4x1xf32>
    %583 = vector.broadcast %575 : vector<4x1xf32> to vector<4x32xf32>
    %584 = arith.subf %569, %583 : vector<4x32xf32>
    %cst_198 = arith.constant 9.99999974E-6 : f32
    %585 = vector.broadcast %cst_198 : f32 to vector<4x1xf32>
    %586 = arith.addf %582, %585 : vector<4x1xf32>
    %587 = math.rsqrt %586 : vector<4x1xf32>
    %588 = vector.broadcast %587 : vector<4x1xf32> to vector<4x32xf32>
    %589 = arith.mulf %584, %588 : vector<4x32xf32>
    %590 = vector.broadcast %570 : vector<1x32xf32> to vector<4x32xf32>
    %591 = arith.mulf %589, %590 : vector<4x32xf32>
    %592 = vector.broadcast %571 : vector<1x32xf32> to vector<4x32xf32>
    %593 = arith.addf %591, %592 : vector<4x32xf32>
    %c0_199 = arith.constant 0 : index
    %c0_200 = arith.constant 0 : index
    %594 = vector.load %arg10[%c0_199, %c0_200] : memref<32x1xf32, #tpu.memory_space<vmem>>, vector<32x1xf32>
    %cst_201 = arith.constant dense<0.000000e+00> : vector<4x1xf32>
    %595 = tpu.matmul %593, %594, %cst_201 {dimension_numbers = #tpu.dot_dimension_numbers<[1], [0], [0], [1], [0, 0, 1, 1], [], []>} : vector<4x32xf32>, vector<32x1xf32>, vector<4x1xf32> -> vector<4x1xf32>
    %c0_202 = arith.constant 0 : index
    %c0_203 = arith.constant 0 : index
    %596 = vector.load %arg11[%c0_202, %c0_203] : memref<1x1xf32, #tpu.memory_space<vmem>>, vector<1x1xf32>
    %597 = vector.broadcast %596 : vector<1x1xf32> to vector<4x1xf32>
    %598 = arith.addf %595, %597 : vector<4x1xf32>
    %c0_204 = arith.constant 0 : index
    %c0_205 = arith.constant 0 : index
    %c0_206 = arith.constant 0 : index
    %599 = vector.load %arg12[%c0_204, %c0_205, %c0_206] : memref<1x4x1xf32, #tpu.memory_space<vmem>>, vector<1x4x1xf32>
    %600 = vector.shape_cast %599 : vector<1x4x1xf32> to vector<4x1xf32>
    %601 = vector.shape_cast %598 : vector<4x1xf32> to vector<1x4x1xf32>
    tpu.vector_store %arg12[%c0_204, %c0_205, %c0_206], %601 {strides = array<i32>} : memref<1x4x1xf32, #tpu.memory_space<vmem>>, vector<1x4x1xf32>,
    return
  }
  func.func @transform_0(%arg0: i32) -> (i32, i32, i32) {
    %c0_i32 = arith.constant 0 : i32
    %c0_i32_0 = arith.constant 0 : i32
    %c0_i32_1 = arith.constant 0 : i32
    return %arg0, %c0_i32, %c0_i32_0 : i32, i32, i32
  }
  func.func @transform_1(%arg0: i32) -> (i32, i32) {
    %c0_i32 = arith.constant 0 : i32
    %c0_i32_0 = arith.constant 0 : i32
    %c0_i32_1 = arith.constant 0 : i32
    return %c0_i32, %c0_i32_0 : i32, i32
  }
  func.func @transform_2(%arg0: i32) -> (i32, i32) {
    %c0_i32 = arith.constant 0 : i32
    %c0_i32_0 = arith.constant 0 : i32
    %c0_i32_1 = arith.constant 0 : i32
    return %c0_i32, %c0_i32_0 : i32, i32
  }
  func.func @transform_3(%arg0: i32) -> (i32, i32, i32) {
    %c0_i32 = arith.constant 0 : i32
    %c0_i32_0 = arith.constant 0 : i32
    %c0_i32_1 = arith.constant 0 : i32
    %c0_i32_2 = arith.constant 0 : i32
    return %c0_i32, %c0_i32_0, %c0_i32_1 : i32, i32, i32
  }
  func.func @transform_4(%arg0: i32) -> (i32, i32, i32) {
    %c0_i32 = arith.constant 0 : i32
    %c0_i32_0 = arith.constant 0 : i32
    %c0_i32_1 = arith.constant 0 : i32
    %c0_i32_2 = arith.constant 0 : i32
    return %c0_i32, %c0_i32_0, %c0_i32_1 : i32, i32, i32
  }
  func.func @transform_5(%arg0: i32) -> (i32, i32, i32) {
    %c0_i32 = arith.constant 0 : i32
    %c0_i32_0 = arith.constant 0 : i32
    %c0_i32_1 = arith.constant 0 : i32
    %c0_i32_2 = arith.constant 0 : i32
    return %c0_i32, %c0_i32_0, %c0_i32_1 : i32, i32, i32
  }
  func.func @transform_6(%arg0: i32) -> (i32, i32, i32) {
    %c0_i32 = arith.constant 0 : i32
    %c0_i32_0 = arith.constant 0 : i32
    %c0_i32_1 = arith.constant 0 : i32
    %c0_i32_2 = arith.constant 0 : i32
    return %c0_i32, %c0_i32_0, %c0_i32_1 : i32, i32, i32
  }
  func.func @transform_7(%arg0: i32) -> (i32, i32) {
    %c0_i32 = arith.constant 0 : i32
    %c0_i32_0 = arith.constant 0 : i32
    %c0_i32_1 = arith.constant 0 : i32
    return %c0_i32, %c0_i32_0 : i32, i32
  }
  func.func @transform_8(%arg0: i32) -> (i32, i32) {
    %c0_i32 = arith.constant 0 : i32
    %c0_i32_0 = arith.constant 0 : i32
    %c0_i32_1 = arith.constant 0 : i32
    return %c0_i32, %c0_i32_0 : i32, i32
  }
  func.func @transform_9(%arg0: i32) -> (i32, i32) {
    %c0_i32 = arith.constant 0 : i32
    %c0_i32_0 = arith.constant 0 : i32
    %c0_i32_1 = arith.constant 0 : i32
    return %c0_i32, %c0_i32_0 : i32, i32
  }
  func.func @transform_10(%arg0: i32) -> (i32, i32) {
    %c0_i32 = arith.constant 0 : i32
    %c0_i32_0 = arith.constant 0 : i32
    %c0_i32_1 = arith.constant 0 : i32
    return %c0_i32, %c0_i32_0 : i32, i32
  }
  func.func @transform_11(%arg0: i32) -> (i32, i32, i32) {
    %c0_i32 = arith.constant 0 : i32
    %c0_i32_0 = arith.constant 0 : i32
    %c0_i32_1 = arith.constant 0 : i32
    return %arg0, %c0_i32, %c0_i32_0 : i32, i32, i32
  }
}

</mosaic_0001>

<bundles_post_ra>
// kernel: _lambda_.1
= control target key start
LH: loop header
LB: loop body
LE: loop exit
PB: predicated region body
PF: predicated region fallthrough
CT: control target
= control target key end

     0   :  { %s3672_s0 = inlined_call_operand.vmem [shape: f32[2,8,4], index: 0, kind: input, shape index: {}]   ;;  %s3673_s1 = inlined_call_operand.vmem [shape: f32[4,32], index: 1, kind: input, shape index: {}]   ;;  %s3674_s2 = inlined_call_operand.vmem [shape: f32[4,32], index: 2, kind: input, shape index: {}]   ;;  %s3675_s3 = inlined_call_operand.vmem [shape: f32[2,8,32], index: 3, kind: input, shape index: {}]   ;;  %s3676_s4 = inlined_call_operand.hbm [shape: f32[16,32,32], index: 4, kind: input, shape index: {}]   ;;  %s3677_s5 = inlined_call_operand.vmem [shape: f32[3,32,64], index: 5, kind: input, shape index: {}]   ;;  %s3678_s6 = inlined_call_operand.vmem [shape: f32[3,64,32], index: 6, kind: input, shape index: {}]   ;;  %s3679_s7 = inlined_call_operand.vmem [shape: f32[39,32], index: 7, kind: input, shape index: {}]   ;;  %s3680_s8 = inlined_call_operand.vmem [shape: f32[3,64], index: 8, kind: input, shape index: {}]   ;;  %s3681_s9 = inlined_call_operand.vmem [shape: f32[32,1], index: 9, kind: input, shape index: {}]   ;;  %s3682_s10 = inlined_call_operand.<no memory space> [shape: f32[1,1], index: 10, kind: input, shape index: {}]   ;;  %s3683_s11 = inlined_call_operand.vmem [shape: f32[2,4,1], index: 11, kind: output, shape index: {}]  }
   0x1   :  { %v16_v0 = vstv %s3682_s10 }
   0x2   :  { %17 = vst [vmem:[#allocation2] sm:$0x1] %v16_v0 }
   0x3   :  { %18 = vsyncpa [#allocation4], 0  ;;  %s3192_s19 = smov 0  }
   0x4 LB: > { %s311_s22 = sshll.u32 %s3676_s4, 4  ;;  %s2845_s23 = sadd.s32 4294967295, %s3120_s19   ;;  %s3120_s19 = sphi %s3192_s19, %s24_s19   ;;  %s312_s22 = int_to_ptr.hbm [resolvable:$true] %s311_s22 }
   0x5   : > { %p2847_p0 = scmp.ge.s32.totalorder %s3120_s19, 1  ;;  %p291_p1 = scmp.lt.s32.totalorder %s3120_s19, 3 }
   0x6   : > { %p2976_p2 = scmp.eq.s32.totalorder %s2845_s23, 0  ;;  %s3122_s10 = smov [#allocation3]  }
   0x7   : > { %p292_p3 = pnand %p2847_p0, %p291_p1  ;;  %s313_s24 = sshll.u32 %s3122_s10, 4  ;;  %s314_s24 = int_to_ptr.vmem [resolvable:$true] %s313_s24 }
   0x8   : > { %s3123_s25 = smov 128   ;;  %s3124_s26 = smov 8  }
   0x9   : > { %p2972_p4 = pneg %p292_p3  ;;  %354 = sbr.rel (%p292_p3) target bundleno = 6837 (0x1ab5), region = 64 }
   0xb   : > { %p2973_p5 = pnand %p2976_p2, %p2972_p4 }
   0xd   : > { %2975 = dma.hbm_to_vmem [thread:$0]  (!%p2973_p5), %s312_s22, 8192, %s314_s24, [#allocation4], %s3123_s25, %s3123_s25, %s3124_s26  }
   0xe   : > { %3115 = dma.done.wait (%p2976_p2), [#allocation4], 8192  }
   0xf   : > { %3117 = vsyncadd (%p2976_p2), [#allocation4], 4294959104  ;;  %p393_p6 = scmp.lt.s32.totalorder %s2845_s23, 1  ;;  %vm414_vm0 = vcmask 1043456   ;;  %vm410_vm1 = vcmask 31744   ;;  %v443_v3 = vld [vmem:[#allocation3 + $0x18] sm:$0xff] }
  0x10   : > { %v408_v1 = vld [vmem:[%s3673_s1] sm:$0xf]  ;;  %476 = vmatpush.msra.mxu3 %v443_v3  ;;  %v442_v5 = vld [vmem:[#allocation3 + $0x10] sm:$0xff]  ;;  %v441_v7 = vld [vmem:[#allocation3 + $0x8] sm:$0xff]  ;;  %vm460_vm2 = vcmask 261120   ;;  %vm526_vm3 = vcmask 64512  }
  0x11   : > { %s3685_s23 = smov (!%p393_p6, %s2845_s23), 1  ;;  %2854 = vmatpush.msk.msra.mxu0 %vm414_vm0, %v408_v1  ;;  %v448_v4 = vld [vmem:[#allocation3 + $0x38] sm:$0xff]  ;;  %v447_v6 = vld [vmem:[#allocation3 + $0x30] sm:$0xff]  ;;  %v446_v8 = vld [vmem:[#allocation3 + $0x28] sm:$0xff]  ;;  %s3125_s21 = smov 112   ;;  %vm955_vm8 = vcmask 523264  }
  0x12   : > { %s2852_s27 = sshll.u32 %s3685_s23, 3  ;;  %497 = vmatpush.msra.mxu2 %v448_v4  ;;  %477 = vmatpush.msra.mxu3 %v442_v5  ;;  %v440_v9 = vld [vmem:[#allocation3] sm:$0xff]  ;;  %v453_v11 = vld [vmem:[#allocation3 + $0x58] sm:$0xff]  ;;  %v452_v12 = vld [vmem:[#allocation3 + $0x50] sm:$0xff]  ;;  %s3126_s22 = smov 104  }
  0x13   : > { %s396_s30 = scalar_lea.vmem %s3672_s0, %s2852_s27  ;;  %v445_v10 = vld [vmem:[#allocation3 + $0x20] sm:$0xff]  ;;  %v451_v13 = vld [vmem:[#allocation3 + $0x48] sm:$0xff]  ;;  %s3127_s10 = smov 120  }
  0x14   : > { %v3212_v2 = vld [vmem:[%s396_s30] sm:$0xff]  ;;  %498 = vmatpush.msra.mxu2 %v447_v6  ;;  %478 = vmatpush.msra.mxu3 %v441_v7  ;;  %v3239_v26 = vld [vmem:[%s3679_s7 + $0x8] sm:$0xff]  ;;  %s2853_s24 = sshll.u32 %s3685_s23, 2 }
  0x15   : > { %2855 = vmatmul.msk.f32.vlgmr.msra.gmra.mxu0 %vm410_vm1, %v3212_v2  ;;  %v450_v14 = vld [vmem:[#allocation3 + $0x40] sm:$0xff]  ;;  %v505_v28 = vperm.slane %v3239_v26, 0  ;;  %v456_v6 = vld [vmem:[#allocation3 + $0x68] sm:$0xff] }
  0x16   : > { %499 = vmatpush.msra.mxu2 %v446_v8  ;;  %479 = vmatpush.msra.mxu3 %v440_v9  ;;  %v3220_v15 = vld [vmem:[%s3679_s7] sm:$0xff] }
  0x17   : > { %v409_v16 = vperm.slane %v3220_v15, 0  ;;  %v438_v18 = vld [vmem:[%s3675_s3] sm:$0xff]  ;;  %v484_v21 = vperm.slane %v3220_v15, 7  ;;  %v459_v24 = vperm.slane %v3220_v15, 6 }
  0x18   : > { %500 = vmatpush.msra.mxu2 %v445_v10  ;;  %518 = vmatpush.msrb.mxu3 %v453_v11  ;;  %v455_v5 = vld [vmem:[#allocation3 + $0x60] sm:$0xff] }
  0x1a   : > { %519 = vmatpush.msrb.mxu3 %v452_v12 }
  0x1c   : > { %520 = vmatpush.msrb.mxu3 %v451_v13 }
  0x1e   : > { %521 = vmatpush.msrb.mxu3 %v450_v14 }
  0x92   : > { %v435_v17 = vpop.f32.mrf.mxu0 }
  0x93   : > { %v436_v19 = vadd.f32 %v435_v17, %v409_v16 }
  0x95   : > { %v3226_v20 = vadd.f32 %v438_v18, %v436_v19 }
  0x97   : > { %2856 = vmatmul.msk.f32.vlgmr.msra.gmra.mxu3 %vm460_vm2, %v3226_v20  ;;  %2857 = vmatmul.msk.f32.vlgmr.msra.gmra.mxu2 %vm460_vm2, %v3226_v20 }
  0x9f   : > { %2858 = vmatmul.msk.f32.vlgmr.msrb.gmra.mxu3 %vm460_vm2, %v3226_v20 }
 0x11a   : > { %v481_v22 = vpop.f32.mrf.mxu3  ;;  %v502_v23 = vpop.f32.mrf.mxu2 }
 0x11b   : > { %v503_v25 = vadd.f32 %v502_v23, %v484_v21  ;;  %v482_v27 = vadd.f32 %v481_v22, %v459_v24 }
 0x11d   : > { %583 = vrot.lane.b32.xlu2 %v503_v25, %s3125_s21  ;;  %611 = vrot.lane.b32.xlu1 %v503_v25, %s3126_s22 }
 0x11e   : > { %555 = vrot.lane.b32.xlu0 %v503_v25, %s3127_s10  ;;  %2859 = vmatpush.xpose.msk.msrb.mxu0 %vm526_vm3, %v503_v25 }
 0x121   : > { %2860 = vmatmul.msk.f32.vlgmr.msrb.gmra.mxu0 %vm526_vm3, %v482_v27 }
 0x122   : > { %v523_v29 = vpop.f32.mrf.mxu3 }
 0x123   : > { %v524_v30 = vadd.f32 %v523_v29, %v505_v28  ;;  %v457_v28 = vld [vmem:[#allocation3 + $0x70] sm:$0xff]  ;;  %v458_v29 = vld [vmem:[#allocation3 + $0x78] sm:$0xff] }
 0x125   : > { %703 = vmatpush.msra.mxu0 %v524_v30  ;;  %581 = vrot.lane.b32.xlu2 %v482_v27, %s3125_s21 }
 0x126   : > { %609 = vrot.lane.b32.xlu1 %v482_v27, %s3126_s22  ;;  %553 = vrot.lane.b32.xlu0 %v482_v27, %s3127_s10 }
 0x12d   : > { %709 = vrot.lane.b32.xlu2 %v524_v30, %s3127_s10 }
 0x177   : > { %v584_v31 = vpop.permute.xlu2 %583 }
 0x178   : > { %2863 = vmatpush.xpose.msk.msrb.mxu2 %vm526_vm3, %v584_v31 }
 0x17c   : > { %753 = vmatpush.msra.mxu2 %v456_v6 }
 0x17f   : > { %v582_v32 = vpop.permute.xlu2 %581 }
 0x180   : > { %2864 = vmatmul.msk.f32.vlgmr.msrb.gmra.mxu2 %vm526_vm3, %v582_v32 }
 0x187   : > { %v710_v35 = vpop.permute.xlu2 %709 }
 0x18f   : > { %v612_v33 = vpop.permute.xlu1 %611 }
 0x190   : > { %v556_v34 = vpop.permute.xlu0 %555  ;;  %2865 = vmatpush.xpose.msk.msra.mxu3 %vm526_vm3, %v612_v33 }
 0x191   : > { %2861 = vmatpush.xpose.msk.msra.mxu1 %vm526_vm3, %v556_v34 }
 0x194   : > { %776 = vmatpush.msrb.mxu3 %v455_v5 }
 0x195   : > { %730 = vmatpush.msrb.mxu1 %v710_v35 }
 0x198   : > { %v610_v36 = vpop.permute.xlu1 %609  ;;  %v554_v37 = vpop.permute.xlu0 %553 }
 0x199   : > { %2862 = vmatmul.msk.f32.vlgmr.msra.gmra.mxu1 %vm526_vm3, %v554_v37  ;;  %2866 = vmatmul.msk.f32.vlgmr.msra.gmra.mxu3 %vm526_vm3, %v610_v36  ;;  %v881_v37 = vperm.slane %v3239_v26, 1 }
 0x19a   : > { %825 = vmatpush.msra.mxu1 %v457_v28  ;;  %875 = vmatpush.msra.mxu3 %v458_v29 }
 0x19e   : > { %v550_v38 = vpop.f32.mrf.mxu0 }
 0x19f   : > { %v637_v39 = vmul.f32 0.35355338, %v550_v38 }
 0x1a1   : > { %v641_v40 = vsel %vm526_vm3, %v637_v39, -inf }
 0x1a2   : > { %642 = vmax.xlane.f32.xlu2 %v641_v40 }
 0x203   : > { %v606_v61 = vpop.f32.mrf.mxu2 }
 0x204   : > { %v639_v63 = vmul.f32 0.35355338, %v606_v61 }
 0x206   : > { %v647_v3 = vsel %vm526_vm3, %v639_v63, -inf }
 0x215   : > { %v643_v41 = vpop.xlane.xlu2 %642 }
 0x216   : > { %v653_v42 = vsub.f32 %v637_v39, %v643_v41  ;;  %v578_v43 = vpop.f32.mrf.mxu1 }
 0x217   : > { %v638_v44 = vmul.f32 0.35355338, %v578_v43  ;;  %v3128_v43 = vmov 32.0  }
 0x218   : > { %v657_v45 = vmul.f32 1.442695, %v653_v42 }
 0x219   : > { %v644_v46 = vsel %vm526_vm3, %v638_v44, -inf }
 0x21a   : > { %2994 = vpow2.f32 %v657_v45  ;;  %645 = vmax.xlane.f32.xlu0 %v644_v46 }
 0x21c   : > { %v634_v47 = vpop.f32.mrf.mxu3 }
 0x21d   : > { %v640_v48 = vmul.f32 0.35355338, %v634_v47 }
 0x21f   : > { %v650_v50 = vsel %vm526_vm3, %v640_v48, -inf }
 0x220   : > { %v2995_v49 = vpop.eup %2994 }
 0x221   : > { %v665_v51 = vsel %vm526_vm3, %v2995_v49, 0.0 }
 0x222   : > { %651 = vmax.xlane.f32.xlu0 %v650_v50  ;;  %666 = vadd.xlane.f32.xlu2 %v665_v51 }
 0x28d   : > { %v646_v52 = vpop.xlane.xlu0 %645 }
 0x28e   : > { %v654_v53 = vsub.f32 %v638_v44, %v646_v52 }
 0x290   : > { %v659_v54 = vmul.f32 1.442695, %v654_v53 }
 0x292   : > { %2996 = vpow2.f32 %v659_v54  ;;  %v920_v54 = vld [vmem:[%s3677_s5 + $0x18] sm:$0xff] }
 0x295   : > { %v652_v55 = vpop.xlane.xlu0 %651  ;;  %v667_v56 = vpop.xlane.xlu2 %666 }
 0x296   : > { %v656_v57 = vsub.f32 %v640_v48, %v652_v55  ;;  %2998 = vrcp.f32 %v667_v56  ;;  %v919_v55 = vld [vmem:[%s3677_s5 + $0x10] sm:$0xff]  ;;  %v918_v56 = vld [vmem:[%s3677_s5 + $0x8] sm:$0xff] }
 0x298   : > { %v2997_v58 = vpop.eup %2996  ;;  %v663_v59 = vmul.f32 1.442695, %v656_v57  ;;  %v917_v57 = vld [vmem:[%s3677_s5] sm:$0xff] }
 0x299   : > { %v668_v60 = vsel %vm526_vm3, %v2997_v58, 0.0 }
 0x29a   : > { %3000 = vpow2.f32 %v663_v59  ;;  %669 = vadd.xlane.f32.xlu1 %v668_v60  ;;  %v927_v59 = vld [vmem:[%s3678_s6 + $0x30] sm:$0xff]  ;;  %v926_v60 = vld [vmem:[%s3678_s6 + $0x28] sm:$0xff] }
 0x29c   : > { %v2999_v62 = vpop.eup %2998 }
 0x29d   : > { %v681_v0 = vmul.f32 %v2999_v62, %v2995_v49 }
 0x29f   : > { %2867 = vmatmul.msk.f32.vlgmr.msra.gmra.mxu0 %vm526_vm3, %v681_v0 }
 0x2a0   : > { %v3001_v1 = vpop.eup %3000 }
 0x2a1   : > { %v674_v4 = vsel %vm526_vm3, %v3001_v1, 0.0 }
 0x2a2   : > { %648 = vmax.xlane.f32.xlu1 %v647_v3  ;;  %675 = vadd.xlane.f32.xlu0 %v674_v4 }
 0x2b6   : > { %781 = vrot.lane.b32.xlu0 %v524_v30, %s3125_s21 }
 0x2bb   : > { %831 = vrot.lane.b32.xlu1 %v524_v30, %s3126_s22 }
 0x30d   : > { %v670_v7 = vpop.xlane.xlu1 %669 }
 0x30e   : > { %3002 = vrcp.f32 %v670_v7 }
 0x314   : > { %v3003_v8 = vpop.eup %3002 }
 0x315   : > { %v649_v9 = vpop.xlane.xlu1 %648  ;;  %v682_v10 = vmul.f32 %v3003_v8, %v2997_v58  ;;  %v676_v16 = vpop.xlane.xlu0 %675  ;;  %v928_v58 = vld [vmem:[%s3678_s6 + $0x38] sm:$0xff] }
 0x316   : > { %v655_v11 = vsub.f32 %v639_v63, %v649_v9  ;;  %v925_v63 = vld [vmem:[%s3678_s6 + $0x20] sm:$0xff]  ;;  %v913_v9 = vperm.slane %v3239_v26, 2 }
 0x317   : > { %2868 = vmatmul.msk.f32.vlgmr.msrb.gmra.mxu1 %vm526_vm3, %v682_v10 }
 0x318   : > { %v661_v12 = vmul.f32 1.442695, %v655_v11  ;;  %967 = vmatpush.msrb.mxu1 %v928_v58 }
 0x31a   : > { %3004 = vpow2.f32 %v661_v12  ;;  %968 = vmatpush.msrb.mxu1 %v927_v59  ;;  %v915_v12 = vperm.slane %v3239_v26, 3 }
 0x31b   : > { %3006 = vrcp.f32 %v676_v16  ;;  %v923_v16 = vld [vmem:[%s3678_s6 + $0x10] sm:$0xff] }
 0x31c   : > { %v705_v13 = vpop.f32.mrf.mxu0  ;;  %969 = vmatpush.msrb.mxu1 %v926_v60  ;;  %v1004_v60 = vperm.slane %v3239_v26, 6 }
 0x31d   : > { %2870 = vmatmul.msk.f32.vlgmr.msrb.gmra.mxu3 %vm526_vm3, %v705_v13 }
 0x31e   : > { %970 = vmatpush.msrb.mxu1 %v925_v63  ;;  %v3347_v63 = vld [vmem:[%s3679_s7 + $0x10] sm:$0xff] }
 0x320   : > { %v3005_v14 = vpop.eup %3004 }
 0x321   : > { %v671_v17 = vsel %vm526_vm3, %v3005_v14, 0.0  ;;  %v3007_v23 = vpop.eup %3006 }
 0x322   : > { %672 = vadd.xlane.f32.xlu2 %v671_v17  ;;  %v684_v24 = vmul.f32 %v3007_v23, %v3001_v1  ;;  %v924_v1 = vld [vmem:[%s3678_s6 + $0x18] sm:$0xff]  ;;  %v922_v17 = vld [vmem:[%s3678_s6 + $0x8] sm:$0xff] }
 0x323   : > { %971 = vmatpush.msrb.mxu1 %v924_v1  ;;  %v1050_v1 = vperm.slane %v3347_v63, 0 }
 0x325   : > { %972 = vmatpush.msrb.mxu1 %v923_v16 }
 0x327   : > { %973 = vmatpush.msrb.mxu1 %v922_v17 }
 0x328   : > { %v782_v18 = vpop.permute.xlu0 %781 }
 0x329   : > { %802 = vmatpush.msrb.mxu0 %v782_v18  ;;  %v921_v18 = vld [vmem:[%s3678_s6] sm:$0xff] }
 0x32a   : > { %974 = vmatpush.msrb.mxu1 %v921_v18 }
 0x32b   : > { %945 = vmatpush.msra.mxu0 %v920_v54 }
 0x32d   : > { %v832_v19 = vpop.permute.xlu1 %831  ;;  %946 = vmatpush.msra.mxu0 %v919_v55 }
 0x32e   : > { %852 = vmatpush.msrb.mxu2 %v832_v19  ;;  %v3325_v19 = vld [vmem:[%s3680_s8] sm:$0x7] }
 0x32f   : > { %947 = vmatpush.msra.mxu0 %v918_v56 }
 0x331   : > { %948 = vmatpush.msra.mxu0 %v917_v57  ;;  %v1002_v57 = vperm.slane %v3239_v26, 5 }
 0x394   : > { %v732_v21 = vpop.f32.mrf.mxu1 }
 0x395   : > { %2869 = vmatmul.msk.f32.vlgmr.msra.gmra.mxu2 %vm526_vm3, %v732_v21  ;;  %v673_v22 = vpop.xlane.xlu2 %672  ;;  %v929_v21 = vperm.slane %v3325_v19, 0 }
 0x396   : > { %3008 = vrcp.f32 %v673_v22 }
 0x397   : > { %3010 = vrcp.f32 %v3128_v43  ;;  %v1013_v43 = vld [vmem:[#allocation3 + $0xa8] sm:$0xff] }
 0x39c   : > { %v3009_v25 = vpop.eup %3008 }
 0x39d   : > { %v683_v27 = vmul.f32 %v3009_v25, %v3005_v14  ;;  %2873 = vmatmul.msk.f32.vlgmr.msrb.gmra.mxu2 %vm526_vm3, %v684_v24  ;;  %v3011_v44 = vpop.eup %3010  ;;  %v954_v25 = vperm.slane %v3239_v26, 4 }
 0x39e   : > { %v888_v45 = vmul.f32 32.0, %v3011_v44  ;;  %vm892_vm4 = vweird.f32 %v3011_v44 }
 0x39f   : > { %2871 = vmatmul.msk.f32.vlgmr.msrb.gmra.mxu0 %vm526_vm3, %v683_v27 }
 0x3a0   : > { %v778_v33 = vpop.f32.mrf.mxu3  ;;  %v889_v46 = vsub.f32 1.0, %v888_v45  ;;  %v1007_v45 = vld [vmem:[#allocation3 + $0x80] sm:$0xff] }
 0x3a2   : > { %v890_v47 = vmul.f32 %v3011_v44, %v889_v46  ;;  %v1012_v46 = vld [vmem:[#allocation3 + $0xa0] sm:$0xff] }
 0x3a4   : > { %v891_v48 = vadd.f32 %v3011_v44, %v890_v47  ;;  %v1017_v47 = vld [vmem:[#allocation3 + $0xc0] sm:$0xff] }
 0x3a6   : > { %v3278_v49 = vsel %vm892_vm4, %v3011_v44, %v891_v48  ;;  %v1018_v44 = vld [vmem:[#allocation3 + $0xc8] sm:$0xff] }
 0x418   : > { %v755_v30 = vpop.f32.mrf.mxu2 }
 0x419   : > { %v779_v35 = vadd.f32 %v778_v33, %v755_v30 }
 0x41c   : > { %v804_v31 = vpop.f32.mrf.mxu0 }
 0x41d   : > { %2872 = vmatmul.msk.f32.vlgmr.msra.gmra.mxu1 %vm526_vm3, %v804_v31 }
 0x420   : > { %v854_v32 = vpop.f32.mrf.mxu2 }
 0x421   : > { %2874 = vmatmul.msk.f32.vlgmr.msra.gmra.mxu3 %vm526_vm3, %v854_v32 }
 0x49a   : > { %v827_v34 = vpop.f32.mrf.mxu1 }
 0x49b   : > { %v830_v36 = vadd.f32 %v827_v34, %v779_v35 }
 0x4a4   : > { %v877_v38 = vpop.f32.mrf.mxu3 }
 0x4a5   : > { %v880_v39 = vadd.f32 %v877_v38, %v830_v36  ;;  %v1010_v36 = vld [vmem:[#allocation3 + $0x98] sm:$0xff] }
 0x4a6   : > { %v1020_v38 = vld [vmem:[#allocation3 + $0xd8] sm:$0xff]  ;;  %1042 = vmatpush.msra.mxu2 %v1010_v36 }
 0x4a7   : > { %v882_v40 = vadd.f32 %v881_v37, %v880_v39  ;;  %v1015_v37 = vld [vmem:[#allocation3 + $0xb8] sm:$0xff]  ;;  %1084 = vmatpush.msrb.mxu0 %v1020_v38  ;;  %v1009_v39 = vld [vmem:[#allocation3 + $0x90] sm:$0xff] }
 0x4a8   : > { %1063 = vmatpush.msrb.mxu3 %v1015_v37  ;;  %1043 = vmatpush.msra.mxu2 %v1009_v39 }
 0x4a9   : > { %v883_v41 = vadd.f32 %v882_v40, %v3226_v20  ;;  %v1014_v40 = vld [vmem:[#allocation3 + $0xb0] sm:$0xff] }
 0x4aa   : > { %1064 = vmatpush.msrb.mxu3 %v1014_v40 }
 0x4ab   : > { %v884_v42 = vsel %vm460_vm2, %v883_v41, 0.0 }
 0x4ac   : > { %885 = vadd.xlane.f32.xlu2 %v884_v42  ;;  %v1008_v42 = vld [vmem:[#allocation3 + $0x88] sm:$0xff]  ;;  %1065 = vmatpush.msrb.mxu3 %v1013_v43 }
 0x4ad   : > { %1044 = vmatpush.msra.mxu2 %v1008_v42 }
 0x4ae   : > { %1066 = vmatpush.msrb.mxu3 %v1012_v46 }
 0x4af   : > { %1045 = vmatpush.msra.mxu2 %v1007_v45 }
 0x51f   : > { %v886_v50 = vpop.xlane.xlu2 %885 }
 0x520   : > { %v894_v51 = vmul.f32 %v3278_v49, %v886_v50 }
 0x522   : > { %v895_v52 = vsub.f32 %v883_v41, %v894_v51  ;;  %v1019_v41 = vld [vmem:[#allocation3 + $0xd0] sm:$0xff] }
 0x523   : > { %1085 = vmatpush.msrb.mxu0 %v1019_v41 }
 0x524   : > { %v896_v53 = vmul.f32 %v895_v52, %v895_v52 }
 0x525   : > { %1086 = vmatpush.msrb.mxu0 %v1018_v44 }
 0x526   : > { %v897_v20 = vsel %vm460_vm2, %v896_v53, 0.0 }
 0x527   : > { %898 = vadd.xlane.f32.xlu2 %v897_v20  ;;  %1087 = vmatpush.msrb.mxu0 %v1017_v47 }
 0x59a   : > { %v899_v61 = vpop.xlane.xlu2 %898 }
 0x59b   : > { %v900_v62 = vmul.f32 %v899_v61, %v3278_v49 }
 0x59d   : > { %v901_v0 = vadd.f32 1e-05, %v900_v62 }
 0x59f   : > { %3012 = vrsqrt.f32 %v901_v0  ;;  %vm908_vm6 = vweird.f32 %v901_v0 }
 0x5a5   : > { %v3013_v3 = vpop.eup %3012 }
 0x5a6   : > { %v903_v4 = vmul.f32 %v3013_v3, %v901_v0  ;;  %vm909_vm5 = vweird.f32 %v3013_v3  ;;  %v1026_v0 = vperm.slane %v3239_v26, 7 }
 0x5a7   : > { %vm910_vm7 = vmor %vm908_vm6, %vm909_vm5 }
 0x5a8   : > { %v904_v5 = vmul.f32 %v3013_v3, %v903_v4 }
 0x5aa   : > { %v905_v6 = vmul.f32 0.5, %v904_v5 }
 0x5ac   : > { %v906_v7 = vsub.f32 1.5, %v905_v6 }
 0x5ae   : > { %v907_v8 = vmul.f32 %v3013_v3, %v906_v7 }
 0x5b0   : > { %v911_v10 = vsel %vm910_vm7, %v3013_v3, %v907_v8  ;;  %v1071_v3 = vperm.slane %v3347_v63, 1 }
 0x5b1   : > { %v912_v11 = vmul.f32 %v911_v10, %v895_v52 }
 0x5b3   : > { %v914_v13 = vmul.f32 %v913_v9, %v912_v11 }
 0x5b5   : > { %v916_v14 = vadd.f32 %v915_v12, %v914_v13 }
 0x5b7   : > { %2875 = vmatmul.msk.f32.vlgmr.msra.gmra.mxu0 %vm460_vm2, %v916_v14 }
 0x634   : > { %v950_v22 = vpop.f32.mrf.mxu0 }
 0x635   : > { %v951_v23 = vadd.f32 %v950_v22, %v929_v21 }
 0x637   : > { %v953_v24 = vmax.f32 %v951_v23, 0.0 }
 0x639   : > { %2876 = vmatmul.msk.f32.vlgmr.msrb.gmra.mxu1 %vm955_vm8, %v953_v24 }
 0x6b6   : > { %v976_v27 = vpop.f32.mrf.mxu1 }
 0x6b7   : > { %v977_v28 = vadd.f32 %v976_v27, %v954_v25 }
 0x6b9   : > { %v979_v29 = vadd.f32 %v977_v28, %v916_v14 }
 0x6bb   : > { %v980_v30 = vsel %vm460_vm2, %v979_v29, 0.0 }
 0x6bc   : > { %981 = vadd.xlane.f32.xlu1 %v980_v30 }
 0x72f   : > { %v982_v31 = vpop.xlane.xlu1 %981 }
 0x730   : > { %v983_v32 = vmul.f32 %v982_v31, %v3278_v49 }
 0x732   : > { %v984_v33 = vsub.f32 %v979_v29, %v983_v32 }
 0x734   : > { %v985_v34 = vmul.f32 %v984_v33, %v984_v33 }
 0x736   : > { %v986_v35 = vsel %vm460_vm2, %v985_v34, 0.0 }
 0x737   : > { %987 = vadd.xlane.f32.xlu0 %v986_v35 }
 0x7aa   : > { %v988_v48 = vpop.xlane.xlu0 %987 }
 0x7ab   : > { %v989_v50 = vmul.f32 %v988_v48, %v3278_v49 }
 0x7ad   : > { %v990_v51 = vadd.f32 1e-05, %v989_v50 }
 0x7af   : > { %3014 = vrsqrt.f32 %v990_v51  ;;  %vm997_vm10 = vweird.f32 %v990_v51 }
 0x7b5   : > { %v3015_v52 = vpop.eup %3014 }
 0x7b6   : > { %v992_v53 = vmul.f32 %v3015_v52, %v990_v51  ;;  %vm998_vm9 = vweird.f32 %v3015_v52 }
 0x7b7   : > { %vm999_vm11 = vmor %vm997_vm10, %vm998_vm9 }
 0x7b8   : > { %v993_v20 = vmul.f32 %v3015_v52, %v992_v53  ;;  %v1023_v53 = vld [vmem:[#allocation3 + $0xe8] sm:$0xff] }
 0x7ba   : > { %v994_v54 = vmul.f32 0.5, %v993_v20 }
 0x7bc   : > { %v995_v55 = vsub.f32 1.5, %v994_v54 }
 0x7be   : > { %v996_v56 = vmul.f32 %v3015_v52, %v995_v55 }
 0x7c0   : > { %v1000_v58 = vsel %vm999_vm11, %v3015_v52, %v996_v56 }
 0x7c1   : > { %v1001_v59 = vmul.f32 %v1000_v58, %v984_v33 }
 0x7c3   : > { %v1003_v61 = vmul.f32 %v1002_v57, %v1001_v59 }
 0x7c5   : > { %v3336_v62 = vadd.f32 %v1004_v60, %v1003_v61 }
 0x7c7   : > { %2877 = vmatmul.msk.f32.vlgmr.msra.gmra.mxu2 %vm460_vm2, %v3336_v62  ;;  %2878 = vmatmul.msk.f32.vlgmr.msrb.gmra.mxu3 %vm460_vm2, %v3336_v62 }
 0x7c8   : > { %2879 = vmatmul.msk.f32.vlgmr.msrb.gmra.mxu0 %vm460_vm2, %v3336_v62 }
 0x845   : > { %v1089_v4 = vpop.f32.mrf.mxu0 }
 0x846   : > { %v3352_v9 = vadd.f32 %v1089_v4, %v1071_v3  ;;  %v1022_v3 = vld [vmem:[#allocation3 + $0xe0] sm:$0xff]  ;;  %v1024_v4 = vld [vmem:[#allocation3 + $0xf0] sm:$0xff] }
 0x84a   : > { %v1047_v5 = vpop.f32.mrf.mxu2  ;;  %v1068_v6 = vpop.f32.mrf.mxu3 }
 0x84b   : > { %v1048_v7 = vadd.f32 %v1047_v5, %v1026_v0  ;;  %v1069_v8 = vadd.f32 %v1068_v6, %v1050_v1 }
 0x84d   : > { %1176 = vrot.lane.b32.xlu0 %v1069_v8, %s3126_s22  ;;  %1120 = vrot.lane.b32.xlu2 %v1069_v8, %s3127_s10 }
 0x84e   : > { %2880 = vmatpush.xpose.msk.msrb.mxu2 %vm526_vm3, %v1069_v8  ;;  %1146 = vrot.lane.b32.xlu1 %v1048_v7, %s3125_s21 }
 0x851   : > { %2881 = vmatmul.msk.f32.vlgmr.msrb.gmra.mxu2 %vm526_vm3, %v1048_v7 }
 0x852   : > { %1268 = vmatpush.msra.mxu2 %v3352_v9 }
 0x855   : > { %1118 = vrot.lane.b32.xlu2 %v1048_v7, %s3127_s10 }
 0x856   : > { %1274 = vrot.lane.b32.xlu1 %v3352_v9, %s3127_s10 }
 0x85d   : > { %1148 = vrot.lane.b32.xlu2 %v1069_v8, %s3125_s21 }
 0x865   : > { %1174 = vrot.lane.b32.xlu2 %v1048_v7, %s3126_s22 }
 0x8a7   : > { %v1121_v26 = vpop.permute.xlu2 %1120 }
 0x8a8   : > { %2882 = vmatpush.xpose.msk.msra.mxu3 %vm526_vm3, %v1121_v26 }
 0x8af   : > { %v1119_v10 = vpop.permute.xlu2 %1118 }
 0x8b0   : > { %2883 = vmatmul.msk.f32.vlgmr.msra.gmra.mxu3 %vm526_vm3, %v1119_v10  ;;  %v1025_v10 = vld [vmem:[#allocation3 + $0xf8] sm:$0xff] }
 0x8b7   : > { %v1149_v11 = vpop.permute.xlu2 %1148 }
 0x8b8   : > { %2884 = vmatpush.xpose.msk.msra.mxu0 %vm526_vm3, %v1149_v11 }
 0x8bc   : > { %1318 = vmatpush.msrb.mxu0 %v1023_v53 }
 0x8bf   : > { %v1177_v12 = vpop.permute.xlu0 %1176  ;;  %v1175_v14 = vpop.permute.xlu2 %1174 }
 0x8c0   : > { %v1147_v13 = vpop.permute.xlu1 %1146  ;;  %2886 = vmatpush.xpose.msk.msra.mxu1 %vm526_vm3, %v1177_v12 }
 0x8c1   : > { %2885 = vmatmul.msk.f32.vlgmr.msra.gmra.mxu0 %vm526_vm3, %v1147_v13 }
 0x8c3   : > { %2887 = vmatmul.msk.f32.vlgmr.msra.gmra.mxu1 %vm526_vm3, %v1175_v14 }
 0x8c4   : > { %1341 = vmatpush.msrb.mxu1 %v1022_v3 }
 0x8c6   : > { %1440 = vmatpush.msra.mxu1 %v1025_v10  ;;  %v2903_v10 = vld [vmem:[%s3678_s6 + $0x58] sm:$0xff] }
 0x8c8   : > { %v1275_v16 = vpop.permute.xlu1 %1274 }
 0x8c9   : > { %1295 = vmatpush.msrb.mxu3 %v1275_v16 }
 0x8cb   : > { %1390 = vmatpush.msra.mxu3 %v1024_v4  ;;  %v1471_v4 = vperm.slane %v3347_v63, 3 }
 0x8d4   : > { %v1115_v17 = vpop.f32.mrf.mxu2 }
 0x8d5   : > { %v1202_v18 = vmul.f32 0.35355338, %v1115_v17 }
 0x8d7   : > { %v1206_v21 = vsel %vm526_vm3, %v1202_v18, -inf }
 0x8d8   : > { %1207 = vmax.xlane.f32.xlu1 %v1206_v21 }
 0x933   : > { %v1143_v22 = vpop.f32.mrf.mxu3 }
 0x934   : > { %v1203_v23 = vmul.f32 0.35355338, %v1143_v22 }
 0x936   : > { %v1209_v24 = vsel %vm526_vm3, %v1203_v23, -inf }
 0x937   : > { %1210 = vmax.xlane.f32.xlu2 %v1209_v24 }
 0x93e   : > { %v1171_v25 = vpop.f32.mrf.mxu0 }
 0x93f   : > { %v1204_v27 = vmul.f32 0.35355338, %v1171_v25 }
 0x940   : > { %v1199_v29 = vpop.f32.mrf.mxu1 }
 0x941   : > { %v1212_v28 = vsel %vm526_vm3, %v1204_v27, -inf  ;;  %v1205_v30 = vmul.f32 0.35355338, %v1199_v29  ;;  %v1594_v29 = vld [vmem:[%s3674_s2] sm:$0xf] }
 0x942   : > { %1213 = vmax.xlane.f32.xlu2 %v1212_v28 }
 0x943   : > { %v1215_v31 = vsel %vm526_vm3, %v1205_v30, -inf }
 0x94a   : > { %1216 = vmax.xlane.f32.xlu2 %v1215_v31 }
 0x94b   : > { %v1208_v32 = vpop.xlane.xlu1 %1207 }
 0x94c   : > { %v1218_v35 = vsub.f32 %v1202_v18, %v1208_v32  ;;  %v1446_v18 = vperm.slane %v3347_v63, 2 }
 0x94e   : > { %v1222_v37 = vmul.f32 1.442695, %v1218_v35  ;;  %v2898_v35 = vld [vmem:[%s3677_s5 + $0x30] sm:$0xff] }
 0x9aa   : > { %v1211_v33 = vpop.xlane.xlu2 %1210 }
 0x9ab   : > { %v1219_v34 = vsub.f32 %v1203_v23, %v1211_v33  ;;  %v2899_v33 = vld [vmem:[%s3677_s5 + $0x38] sm:$0xff] }
 0x9ad   : > { %v1224_v36 = vmul.f32 1.442695, %v1219_v34  ;;  %v1629_v34 = vld [vmem:[#allocation3 + $0x118] sm:$0xff] }
 0x9af   : > { %3016 = vpow2.f32 %v1224_v36  ;;  %v1595_v36 = vperm.slane %v3220_v15, 1 }
 0x9b0   : > { %3018 = vpow2.f32 %v1222_v37  ;;  %v1628_v37 = vld [vmem:[#allocation3 + $0x110] sm:$0xff] }
 0x9b5   : > { %v3017_v38 = vpop.eup %3016  ;;  %v1214_v39 = vpop.xlane.xlu2 %1213 }
 0x9b6   : > { %v1220_v40 = vsub.f32 %v1204_v27, %v1214_v39  ;;  %v1233_v41 = vsel %vm526_vm3, %v3017_v38, 0.0  ;;  %v3019_v43 = vpop.eup %3018  ;;  %v1591_v27 = vrot.slane %v3212_v2, 4  ;;  %v2912_v39 = vld [vmem:[%s3675_s3 + $0x8] sm:$0xff] }
 0x9b7   : > { %1234 = vadd.xlane.f32.xlu0 %v1233_v41  ;;  %v1230_v46 = vsel %vm526_vm3, %v3019_v43, 0.0  ;;  %v1627_v41 = vld [vmem:[#allocation3 + $0x108] sm:$0xff] }
 0x9b8   : > { %v1226_v42 = vmul.f32 1.442695, %v1220_v40  ;;  %v1593_v28 = vsel %vm414_vm0, %v1591_v27, 0.0  ;;  %v2897_v40 = vld [vmem:[%s3677_s5 + $0x28] sm:$0xff] }
 0x9ba   : > { %3020 = vpow2.f32 %v1226_v42 }
 0x9bd   : > { %v1217_v44 = vpop.xlane.xlu2 %1216 }
 0x9be   : > { %v1221_v45 = vsub.f32 %v1205_v30, %v1217_v44  ;;  %v1626_v44 = vld [vmem:[#allocation3 + $0x100] sm:$0xff] }
 0x9bf   : > { %1231 = vadd.xlane.f32.xlu0 %v1230_v46  ;;  %v1639_v46 = vld [vmem:[#allocation3 + $0x158] sm:$0xff] }
 0x9c0   : > { %v3021_v47 = vpop.eup %3020  ;;  %v1228_v48 = vmul.f32 1.442695, %v1221_v45  ;;  %v1634_v45 = vld [vmem:[#allocation3 + $0x138] sm:$0xff] }
 0x9c1   : > { %v1236_v50 = vsel %vm526_vm3, %v3021_v47, 0.0 }
 0x9c2   : > { %3022 = vpow2.f32 %v1228_v48  ;;  %1237 = vadd.xlane.f32.xlu2 %v1236_v50  ;;  %v1638_v48 = vld [vmem:[#allocation3 + $0x150] sm:$0xff]  ;;  %v1632_v50 = vld [vmem:[#allocation3 + $0x128] sm:$0xff] }
 0x9c8   : > { %v3023_v51 = vpop.eup %3022 }
 0x9c9   : > { %v1239_v52 = vsel %vm526_vm3, %v3023_v51, 0.0 }
 0x9ca   : > { %1240 = vadd.xlane.f32.xlu1 %v1239_v52  ;;  %v1637_v52 = vld [vmem:[#allocation3 + $0x148] sm:$0xff] }
 0x9d3   : > { %1346 = vrot.lane.b32.xlu0 %v3352_v9, %s3125_s21 }
 0x9da   : > { %1396 = vrot.lane.b32.xlu2 %v3352_v9, %s3126_s22 }
 0xa2a   : > { %v1235_v20 = vpop.xlane.xlu0 %1234 }
 0xa2b   : > { %3024 = vrcp.f32 %v1235_v20  ;;  %v1631_v20 = vld [vmem:[#allocation3 + $0x120] sm:$0xff] }
 0xa31   : > { %v3025_v54 = vpop.eup %3024 }
 0xa32   : > { %v1247_v55 = vmul.f32 %v3025_v54, %v3017_v38  ;;  %v1232_v56 = vpop.xlane.xlu0 %1231  ;;  %v1636_v54 = vld [vmem:[#allocation3 + $0x140] sm:$0xff] }
 0xa33   : > { %3026 = vrcp.f32 %v1232_v56  ;;  %v2907_v56 = vld [vmem:[%s3678_s6 + $0x78] sm:$0xff] }
 0xa34   : > { %2889 = vmatmul.msk.f32.vlgmr.msrb.gmra.mxu3 %vm526_vm3, %v1247_v55 }
 0xa35   : > { %v1238_v57 = vpop.xlane.xlu2 %1237  ;;  %1526 = vmatpush.msrb.mxu3 %v2907_v56 }
 0xa36   : > { %3028 = vrcp.f32 %v1238_v57  ;;  %v2906_v57 = vld [vmem:[%s3678_s6 + $0x70] sm:$0xff] }
 0xa37   : > { %1527 = vmatpush.msrb.mxu3 %v2906_v57 }
 0xa39   : > { %v3027_v58 = vpop.eup %3026 }
 0xa3a   : > { %v1246_v59 = vmul.f32 %v3027_v58, %v3019_v43  ;;  %v2896_v43 = vld [vmem:[%s3677_s5 + $0x20] sm:$0xff]  ;;  %v2905_v58 = vld [vmem:[%s3678_s6 + $0x68] sm:$0xff] }
 0xa3b   : > { %1528 = vmatpush.msrb.mxu3 %v2905_v58 }
 0xa3c   : > { %2888 = vmatmul.msk.f32.vlgmr.msra.gmra.mxu2 %vm526_vm3, %v1246_v59  ;;  %v3029_v61 = vpop.eup %3028 }
 0xa3d   : > { %v1397_v60 = vpop.permute.xlu2 %1396  ;;  %v1248_v0 = vmul.f32 %v3029_v61, %v3021_v47  ;;  %v1241_v5 = vpop.xlane.xlu1 %1240  ;;  %v1633_v47 = vld [vmem:[#allocation3 + $0x130] sm:$0xff] }
 0xa3e   : > { %1417 = vmatpush.msra.mxu0 %v1397_v60  ;;  %3030 = vrcp.f32 %v1241_v5 }
 0xa44   : > { %v3031_v7 = vpop.eup %3030 }
 0xa45   : > { %v1347_v1 = vpop.permute.xlu0 %1346  ;;  %v1249_v8 = vmul.f32 %v3031_v7, %v3023_v51  ;;  %v1473_v7 = vperm.slane %v3347_v63, 4 }
 0xa46   : > { %1367 = vmatpush.msrb.mxu2 %v1347_v1 }
 0xa47   : > { %2892 = vmatmul.msk.f32.vlgmr.msrb.gmra.mxu2 %vm526_vm3, %v1248_v0 }
 0xa48   : > { %1505 = vmatpush.msra.mxu2 %v2899_v33 }
 0xa4a   : > { %1506 = vmatpush.msra.mxu2 %v2898_v35 }
 0xa4c   : > { %1507 = vmatpush.msra.mxu2 %v2897_v40 }
 0xa4e   : > { %1508 = vmatpush.msra.mxu2 %v2896_v43 }
 0xa50   : > { %1682 = vmatpush.msrb.mxu2 %v1634_v45 }
 0xa52   : > { %1683 = vmatpush.msrb.mxu2 %v1633_v47 }
 0xa54   : > { %1684 = vmatpush.msrb.mxu2 %v1632_v50 }
 0xa56   : > { %1685 = vmatpush.msrb.mxu2 %v1631_v20 }
 0xab7   : > { %v1297_v6 = vpop.f32.mrf.mxu3 }
 0xab8   : > { %2890 = vmatmul.msk.f32.vlgmr.msrb.gmra.mxu0 %vm526_vm3, %v1297_v6 }
 0xab9   : > { %2910 = vmatpush.msk.msrb.mxu0 %vm414_vm0, %v1594_v29 }
 0xabf   : > { %v1270_v9 = vpop.f32.mrf.mxu2 }
 0xac0   : > { %2891 = vmatmul.msk.f32.vlgmr.msrb.gmra.mxu1 %vm526_vm3, %v1270_v9  ;;  %2894 = vmatmul.msk.f32.vlgmr.msra.gmra.mxu0 %vm526_vm3, %v1249_v8 }
 0xac1   : > { %1661 = vmatpush.msrb.mxu1 %v1629_v34  ;;  %1703 = vmatpush.msra.mxu0 %v1639_v46 }
 0xac3   : > { %1662 = vmatpush.msrb.mxu1 %v1628_v37  ;;  %1704 = vmatpush.msra.mxu0 %v1638_v48 }
 0xac5   : > { %1663 = vmatpush.msrb.mxu1 %v1627_v41  ;;  %1705 = vmatpush.msra.mxu0 %v1637_v52 }
 0xac7   : > { %1664 = vmatpush.msrb.mxu1 %v1626_v44  ;;  %1706 = vmatpush.msra.mxu0 %v1636_v54 }
 0xac8   : > { %2911 = vmatmul.msk.f32.vlgmr.msrb.gmra.mxu0 %vm410_vm1, %v1593_v28 }
 0xaca   : > { %v1369_v26 = vpop.f32.mrf.mxu2 }
 0xacb   : > { %2893 = vmatmul.msk.f32.vlgmr.msra.gmra.mxu3 %vm526_vm3, %v1369_v26  ;;  %v2904_v26 = vld [vmem:[%s3678_s6 + $0x60] sm:$0xff] }
 0xacc   : > { %1529 = vmatpush.msrb.mxu3 %v2904_v26 }
 0xace   : > { %1530 = vmatpush.msrb.mxu3 %v2903_v10 }
 0xb35   : > { %v1320_v11 = vpop.f32.mrf.mxu0 }
 0xb3d   : > { %v1419_v12 = vpop.f32.mrf.mxu0  ;;  %v1343_v13 = vpop.f32.mrf.mxu1 }
 0xb3e   : > { %2895 = vmatmul.msk.f32.vlgmr.msra.gmra.mxu1 %vm526_vm3, %v1419_v12  ;;  %v1344_v16 = vadd.f32 %v1343_v13, %v1320_v11  ;;  %v3457_v11 = vld [vmem:[%s3679_s7 + $0x18] sm:$0xff] }
 0xb3f   : > { %v1645_v12 = vperm.slane %v3457_v11, 0  ;;  %v1669_v29 = vperm.slane %v3457_v11, 1 }
 0xb45   : > { %v1619_v38 = vpop.f32.mrf.mxu0 }
 0xb46   : > { %v1620_v42 = vadd.f32 %v1619_v38, %v1595_v36 }
 0xb48   : > { %v3423_v15 = vadd.f32 %v2912_v39, %v1620_v42 }
 0xb4a   : > { %2913 = vmatmul.msk.f32.vlgmr.msrb.gmra.mxu1 %vm460_vm2, %v3423_v15  ;;  %2915 = vmatmul.msk.f32.vlgmr.msra.gmra.mxu0 %vm460_vm2, %v3423_v15 }
 0xb4e   : > { %v1392_v14 = vpop.f32.mrf.mxu3 }
 0xb4f   : > { %v1395_v17 = vadd.f32 %v1392_v14, %v1344_v16  ;;  %v2902_v16 = vld [vmem:[%s3678_s6 + $0x50] sm:$0xff] }
 0xb50   : > { %1531 = vmatpush.msrb.mxu3 %v2902_v16 }
 0xbbb   : > { %v1442_v21 = vpop.f32.mrf.mxu1 }
 0xbbc   : > { %v1445_v22 = vadd.f32 %v1442_v21, %v1395_v17  ;;  %v2901_v17 = vld [vmem:[%s3678_s6 + $0x48] sm:$0xff] }
 0xbbd   : > { %1532 = vmatpush.msrb.mxu3 %v2901_v17 }
 0xbbe   : > { %v1447_v23 = vadd.f32 %v1446_v18, %v1445_v22  ;;  %v1690_v18 = vperm.slane %v3457_v11, 2  ;;  %v2900_v22 = vld [vmem:[%s3678_s6 + $0x40] sm:$0xff] }
 0xbbf   : > { %1533 = vmatpush.msrb.mxu3 %v2900_v22 }
 0xbc0   : > { %v1448_v24 = vadd.f32 %v1447_v23, %v3336_v62 }
 0xbc2   : > { %v1449_v25 = vsel %vm460_vm2, %v1448_v24, 0.0 }
 0xbc3   : > { %1450 = vadd.xlane.f32.xlu1 %v1449_v25 }
 0xbc7   : > { %v1666_v13 = vpop.f32.mrf.mxu1  ;;  %v1708_v21 = vpop.f32.mrf.mxu0 }
 0xbc8   : > { %v1667_v14 = vadd.f32 %v1666_v13, %v1645_v12  ;;  %v3472_v23 = vadd.f32 %v1708_v21, %v1690_v18  ;;  %v1514_v13 = vperm.slane %v3347_v63, 5 }
 0xbca   : > { %1765 = vrot.lane.b32.xlu2 %v1667_v14, %s3125_s21 }
 0xbd2   : > { %1793 = vrot.lane.b32.xlu2 %v1667_v14, %s3126_s22 }
 0xc24   : > { %v1766_v35 = vpop.permute.xlu2 %1765 }
 0xc2c   : > { %v1794_v43 = vpop.permute.xlu2 %1793 }
 0xc36   : > { %v1451_v30 = vpop.xlane.xlu1 %1450 }
 0xc37   : > { %v1452_v31 = vmul.f32 %v1451_v30, %v3278_v49 }
 0xc39   : > { %v3402_v32 = vsub.f32 %v1448_v24, %v1452_v31  ;;  %v1489_v24 = vperm.slane %v3325_v19, 1 }
 0xc3b   : > { %v1454_v62 = vmul.f32 %v3402_v32, %v3402_v32 }
 0xc3d   : > { %v1455_v2 = vsel %vm460_vm2, %v1454_v62, 0.0 }
 0xc3e   : > { %1456 = vadd.xlane.f32.xlu1 %v1455_v2  ;;  %v1825_v2 = vlaneseq }
 0xc40   : > { %v1826_v33 = vshrl.u32 %v1825_v2, 7  ;;  %v1879_v37 = vand.u32 127, %v1825_v2 }
 0xc42   : > { %v1834_v36 = vand.u32 7, %v1826_v33  ;;  %v1827_v44 = vadd.s32 8, %v1826_v33  ;;  %v1829_v48 = vadd.s32 24, %v1826_v33 }
 0xc44   : > { %vm1880_vm15 = vcmp.gt.s32.totalorder %v1879_v37, %v1834_v36  ;;  %v1841_v45 = vand.u32 7, %v1827_v44  ;;  %v1855_v52 = vand.u32 7, %v1829_v48 }
 0xc46   : > { %vm1881_vm0 = vcmp.gt.s32.totalorder %v1879_v37, %v1841_v45  ;;  %vm1883_vm1 = vcmp.gt.s32.totalorder %v1879_v37, %v1855_v52 }
 0xc57   : > { %1737 = vrot.lane.b32.xlu1 %v1667_v14, %s3127_s10 }
 0xc5f   : > { %1956 = vrot.lane.b32.xlu1 %v3472_v23, %s3127_s10 }
 0xcb1   : > { %v1457_v51 = vpop.xlane.xlu1 %1456 }
 0xcb2   : > { %v1458_v53 = vmul.f32 %v1457_v51, %v3278_v49 }
 0xcb4   : > { %v1459_v55 = vadd.f32 1e-05, %v1458_v53 }
 0xcb6   : > { %3032 = vrsqrt.f32 %v1459_v55  ;;  %vm1466_vm13 = vweird.f32 %v1459_v55 }
 0xcbc   : > { %v3033_v59 = vpop.eup %3032 }
 0xcbd   : > { %v1461_v60 = vmul.f32 %v3033_v59, %v1459_v55  ;;  %vm1467_vm12 = vweird.f32 %v3033_v59 }
 0xcbe   : > { %vm1468_vm14 = vmor %vm1466_vm13, %vm1467_vm12 }
 0xcbf   : > { %v1462_v61 = vmul.f32 %v3033_v59, %v1461_v60  ;;  %v1828_v60 = vadd.s32 16, %v1826_v33 }
 0xcc1   : > { %v1463_v0 = vmul.f32 0.5, %v1462_v61 }
 0xcc3   : > { %v1464_v1 = vsub.f32 1.5, %v1463_v0 }
 0xcc5   : > { %v1465_v3 = vmul.f32 %v3033_v59, %v1464_v1 }
 0xcc7   : > { %v1469_v5 = vsel %vm1468_vm14, %v3033_v59, %v1465_v3  ;;  %v1848_v3 = vand.u32 7, %v1828_v60 }
 0xcc8   : > { %v1470_v6 = vmul.f32 %v1469_v5, %v3402_v32 }
 0xcc9   : > { %v1738_v19 = vpop.permute.xlu1 %1737  ;;  %vm1882_vm4 = vcmp.gt.s32.totalorder %v1879_v37, %v1848_v3 }
 0xcca   : > { %v1472_v8 = vmul.f32 %v1471_v4, %v1470_v6 }
 0xccc   : > { %v3442_v9 = vadd.f32 %v1473_v7, %v1472_v8 }
 0xcce   : > { %2908 = vmatmul.msk.f32.vlgmr.msra.gmra.mxu2 %vm460_vm2, %v3442_v9 }
 0xcd1   : > { %v1957_v62 = vpop.permute.xlu1 %1956 }
 0xcd6   : > { %2914 = vmatmul.msk.f32.vlgmr.msrb.gmra.mxu2 %vm460_vm2, %v3423_v15 }
 0xd51   : > { %v1510_v25 = vpop.f32.mrf.mxu2 }
 0xd52   : > { %v1511_v27 = vadd.f32 %v1510_v25, %v1489_v24 }
 0xd54   : > { %v1513_v28 = vmax.f32 %v1511_v27, 0.0 }
 0xd56   : > { %2909 = vmatmul.msk.f32.vlgmr.msrb.gmra.mxu3 %vm955_vm8, %v1513_v28 }
 0xd59   : > { %v1687_v30 = vpop.f32.mrf.mxu2 }
 0xd5a   : > { %v1688_v31 = vadd.f32 %v1687_v30, %v1669_v29 }
 0xd5c   : > { %1739 = vrot.lane.b32.xlu0 %v1688_v31, %s3127_s10  ;;  %2916 = vmatpush.xpose.msk.msra.mxu1 %vm526_vm3, %v1688_v31 }
 0xd5f   : > { %2917 = vmatmul.msk.f32.vlgmr.msra.gmra.mxu1 %vm526_vm3, %v1667_v14 }
 0xd60   : > { %1950 = vmatpush.msrb.mxu1 %v3472_v23 }
 0xd64   : > { %1767 = vrot.lane.b32.xlu0 %v1688_v31, %s3125_s21 }
 0xd6c   : > { %1795 = vrot.lane.b32.xlu0 %v1688_v31, %s3126_s22 }
 0xdce   : > { %v1740_v32 = vpop.permute.xlu0 %1739 }
 0xdcf   : > { %2918 = vmatpush.xpose.msk.msra.mxu2 %vm526_vm3, %v1740_v32 }
 0xdd2   : > { %2919 = vmatmul.msk.f32.vlgmr.msra.gmra.mxu2 %vm526_vm3, %v1738_v19 }
 0xdd3   : > { %1977 = vmatpush.msrb.mxu2 %v1957_v62 }
 0xdd6   : > { %v1768_v34 = vpop.permute.xlu0 %1767 }
 0xdd7   : > { %2920 = vmatpush.xpose.msk.msra.mxu3 %vm526_vm3, %v1768_v34 }
 0xdd9   : > { %v1535_v58 = vpop.f32.mrf.mxu3 }
 0xdda   : > { %2921 = vmatmul.msk.f32.vlgmr.msra.gmra.mxu3 %vm526_vm3, %v1766_v35  ;;  %v1536_v17 = vadd.f32 %v1535_v58, %v1514_v13 }
 0xddc   : > { %v1734_v38 = vpop.f32.mrf.mxu1  ;;  %v1538_v22 = vadd.f32 %v1536_v17, %v3442_v9  ;;  %v2171_v17 = vld [vmem:[#allocation3 + $0x1d8] sm:$0xff] }
 0xddd   : > { %v1821_v39 = vmul.f32 0.35355338, %v1734_v38 }
 0xdde   : > { %v1796_v40 = vpop.permute.xlu0 %1795  ;;  %v1539_v25 = vsel %vm460_vm2, %v1538_v22, 0.0 }
 0xddf   : > { %2922 = vmatpush.xpose.msk.msrb.mxu0 %vm526_vm3, %v1796_v40  ;;  %v1884_v41 = vsel %vm1880_vm15, -1e+30, %v1821_v39 }
 0xde0   : > { %v1888_v42 = vsel %vm526_vm3, %v1884_v41, -inf }
 0xde1   : > { %1889 = vmax.xlane.f32.xlu1 %v1888_v42  ;;  %v1641_v42 = vld [vmem:[#allocation3 + $0x160] sm:$0xff] }
 0xde2   : > { %2923 = vmatmul.msk.f32.vlgmr.msrb.gmra.mxu0 %vm526_vm3, %v1794_v43 }
 0xde3   : > { %2023 = vmatpush.msra.mxu0 %v1641_v42 }
 0xe54   : > { %v1890_v61 = vpop.xlane.xlu1 %1889 }
 0xe55   : > { %v1762_v46 = vpop.f32.mrf.mxu2  ;;  %v1900_v5 = vsub.f32 %v1884_v41, %v1890_v61  ;;  %v1642_v41 = vld [vmem:[#allocation3 + $0x168] sm:$0xff] }
 0xe56   : > { %v1822_v47 = vmul.f32 0.35355338, %v1762_v46  ;;  %2000 = vmatpush.msrb.mxu3 %v1642_v41 }
 0xe57   : > { %v1904_v10 = vmul.f32 1.442695, %v1900_v5  ;;  %v1643_v5 = vld [vmem:[#allocation3 + $0x170] sm:$0xff] }
 0xe58   : > { %v1885_v50 = vsel %vm1881_vm0, -1e+30, %v1822_v47  ;;  %2072 = vmatpush.msra.mxu2 %v1643_v5 }
 0xe59   : > { %v1891_v51 = vsel %vm526_vm3, %v1885_v50, -inf }
 0xe5a   : > { %1892 = vmax.xlane.f32.xlu0 %v1891_v51 }
 0xe5d   : > { %v1790_v0 = vpop.f32.mrf.mxu3 }
 0xe5e   : > { %v1823_v8 = vmul.f32 0.35355338, %v1790_v0  ;;  %v1563_v0 = vperm.slane %v3347_v63, 7 }
 0xe5f   : > { %v1818_v53 = vpop.f32.mrf.mxu0 }
 0xe60   : > { %v1824_v20 = vmul.f32 0.35355338, %v1818_v53  ;;  %v1886_v12 = vsel %vm1882_vm4, -1e+30, %v1823_v8 }
 0xe61   : > { %v1894_v14 = vsel %vm526_vm3, %v1886_v12, -inf }
 0xe62   : > { %v1887_v54 = vsel %vm1883_vm1, -1e+30, %v1824_v20 }
 0xe63   : > { %v1897_v55 = vsel %vm526_vm3, %v1887_v54, -inf }
 0xe64   : > { %1898 = vmax.xlane.f32.xlu0 %v1897_v55 }
 0xecd   : > { %v1893_v56 = vpop.xlane.xlu0 %1892 }
 0xece   : > { %v1901_v57 = vsub.f32 %v1885_v50, %v1893_v56 }
 0xed0   : > { %v1906_v59 = vmul.f32 1.442695, %v1901_v57 }
 0xed2   : > { %3034 = vpow2.f32 %v1906_v59  ;;  %v1561_v59 = vperm.slane %v3347_v63, 6 }
 0xed7   : > { %v1899_v1 = vpop.xlane.xlu0 %1898 }
 0xed8   : > { %v3035_v4 = vpop.eup %3034  ;;  %v1903_v6 = vsub.f32 %v1887_v54, %v1899_v1 }
 0xed9   : > { %v1915_v7 = vsel %vm526_vm3, %v3035_v4, 0.0 }
 0xeda   : > { %v1910_v26 = vmul.f32 1.442695, %v1903_v6  ;;  %1916 = vadd.xlane.f32.xlu2 %v1915_v7  ;;  %v1644_v6 = vld [vmem:[#allocation3 + $0x178] sm:$0xff] }
 0xedb   : > { %2122 = vmatpush.msrb.mxu0 %v1644_v6 }
 0xedc   : > { %3036 = vpow2.f32 %v1910_v26 }
 0xedd   : > { %3038 = vpow2.f32 %v1904_v10 }
 0xee2   : > { %v3037_v16 = vpop.eup %3036  ;;  %1895 = vmax.xlane.f32.xlu2 %v1894_v14 }
 0xee3   : > { %v1921_v18 = vsel %vm526_vm3, %v3037_v16, 0.0  ;;  %v3039_v21 = vpop.eup %3038 }
 0xee4   : > { %1922 = vadd.xlane.f32.xlu1 %v1921_v18  ;;  %v1912_v24 = vsel %vm526_vm3, %v3039_v21, 0.0  ;;  %v2165_v18 = vld [vmem:[#allocation3 + $0x1b0] sm:$0xff] }
 0xeea   : > { %1913 = vadd.xlane.f32.xlu2 %v1912_v24  ;;  %v2169_v24 = vld [vmem:[#allocation3 + $0x1c8] sm:$0xff] }
 0xeec   : > { %1540 = vadd.xlane.f32.xlu1 %v1539_v25  ;;  %v2163_v25 = vld [vmem:[#allocation3 + $0x1a0] sm:$0xff] }
 0xf02   : > { %2028 = vrot.lane.b32.xlu2 %v3472_v23, %s3125_s21 }
 0xf4d   : > { %v1917_v27 = vpop.xlane.xlu2 %1916 }
 0xf4e   : > { %3040 = vrcp.f32 %v1917_v27  ;;  %v2168_v27 = vld [vmem:[#allocation3 + $0x1c0] sm:$0xff] }
 0xf54   : > { %v3041_v28 = vpop.eup %3040 }
 0xf55   : > { %v1929_v29 = vmul.f32 %v3041_v28, %v3035_v4  ;;  %v1896_v30 = vpop.xlane.xlu2 %1895 }
 0xf56   : > { %v1902_v31 = vsub.f32 %v1886_v12, %v1896_v30 }
 0xf57   : > { %2925 = vmatmul.msk.f32.vlgmr.msrb.gmra.mxu2 %vm526_vm3, %v1929_v29  ;;  %v1923_v19 = vpop.xlane.xlu1 %1922 }
 0xf58   : > { %v1908_v32 = vmul.f32 1.442695, %v1902_v31 }
 0xf5a   : > { %3042 = vpow2.f32 %v1908_v32 }
 0xf5d   : > { %v1914_v9 = vpop.xlane.xlu2 %1913 }
 0xf5e   : > { %3044 = vrcp.f32 %v1914_v9 }
 0xf5f   : > { %v1541_v62 = vpop.xlane.xlu1 %1540 }
 0xf60   : > { %v3043_v2 = vpop.eup %3042  ;;  %v1542_v33 = vmul.f32 %v1541_v62, %v3278_v49  ;;  %v2128_v62 = vperm.slane %v3457_v11, 3 }
 0xf61   : > { %v1918_v34 = vsel %vm526_vm3, %v3043_v2, 0.0 }
 0xf62   : > { %v1543_v35 = vsub.f32 %v1538_v22, %v1542_v33  ;;  %1919 = vadd.xlane.f32.xlu0 %v1918_v34  ;;  %v2164_v22 = vld [vmem:[#allocation3 + $0x1a8] sm:$0xff] }
 0xf64   : > { %v3045_v36 = vpop.eup %3044  ;;  %v1544_v37 = vmul.f32 %v1543_v35, %v1543_v35 }
 0xf65   : > { %v1928_v38 = vmul.f32 %v3045_v36, %v3039_v21  ;;  %v2029_v39 = vpop.permute.xlu2 %2028  ;;  %v2170_v21 = vld [vmem:[#allocation3 + $0x1d0] sm:$0xff] }
 0xf66   : > { %2049 = vmatpush.msra.mxu1 %v2029_v39  ;;  %v1545_v40 = vsel %vm460_vm2, %v1544_v37, 0.0 }
 0xf67   : > { %2924 = vmatmul.msk.f32.vlgmr.msrb.gmra.mxu1 %vm526_vm3, %v1928_v38  ;;  %1546 = vadd.xlane.f32.xlu1 %v1545_v40 }
 0xf76   : > { %2078 = vrot.lane.b32.xlu0 %v3472_v23, %s3126_s22 }
 0xfd5   : > { %v1920_v43 = vpop.xlane.xlu0 %1919 }
 0xfd6   : > { %3046 = vrcp.f32 %v1920_v43  ;;  %v3530_v43 = vld [vmem:[%s3679_s7] sm:$0xff] }
 0xfd7   : > { %3048 = vrcp.f32 %v1923_v19 }
 0xfda   : > { %v1979_v44 = vpop.f32.mrf.mxu2  ;;  %v1547_v45 = vpop.xlane.xlu1 %1546 }
 0xfdb   : > { %v1548_v46 = vmul.f32 %v1547_v45, %v3278_v49  ;;  %2926 = vmatmul.msk.f32.vlgmr.msrb.gmra.mxu3 %vm526_vm3, %v1979_v44  ;;  %v1587_v44 = vperm.slane %v3530_v43, 2 }
 0xfdc   : > { %v3047_v47 = vpop.eup %3046 }
 0xfdd   : > { %v1930_v48 = vmul.f32 %v3047_v47, %v3043_v2  ;;  %v1549_v50 = vadd.f32 1e-05, %v1548_v46  ;;  %v3049_v23 = vpop.eup %3048  ;;  %v1589_v46 = vperm.slane %v3530_v43, 3 }
 0xfde   : > { %v1931_v20 = vmul.f32 %v3049_v23, %v3037_v16  ;;  %v2166_v16 = vld [vmem:[#allocation3 + $0x1b8] sm:$0xff] }
 0xfdf   : > { %3050 = vrsqrt.f32 %v1549_v50  ;;  %2928 = vmatmul.msk.f32.vlgmr.msra.gmra.mxu1 %vm526_vm3, %v1930_v48  ;;  %vm1556_vm6 = vweird.f32 %v1549_v50  ;;  %2217 = vmatpush.msrb.mxu2 %v2166_v16  ;;  %v2155_v16 = vperm.slane %v3457_v11, 5 }
 0xfe1   : > { %2218 = vmatpush.msrb.mxu2 %v2165_v18 }
 0xfe3   : > { %2219 = vmatpush.msrb.mxu2 %v2164_v22 }
 0xfe4   : > { %v1952_v51 = vpop.f32.mrf.mxu1 }
 0xfe5   : > { %v3051_v52 = vpop.eup %3050  ;;  %2927 = vmatmul.msk.f32.vlgmr.msra.gmra.mxu0 %vm526_vm3, %v1952_v51  ;;  %2220 = vmatpush.msrb.mxu2 %v2163_v25  ;;  %v2177_v25 = vperm.slane %v3457_v11, 6 }
 0xfe6   : > { %v1551_v53 = vmul.f32 %v3051_v52, %v1549_v50  ;;  %vm1557_vm5 = vweird.f32 %v3051_v52 }
 0xfe7   : > { %vm1558_vm7 = vmor %vm1556_vm6, %vm1557_vm5  ;;  %vm2719_vm5 = vcmask 261124  }
 0xfe8   : > { %v1552_v54 = vmul.f32 %v3051_v52, %v1551_v53  ;;  %v2079_v55 = vpop.permute.xlu0 %2078 }
 0xfe9   : > { %2099 = vmatpush.msra.mxu3 %v2079_v55 }
 0xfea   : > { %v1553_v56 = vmul.f32 0.5, %v1552_v54  ;;  %2930 = vmatmul.msk.f32.vlgmr.msra.gmra.mxu3 %vm526_vm3, %v1931_v20  ;;  %v3541_v20 = vld [vmem:[%s3679_s7 + $0x20] sm:$0x7f]  ;;  %v2201_v54 = vperm.slane %v3457_v11, 7 }
 0xfeb   : > { %2238 = vmatpush.msrb.mxu3 %v2171_v17  ;;  %v2225_v55 = vperm.slane %v3541_v20, 0 }
 0xfec   : > { %v1554_v57 = vsub.f32 1.5, %v1553_v56 }
 0xfed   : > { %2239 = vmatpush.msrb.mxu3 %v2170_v21 }
 0xfee   : > { %v1555_v58 = vmul.f32 %v3051_v52, %v1554_v57 }
 0xfef   : > { %2240 = vmatpush.msrb.mxu3 %v2169_v24 }
 0xff0   : > { %v1559_v60 = vsel %vm1558_vm7, %v3051_v52, %v1555_v58 }
 0xff1   : > { %v1560_v61 = vmul.f32 %v1559_v60, %v1543_v35  ;;  %2241 = vmatpush.msrb.mxu3 %v2168_v27  ;;  %v2161_v60 = vld [vmem:[#allocation3 + $0x198] sm:$0xff] }
 0xff2   : > { %2193 = vmatpush.msrb.mxu1 %v2161_v60  ;;  %v2174_v60 = vld [vmem:[#allocation3 + $0x1e8] sm:$0xff] }
 0xff3   : > { %v1562_v1 = vmul.f32 %v1561_v59, %v1560_v61  ;;  %v2160_v61 = vld [vmem:[#allocation3 + $0x190] sm:$0xff] }
 0xff4   : > { %2194 = vmatpush.msrb.mxu1 %v2160_v61 }
 0xff5   : > { %v1564_v3 = vadd.f32 %v1563_v0, %v1562_v1  ;;  %v2159_v0 = vld [vmem:[#allocation3 + $0x188] sm:$0xff]  ;;  %v2158_v1 = vld [vmem:[#allocation3 + $0x180] sm:$0xff] }
 0xff6   : > { %2195 = vmatpush.msrb.mxu1 %v2159_v0 }
 0xff7   : > { %v1565_v4 = vsel %vm460_vm2, %v1564_v3, 0.0 }
 0xff8   : > { %1566 = vadd.xlane.f32.xlu0 %v1565_v4  ;;  %2196 = vmatpush.msrb.mxu1 %v2158_v1 }
0x105c   : > { %v2051_v7 = vpop.f32.mrf.mxu1 }
0x105d   : > { %2929 = vmatmul.msk.f32.vlgmr.msra.gmra.mxu2 %vm526_vm3, %v2051_v7 }
0x105e   : > { %v2002_v8 = vpop.f32.mrf.mxu3 }
0x1062   : > { %v2025_v28 = vpop.f32.mrf.mxu0 }
0x1063   : > { %v2026_v19 = vadd.f32 %v2025_v28, %v2002_v8 }
0x106b   : > { %v1567_v26 = vpop.xlane.xlu0 %1566 }
0x106c   : > { %v1568_v10 = vmul.f32 %v1567_v26, %v3278_v49 }
0x106d   : > { %v2101_v12 = vpop.f32.mrf.mxu3 }
0x106e   : > { %v1569_v13 = vsub.f32 %v1564_v3, %v1568_v10  ;;  %2931 = vmatmul.msk.f32.vlgmr.msrb.gmra.mxu0 %vm526_vm3, %v2101_v12 }
0x1070   : > { %v1570_v63 = vmul.f32 %v1569_v13, %v1569_v13 }
0x1072   : > { %v1571_v14 = vsel %vm460_vm2, %v1570_v63, 0.0 }
0x1073   : > { %1572 = vadd.xlane.f32.xlu2 %v1571_v14 }
0x10e0   : > { %v2074_v30 = vpop.f32.mrf.mxu2 }
0x10e1   : > { %v2077_v9 = vadd.f32 %v2074_v30, %v2026_v19 }
0x10e6   : > { %v1573_v29 = vpop.xlane.xlu2 %1572 }
0x10e7   : > { %v1574_v31 = vmul.f32 %v1573_v29, %v3278_v49 }
0x10e9   : > { %v1575_v32 = vadd.f32 1e-05, %v1574_v31 }
0x10eb   : > { %3052 = vrsqrt.f32 %v1575_v32  ;;  %v2124_v2 = vpop.f32.mrf.mxu0  ;;  %vm1582_vm10 = vweird.f32 %v1575_v32 }
0x10ec   : > { %v2127_v33 = vadd.f32 %v2124_v2, %v2077_v9 }
0x10ee   : > { %v2129_v34 = vadd.f32 %v2128_v62, %v2127_v33 }
0x10f0   : > { %v2130_v35 = vadd.f32 %v2129_v34, %v3423_v15 }
0x10f1   : > { %v3053_v36 = vpop.eup %3052 }
0x10f2   : > { %v1577_v37 = vmul.f32 %v3053_v36, %v1575_v32  ;;  %v2131_v38 = vsel %vm460_vm2, %v2130_v35, 0.0  ;;  %vm1583_vm9 = vweird.f32 %v3053_v36 }
0x10f3   : > { %2132 = vadd.xlane.f32.xlu1 %v2131_v38  ;;  %vm1584_vm11 = vmor %vm1582_vm10, %vm1583_vm9  ;;  %vm2778_vm10 = vcmask 3072  }
0x10f4   : > { %v1578_v39 = vmul.f32 %v3053_v36, %v1577_v37 }
0x10f6   : > { %v1579_v40 = vmul.f32 0.5, %v1578_v39 }
0x10f8   : > { %v1580_v41 = vsub.f32 1.5, %v1579_v40 }
0x10fa   : > { %v1581_v42 = vmul.f32 %v3053_v36, %v1580_v41 }
0x10fc   : > { %v1585_v15 = vsel %vm1584_vm11, %v3053_v36, %v1581_v42 }
0x10fd   : > { %v1586_v45 = vmul.f32 %v1585_v15, %v1569_v13  ;;  %v2153_v13 = vperm.slane %v3457_v11, 4 }
0x10ff   : > { %v1588_v47 = vmul.f32 %v1587_v44, %v1586_v45 }
0x1101   : > { %v1590_v48 = vadd.f32 %v1589_v46, %v1588_v47 }
0x1103   : > { %2933 = vmatmul.msk.f32.vlgmr.msrb.gmra.mxu2 %vm460_vm2, %v1590_v48  ;;  %2934 = vmatmul.msk.f32.vlgmr.msrb.gmra.mxu3 %vm460_vm2, %v1590_v48 }
0x1166   : > { %v2133_v50 = vpop.xlane.xlu1 %2132 }
0x1167   : > { %v2134_v23 = vmul.f32 %v2133_v50, %v3278_v49 }
0x1169   : > { %v2135_v51 = vsub.f32 %v2130_v35, %v2134_v23 }
0x116b   : > { %v2136_v52 = vmul.f32 %v2135_v51, %v2135_v51 }
0x116d   : > { %v2137_v53 = vsel %vm460_vm2, %v2136_v52, 0.0 }
0x116e   : > { %2138 = vadd.xlane.f32.xlu1 %v2137_v53 }
0x1186   : > { %v2222_v56 = vpop.f32.mrf.mxu2  ;;  %v2243_v57 = vpop.f32.mrf.mxu3 }
0x1187   : > { %v2223_v58 = vadd.f32 %v2222_v56, %v2201_v54  ;;  %v3545_v59 = vadd.f32 %v2243_v57, %v2225_v55 }
0x1189   : > { %2935 = vmatpush.xpose.msk.msra.mxu0 %vm526_vm3, %v2223_v58  ;;  %2274 = vrot.lane.b32.xlu1 %v2223_v58, %s3127_s10 }
0x118d   : > { %2422 = vmatpush.msrb.mxu0 %v3545_v59 }
0x1191   : > { %2330 = vrot.lane.b32.xlu1 %v2223_v58, %s3126_s22 }
0x1199   : > { %2302 = vrot.lane.b32.xlu1 %v2223_v58, %s3125_s21  ;;  %v2173_v58 = vld [vmem:[#allocation3 + $0x1e0] sm:$0xff] }
0x11e1   : > { %v2139_v3 = vpop.xlane.xlu1 %2138 }
0x11e2   : > { %v2140_v4 = vmul.f32 %v2139_v3, %v3278_v49 }
0x11e4   : > { %v2141_v5 = vadd.f32 1e-05, %v2140_v4 }
0x11e6   : > { %3054 = vrsqrt.f32 %v2141_v5  ;;  %vm2148_vm13 = vweird.f32 %v2141_v5 }
0x11ec   : > { %v3055_v6 = vpop.eup %3054 }
0x11ed   : > { %v2143_v7 = vmul.f32 %v3055_v6, %v2141_v5  ;;  %vm2149_vm12 = vweird.f32 %v3055_v6 }
0x11ee   : > { %vm2150_vm14 = vmor %vm2148_vm13, %vm2149_vm12 }
0x11ef   : > { %v2144_v8 = vmul.f32 %v3055_v6, %v2143_v7 }
0x11f1   : > { %v2145_v26 = vmul.f32 0.5, %v2144_v8 }
0x11f3   : > { %v2146_v10 = vsub.f32 1.5, %v2145_v26 }
0x11f5   : > { %v2147_v12 = vmul.f32 %v3055_v6, %v2146_v10 }
0x11f7   : > { %v2151_v63 = vsel %vm2150_vm14, %v3055_v6, %v2147_v12 }
0x11f8   : > { %v2152_v14 = vmul.f32 %v2151_v63, %v2135_v51 }
0x11fa   : > { %v2154_v17 = vmul.f32 %v2153_v13, %v2152_v14 }
0x11fb   : > { %v2275_v18 = vpop.permute.xlu1 %2274 }
0x11fc   : > { %2937 = vmatpush.xpose.msk.msra.mxu1 %vm526_vm3, %v2275_v18  ;;  %v3556_v21 = vadd.f32 %v2155_v16, %v2154_v17  ;;  %v2175_v18 = vld [vmem:[#allocation3 + $0x1f0] sm:$0xff] }
0x11fe   : > { %2932 = vmatmul.msk.f32.vlgmr.msrb.gmra.mxu1 %vm460_vm2, %v3556_v21 }
0x1203   : > { %v2331_v22 = vpop.permute.xlu1 %2330 }
0x1204   : > { %2941 = vmatpush.xpose.msk.msra.mxu3 %vm526_vm3, %v2331_v22  ;;  %v2176_v22 = vld [vmem:[#allocation3 + $0x1f8] sm:$0xff] }
0x1208   : > { %2495 = vmatpush.msrb.mxu3 %v2173_v58  ;;  %v2627_v58 = vperm.slane %v3541_v20, 3 }
0x120b   : > { %v2303_v24 = vpop.permute.xlu1 %2302 }
0x120c   : > { %2939 = vmatpush.xpose.msk.msra.mxu2 %vm526_vm3, %v2303_v24 }
0x1210   : > { %2472 = vmatpush.msrb.mxu2 %v2174_v60 }
0x127b   : > { %v2198_v27 = vpop.f32.mrf.mxu1 }
0x127c   : > { %v2199_v28 = vadd.f32 %v2198_v27, %v2177_v25 }
0x127e   : > { %2300 = vrot.lane.b32.xlu1 %v2199_v28, %s3125_s21  ;;  %2328 = vrot.lane.b32.xlu2 %v2199_v28, %s3126_s22 }
0x127f   : > { %2272 = vrot.lane.b32.xlu0 %v2199_v28, %s3127_s10  ;;  %2936 = vmatmul.msk.f32.vlgmr.msra.gmra.mxu0 %vm526_vm3, %v2199_v28 }
0x1286   : > { %2428 = vrot.lane.b32.xlu2 %v3545_v59, %s3127_s10 }
0x12d8   : > { %v2329_v29 = vpop.permute.xlu2 %2328 }
0x12d9   : > { %2942 = vmatmul.msk.f32.vlgmr.msra.gmra.mxu3 %vm526_vm3, %v2329_v29 }
0x12da   : > { %2594 = vmatpush.msra.mxu3 %v2176_v22 }
0x12e0   : > { %v2429_v30 = vpop.permute.xlu2 %2428 }
0x12e1   : > { %2449 = vmatpush.msrb.mxu1 %v2429_v30 }
0x12f0   : > { %v2301_v31 = vpop.permute.xlu1 %2300 }
0x12f1   : > { %v2273_v11 = vpop.permute.xlu0 %2272  ;;  %2940 = vmatmul.msk.f32.vlgmr.msra.gmra.mxu2 %vm526_vm3, %v2301_v31 }
0x12f2   : > { %2938 = vmatmul.msk.f32.vlgmr.msra.gmra.mxu1 %vm526_vm3, %v2273_v11  ;;  %v2600_v11 = vperm.slane %v3541_v20, 1 }
0x12f3   : > { %2544 = vmatpush.msra.mxu1 %v2175_v18 }
0x12fc   : > { %v2269_v19 = vpop.f32.mrf.mxu0 }
0x12fd   : > { %v2356_v32 = vmul.f32 0.35355338, %v2269_v19 }
0x12ff   : > { %v2360_v9 = vsel %vm526_vm3, %v2356_v32, -inf }
0x1300   : > { %2361 = vmax.xlane.f32.xlu2 %v2360_v9 }
0x135c   : > { %v2353_v34 = vpop.f32.mrf.mxu3 }
0x135d   : > { %v2359_v37 = vmul.f32 0.35355338, %v2353_v34 }
0x135f   : > { %v2369_v39 = vsel %vm526_vm3, %v2359_v37, -inf }
0x136f   : > { %v2297_v62 = vpop.f32.mrf.mxu1 }
0x1370   : > { %v2357_v2 = vmul.f32 0.35355338, %v2297_v62 }
0x1372   : > { %v2363_v33 = vsel %vm526_vm3, %v2357_v2, -inf }
0x1373   : > { %v2362_v35 = vpop.xlane.xlu2 %2361  ;;  %2364 = vmax.xlane.f32.xlu0 %v2363_v33 }
0x1374   : > { %v2372_v36 = vsub.f32 %v2356_v32, %v2362_v35  ;;  %v2325_v23 = vpop.f32.mrf.mxu2 }
0x1375   : > { %v2358_v51 = vmul.f32 0.35355338, %v2325_v23 }
0x1376   : > { %v2376_v38 = vmul.f32 1.442695, %v2372_v36 }
0x1377   : > { %v2366_v55 = vsel %vm526_vm3, %v2358_v51, -inf }
0x1378   : > { %3056 = vpow2.f32 %v2376_v38  ;;  %v2954_v38 = vld [vmem:[%s3677_s5 + $0x58] sm:$0xff] }
0x137b   : > { %2370 = vmax.xlane.f32.xlu0 %v2369_v39  ;;  %v2952_v39 = vld [vmem:[%s3677_s5 + $0x48] sm:$0xff] }
0x137e   : > { %v3057_v40 = vpop.eup %3056 }
0x137f   : > { %v2384_v41 = vsel %vm526_vm3, %v3057_v40, 0.0 }
0x1383   : > { %2385 = vadd.xlane.f32.xlu0 %v2384_v41  ;;  %v2962_v41 = vld [vmem:[%s3678_s6 + $0xb8] sm:$0xff] }
0x13e6   : > { %v2365_v42 = vpop.xlane.xlu0 %2364 }
0x13e7   : > { %v2373_v44 = vsub.f32 %v2357_v2, %v2365_v42  ;;  %v2961_v42 = vld [vmem:[%s3678_s6 + $0xb0] sm:$0xff] }
0x13e9   : > { %v2378_v15 = vmul.f32 1.442695, %v2373_v44  ;;  %v2960_v44 = vld [vmem:[%s3678_s6 + $0xa8] sm:$0xff] }
0x13eb   : > { %3058 = vpow2.f32 %v2378_v15 }
0x13ee   : > { %v2371_v45 = vpop.xlane.xlu0 %2370 }
0x13ef   : > { %v2375_v46 = vsub.f32 %v2359_v37, %v2371_v45 }
0x13f1   : > { %v3059_v47 = vpop.eup %3058  ;;  %v2382_v48 = vmul.f32 1.442695, %v2375_v46  ;;  %v2959_v46 = vld [vmem:[%s3678_s6 + $0xa0] sm:$0xff] }
0x13f2   : > { %v2387_v50 = vsel %vm526_vm3, %v3059_v47, 0.0 }
0x13f3   : > { %3060 = vpow2.f32 %v2382_v48  ;;  %2388 = vadd.xlane.f32.xlu1 %v2387_v50  ;;  %v2958_v48 = vld [vmem:[%s3678_s6 + $0x98] sm:$0xff] }
0x13f6   : > { %v2386_v52 = vpop.xlane.xlu0 %2385 }
0x13f7   : > { %3062 = vrcp.f32 %v2386_v52 }
0x13f9   : > { %v3061_v53 = vpop.eup %3060 }
0x13fa   : > { %v2393_v54 = vsel %vm526_vm3, %v3061_v53, 0.0 }
0x13fb   : > { %2394 = vadd.xlane.f32.xlu2 %v2393_v54  ;;  %2367 = vmax.xlane.f32.xlu1 %v2366_v55  ;;  %v2625_v55 = vperm.slane %v3541_v20, 2 }
0x13fd   : > { %v3063_v56 = vpop.eup %3062 }
0x13fe   : > { %v2400_v57 = vmul.f32 %v3063_v56, %v3057_v40  ;;  %v2951_v40 = vld [vmem:[%s3677_s5 + $0x40] sm:$0xff] }
0x1400   : > { %2943 = vmatmul.msk.f32.vlgmr.msrb.gmra.mxu0 %vm526_vm3, %v2400_v57 }
0x1413   : > { %2500 = vrot.lane.b32.xlu2 %v3545_v59, %s3125_s21 }
0x1414   : > { %2550 = vrot.lane.b32.xlu1 %v3545_v59, %s3126_s22  ;;  %s400_s22 = scalar_lea.vmem %s3683_s11, %s2853_s24 }
0x1466   : > { %v2389_v61 = vpop.xlane.xlu1 %2388 }
0x1467   : > { %3064 = vrcp.f32 %v2389_v61 }
0x146d   : > { %v3065_v0 = vpop.eup %3064 }
0x146e   : > { %v2401_v1 = vmul.f32 %v3065_v0, %v3059_v47  ;;  %v2395_v3 = vpop.xlane.xlu2 %2394  ;;  %v2368_v4 = vpop.xlane.xlu1 %2367  ;;  %v2957_v0 = vld [vmem:[%s3678_s6 + $0x90] sm:$0xff] }
0x146f   : > { %v2374_v5 = vsub.f32 %v2358_v51, %v2368_v4  ;;  %v3079_v4 = vld [vmem:[%s3680_s8] sm:$0x7] }
0x1470   : > { %2944 = vmatmul.msk.f32.vlgmr.msrb.gmra.mxu1 %vm526_vm3, %v2401_v1  ;;  %v2956_v1 = vld [vmem:[%s3678_s6 + $0x88] sm:$0xff] }
0x1471   : > { %v2380_v6 = vmul.f32 1.442695, %v2374_v5  ;;  %2680 = vmatpush.msrb.mxu1 %v2962_v41  ;;  %v2643_v5 = vperm.slane %v3079_v4, 2  ;;  %v2746_v41 = vld [vmem:[%s3681_s9] sm:$0xff] }
0x1473   : > { %3066 = vpow2.f32 %v2380_v6  ;;  %2681 = vmatpush.msrb.mxu1 %v2961_v42 }
0x1474   : > { %3068 = vrcp.f32 %v2395_v3  ;;  %v2955_v3 = vld [vmem:[%s3678_s6 + $0x80] sm:$0xff] }
0x1475   : > { %2682 = vmatpush.msrb.mxu1 %v2960_v44 }
0x1476   : > { %v2501_v7 = vpop.permute.xlu2 %2500 }
0x1477   : > { %2521 = vmatpush.msra.mxu0 %v2501_v7  ;;  %2683 = vmatpush.msrb.mxu1 %v2959_v46 }
0x1479   : > { %v3067_v8 = vpop.eup %3066  ;;  %2659 = vmatpush.msrb.mxu0 %v2954_v38  ;;  %2684 = vmatpush.msrb.mxu1 %v2958_v48 }
0x147a   : > { %v2390_v59 = vsel %vm526_vm3, %v3067_v8, 0.0  ;;  %v3069_v63 = vpop.eup %3068 }
0x147b   : > { %2391 = vadd.xlane.f32.xlu0 %v2390_v59  ;;  %v2403_v14 = vmul.f32 %v3069_v63, %v3061_v53  ;;  %2685 = vmatpush.msrb.mxu1 %v2957_v0  ;;  %v2668_v59 = vperm.slane %v3541_v20, 4 }
0x147d   : > { %v2424_v26 = vpop.f32.mrf.mxu0  ;;  %2686 = vmatpush.msrb.mxu1 %v2956_v1 }
0x147e   : > { %2946 = vmatmul.msk.f32.vlgmr.msrb.gmra.mxu3 %vm526_vm3, %v2424_v26 }
0x147f   : > { %2687 = vmatpush.msrb.mxu1 %v2955_v3 }
0x1486   : > { %v2551_v10 = vpop.permute.xlu1 %2550 }
0x1487   : > { %2571 = vmatpush.msra.mxu2 %v2551_v10 }
0x14ed   : > { %v2451_v12 = vpop.f32.mrf.mxu1 }
0x14ee   : > { %2945 = vmatmul.msk.f32.vlgmr.msrb.gmra.mxu2 %vm526_vm3, %v2451_v12  ;;  %v2392_v13 = vpop.xlane.xlu0 %2391 }
0x14ef   : > { %3070 = vrcp.f32 %v2392_v13 }
0x14f5   : > { %v3071_v16 = vpop.eup %3070 }
0x14f6   : > { %v2402_v17 = vmul.f32 %v3071_v16, %v3067_v8  ;;  %2949 = vmatmul.msk.f32.vlgmr.msra.gmra.mxu2 %vm526_vm3, %v2403_v14 }
0x14f8   : > { %2947 = vmatmul.msk.f32.vlgmr.msra.gmra.mxu0 %vm526_vm3, %v2402_v17 }
0x1501   : > { %v2497_v28 = vpop.f32.mrf.mxu3 }
0x1571   : > { %v2474_v24 = vpop.f32.mrf.mxu2 }
0x1572   : > { %v2498_v30 = vadd.f32 %v2497_v28, %v2474_v24 }
0x1575   : > { %v2523_v25 = vpop.f32.mrf.mxu0 }
0x1576   : > { %2948 = vmatmul.msk.f32.vlgmr.msra.gmra.mxu1 %vm526_vm3, %v2523_v25 }
0x1579   : > { %v2573_v27 = vpop.f32.mrf.mxu2 }
0x157a   : > { %2950 = vmatmul.msk.f32.vlgmr.msra.gmra.mxu3 %vm526_vm3, %v2573_v27 }
0x15f3   : > { %v2546_v29 = vpop.f32.mrf.mxu1 }
0x15f4   : > { %v2549_v31 = vadd.f32 %v2546_v29, %v2498_v30 }
0x15fd   : > { %v2596_v19 = vpop.f32.mrf.mxu3 }
0x15fe   : > { %v2599_v32 = vadd.f32 %v2596_v19, %v2549_v31  ;;  %v2715_v19 = vperm.slane %v3541_v20, 5 }
0x1600   : > { %v2601_v9 = vadd.f32 %v2600_v11, %v2599_v32 }
0x1602   : > { %v2602_v62 = vadd.f32 %v2601_v9, %v3556_v21  ;;  %v2953_v21 = vld [vmem:[%s3677_s5 + $0x50] sm:$0xff] }
0x1603   : > { %2660 = vmatpush.msrb.mxu0 %v2953_v21 }
0x1604   : > { %v2603_v2 = vsel %vm460_vm2, %v2602_v62, 0.0 }
0x1605   : > { %2604 = vadd.xlane.f32.xlu0 %v2603_v2  ;;  %2661 = vmatpush.msrb.mxu0 %v2952_v39  ;;  %v2749_v39 = vld [vmem:[%s3681_s9 + $0x18] sm:$0xff] }
0x1606   : > { %2770 = vmatpush.msrb.mxu2 %v2749_v39 }
0x1607   : > { %2662 = vmatpush.msrb.mxu0 %v2951_v40  ;;  %v2747_v40 = vld [vmem:[%s3681_s9 + $0x8] sm:$0xff] }
0x1678   : > { %v2605_v33 = vpop.xlane.xlu0 %2604 }
0x1679   : > { %v2606_v34 = vmul.f32 %v2605_v33, %v3278_v49 }
0x167b   : > { %v2607_v35 = vsub.f32 %v2602_v62, %v2606_v34  ;;  %v2717_v62 = vperm.slane %v3541_v20, 6  ;;  %v2748_v20 = vld [vmem:[%s3681_s9 + $0x10] sm:$0xff] }
0x167c   : > { %2771 = vmatpush.msrb.mxu2 %v2748_v20 }
0x167d   : > { %v2608_v36 = vmul.f32 %v2607_v35, %v2607_v35 }
0x167e   : > { %2772 = vmatpush.msrb.mxu2 %v2747_v40 }
0x167f   : > { %v2609_v37 = vsel %vm460_vm2, %v2608_v36, 0.0 }
0x1680   : > { %2610 = vadd.xlane.f32.xlu0 %v2609_v37  ;;  %2773 = vmatpush.msrb.mxu2 %v2746_v41 }
0x16f3   : > { %v2611_v15 = vpop.xlane.xlu0 %2610 }
0x16f4   : > { %v2612_v45 = vmul.f32 %v2611_v15, %v3278_v49 }
0x16f6   : > { %v2613_v47 = vadd.f32 1e-05, %v2612_v45 }
0x16f8   : > { %3072 = vrsqrt.f32 %v2613_v47  ;;  %vm2620_vm15 = vweird.f32 %v2613_v47 }
0x16fe   : > { %v3073_v50 = vpop.eup %3072 }
0x16ff   : > { %v2615_v23 = vmul.f32 %v3073_v50, %v2613_v47  ;;  %vm2621_vm3 = vweird.f32 %v3073_v50 }
0x1700   : > { %vm2622_vm0 = vmor %vm2620_vm15, %vm2621_vm3 }
0x1701   : > { %v2616_v51 = vmul.f32 %v3073_v50, %v2615_v23 }
0x1703   : > { %v2617_v52 = vmul.f32 0.5, %v2616_v51  ;;  %v2742_v51 = vperm.slane %v3530_v43, 4 }
0x1705   : > { %v2618_v53 = vsub.f32 1.5, %v2617_v52 }
0x1707   : > { %v2619_v54 = vmul.f32 %v3073_v50, %v2618_v53 }
0x1709   : > { %v2623_v56 = vsel %vm2622_vm0, %v3073_v50, %v2619_v54  ;;  %v2744_v54 = vperm.slane %v3530_v43, 5 }
0x170a   : > { %v2624_v57 = vmul.f32 %v2623_v56, %v2607_v35 }
0x170c   : > { %v2626_v60 = vmul.f32 %v2625_v55, %v2624_v57  ;;  %v2993_v57 = vld [vmem:[#allocation2] ss:$0 sm:$0xff] }
0x170e   : > { %v2628_v61 = vadd.f32 %v2627_v58, %v2626_v60 }
0x1710   : > { %2963 = vmatmul.msk.f32.vlgmr.msrb.gmra.mxu0 %vm460_vm2, %v2628_v61 }
0x178d   : > { %v2664_v6 = vpop.f32.mrf.mxu0 }
0x178e   : > { %v2665_v7 = vadd.f32 %v2664_v6, %v2643_v5 }
0x1790   : > { %v2667_v8 = vmax.f32 %v2665_v7, 0.0 }
0x1792   : > { %2964 = vmatmul.msk.f32.vlgmr.msrb.gmra.mxu1 %vm955_vm8, %v2667_v8 }
0x180f   : > { %v2689_v26 = vpop.f32.mrf.mxu1 }
0x1810   : > { %v2690_v10 = vadd.f32 %v2689_v26, %v2668_v59 }
0x1812   : > { %v2692_v12 = vadd.f32 %v2690_v10, %v2628_v61 }
0x1814   : > { %v2693_v13 = vsel %vm460_vm2, %v2692_v12, 0.0 }
0x1815   : > { %2694 = vadd.xlane.f32.xlu1 %v2693_v13 }
0x1888   : > { %v2695_v63 = vpop.xlane.xlu1 %2694 }
0x1889   : > { %v2696_v14 = vmul.f32 %v2695_v63, %v3278_v49 }
0x188b   : > { %v2697_v16 = vsub.f32 %v2692_v12, %v2696_v14 }
0x188d   : > { %v2698_v17 = vmul.f32 %v2697_v16, %v2697_v16 }
0x188f   : > { %v2699_v18 = vsel %vm460_vm2, %v2698_v17, 0.0 }
0x1890   : > { %2700 = vadd.xlane.f32.xlu0 %v2699_v18 }
0x1903   : > { %v2701_v22 = vpop.xlane.xlu0 %2700 }
0x1904   : > { %v2702_v24 = vmul.f32 %v2701_v22, %v3278_v49 }
0x1906   : > { %v2703_v25 = vadd.f32 1e-05, %v2702_v24 }
0x1908   : > { %3074 = vrsqrt.f32 %v2703_v25  ;;  %vm2710_vm1 = vweird.f32 %v2703_v25 }
0x190e   : > { %v3075_v27 = vpop.eup %3074 }
0x190f   : > { %v2705_v28 = vmul.f32 %v3075_v27, %v2703_v25  ;;  %vm2711_vm8 = vweird.f32 %v3075_v27 }
0x1910   : > { %vm2712_vm4 = vmor %vm2710_vm1, %vm2711_vm8 }
0x1911   : > { %v2706_v29 = vmul.f32 %v3075_v27, %v2705_v28 }
0x1913   : > { %v2707_v30 = vmul.f32 0.5, %v2706_v29 }
0x1915   : > { %v2708_v31 = vsub.f32 1.5, %v2707_v30 }
0x1917   : > { %v2709_v11 = vmul.f32 %v3075_v27, %v2708_v31 }
0x1919   : > { %v2713_v32 = vsel %vm2712_vm4, %v3075_v27, %v2709_v11 }
0x191a   : > { %v2714_v9 = vmul.f32 %v2713_v32, %v2697_v16 }
0x191c   : > { %v2716_v2 = vmul.f32 %v2715_v19, %v2714_v9 }
0x191e   : > { %v2718_v33 = vadd.f32 %v2717_v62, %v2716_v2 }
0x1920   : > { %v2720_v34 = vsel %vm2719_vm5, %v2718_v33, 0.0 }
0x1921   : > { %2721 = vadd.xlane.f32.xlu2 %v2720_v34 }
0x1994   : > { %v2722_v35 = vpop.xlane.xlu2 %2721 }
0x1995   : > { %v2723_v36 = vmul.f32 %v2722_v35, %v3278_v49 }
0x1997   : > { %v2724_v37 = vsub.f32 %v2718_v33, %v2723_v36 }
0x1999   : > { %v2725_v38 = vmul.f32 %v2724_v37, %v2724_v37 }
0x199b   : > { %v2726_v21 = vsel %vm2719_vm5, %v2725_v38, 0.0 }
0x199c   : > { %2727 = vadd.xlane.f32.xlu0 %v2726_v21 }
0x1a0f   : > { %v2728_v42 = vpop.xlane.xlu0 %2727 }
0x1a10   : > { %v2729_v44 = vmul.f32 %v2728_v42, %v3278_v49 }
0x1a12   : > { %v2730_v15 = vadd.f32 1e-05, %v2729_v44 }
0x1a14   : > { %3076 = vrsqrt.f32 %v2730_v15  ;;  %vm2737_vm7 = vweird.f32 %v2730_v15 }
0x1a1a   : > { %v3077_v45 = vpop.eup %3076 }
0x1a1b   : > { %v2732_v46 = vmul.f32 %v3077_v45, %v2730_v15  ;;  %vm2738_vm6 = vweird.f32 %v3077_v45 }
0x1a1c   : > { %vm2739_vm9 = vmor %vm2737_vm7, %vm2738_vm6 }
0x1a1d   : > { %v2733_v47 = vmul.f32 %v3077_v45, %v2732_v46 }
0x1a1f   : > { %v2734_v48 = vmul.f32 0.5, %v2733_v47 }
0x1a21   : > { %v2735_v50 = vsub.f32 1.5, %v2734_v48 }
0x1a23   : > { %v2736_v23 = vmul.f32 %v3077_v45, %v2735_v50 }
0x1a25   : > { %v2740_v52 = vsel %vm2739_vm9, %v3077_v45, %v2736_v23 }
0x1a26   : > { %v2741_v53 = vmul.f32 %v2740_v52, %v2724_v37 }
0x1a28   : > { %v2743_v55 = vmul.f32 %v2742_v51, %v2741_v53 }
0x1a2a   : > { %v2745_v49 = vadd.f32 %v2744_v54, %v2743_v55 }
0x1a2c   : > { %v2755_v56 = vrot.slane %v2745_v49, 4 }
0x1a2e   : > { %2965 = vmatmul.msk.f32.vlgmr.msrb.gmra.mxu2 %vm460_vm2, %v2755_v56 }
0x1ab1   : > { %v2775_v58 = vpop.f32.mrf.mxu2 }
0x1ab2   : > { %v2776_v60 = vadd.f32 %v2993_v57, %v2775_v58 }
0x1ab4   : > { %2779 = vst.msk [vmem:[%s400_s22] sm:$0xf] %vm2778_vm10, %v2776_v60 }
0x1ab5 PF: > { %s24_s19 = sadd.s32 1, %s3120_s19  }
0x1ab6   : > { %p21_p7 = scmp.ge.s32.totalorder %s24_s19, 4  }
0x1ab8   :  { %23 = sbr.rel (!%p21_p7) target bundleno = 4 (0x4), region = 119 }
0x1abd   :  { %2799 = vsyncpa [#allocation4], 1 }
0x1abe   :  { %2801 = vsyncpa [#allocation4 + $0x1], 1 }

</bundles_post_ra>
